<compile_context>
chip_gen: v6e
topology: v6e:2x2x1
jax: 0.10.0
libtpu: 0.0.40
codegen_flags: <defaults>
</compile_context>

<pallas_src>
import math

import jax
import jax.numpy as jnp
from jax.experimental import pallas as pl
from jax.experimental.pallas import tpu as pltpu


# ------------------------------ static layout --------------------------------

_LANES = 128          # every packed slab is 128 lanes wide (lane-dense stores)
_DENSE_ROWS = 256     # fcl1(128) + fcl2(64) + fcl3(32) + fcl4(16) + fc4(16)
_DENSE_K = 72         # sum over heads of (fan_in + 1 ones/bias column)

# amp conv branches:
#   (C, K+1, H, wfc_row_off, wfc_rows, wcol_row_off, shift_row, out_off, out_end)
_BRANCHES = (
    (128, 29, 7, 0,   88, 0,    0, 256, 320),   # amp1: 7x7x128
    (64,  16, 5, 88,  56, 1152, 1, 320, 360),   # amp2: 5x5x64
    (32,  7,  3, 144, 32, 1728, 2, 360, 376),   # amp3: 3x3x32
)
_WFC_ROWS = 176       # 88 + 56 + 32
_WFC_COLS = 29        # max(K+1)
_WCOL_ROWS = 2016     # 9*128 + 9*64 + 9*32
_OUT_ROWS = 376       # 256 dense rows + 64 + 40 + 16 conv sections


# ------------------------------- fused kernel --------------------------------

def _fused_kernel(xd_ref, wd_ref, wa_ref, a1_ref, a2_ref, a3_ref,
                  wfc_ref, wcol_ref, shift_ref, o_ref, xp1, xp2, xp3):
    """One batch element: five tiny linears + three (fc -> conv3x3+BN) branches."""
    # ---- fcl1..fcl4 and fc4 as ONE matmul (biases folded via ones columns) ----
    dense = jnp.maximum(
        jnp.dot(xd_ref[0], wd_ref[...], preferred_element_type=jnp.float32),
        0.0)                                                       # (256, 128)
    o_ref[0, 0:240, :] = dense[0:240, :]

    # ---- fc4 -> amp_layer4 (Linear 16->8, ReLU, Linear 8->16, ReLU) chain ----
    h = jnp.maximum(
        jnp.dot(dense[240:256, 0:16], wa_ref[0:16, :],
                preferred_element_type=jnp.float32) + wa_ref[16:17, :], 0.0)
    h = jnp.maximum(
        jnp.dot(h[:, 0:8], wa_ref[17:25, :],
                preferred_element_type=jnp.float32) + wa_ref[25:26, :], 0.0)
    o_ref[0, 240:256, :] = h                                       # (16, 128)

    # ---- three amp branches: fc+ReLU -> conv3x3 (+folded BN) + ReLU ---------
    for (C, Kp, H, wfc_off, wfc_rows, wcol_off, sh_row, out_off, out_end), \
            a_ref, xp in zip(_BRANCHES, (a1_ref, a2_ref, a3_ref),
                             (xp1, xp2, xp3)):
        Hp = H + 2
        M = H * Hp
        # fc + ReLU written directly as a flat zero-padded (rows, C) image:
        # the wrapper pre-scattered the fc weight rows to padded flat positions,
        # so padding rows come out as relu(0) = 0 with no in-kernel scatter.
        wfc = wfc_ref[wfc_off:wfc_off + wfc_rows, 0:Kp]            # (rows, K+1)
        xp[...] = jnp.maximum(
            jnp.dot(wfc, a_ref[0], preferred_element_type=jnp.float32), 0.0)
        # conv3x3 / pad=1 as 9 shifted matmuls accumulated in registers
        # (BN scale pre-folded into wcol, bias/shift applied once at the end).
        acc = jnp.zeros((M, _LANES), jnp.float32)
        for dy in range(3):
            for dx in range(3):
                t = dy * 3 + dx
                lhs = xp[dy * Hp + dx:dy * Hp + dx + M, :]          # (M, C)
                w_t = wcol_ref[wcol_off + t * C:wcol_off + (t + 1) * C, :]
                acc = acc + jnp.dot(lhs, w_t,
                                    preferred_element_type=jnp.float32)
        o_ref[0, out_off:out_off + M, :] = jnp.maximum(
            acc + shift_ref[sh_row:sh_row + 1, :], 0.0)
        gap = out_end - (out_off + M)
        if gap:  # deterministic zero fill of the unused section-padding rows
            o_ref[0, out_off + M:out_end, :] = jnp.zeros((gap, _LANES),
                                                         jnp.float32)


# --------------------------- wrapper-side packing -----------------------------

def _build_dense_slabs(params, lay1, lay2, lay3, lay4, amp4):
    """Pack the five tiny linears into one (B,256,72) input and (72,128) weight."""
    heads = [(lay1, params["fcl1"]), (lay2, params["fcl2"]),
             (lay3, params["fcl3"]), (lay4, params["fcl4"]),
             (amp4, params["fc4"])]
    B = lay1.shape[0]
    x_parts, w_parts, off = [], [], 0
    for x, (w, b) in heads:
        K, F = w.shape                                        # (fan_in, fan_out)
        xp = jnp.concatenate(
            [x.astype(jnp.float32), jnp.ones((B, x.shape[1], 1), jnp.float32)],
            axis=2)                                           # (B, R, K+1)
        x_parts.append(jnp.pad(xp, ((0, 0), (0, 0),
                                    (off, _DENSE_K - off - (K + 1)))))
        wb = jnp.concatenate([w, b[None, :]], axis=0)         # (K+1, F)
        w_parts.append(jnp.pad(wb, ((0, 0), (0, _LANES - F))))
        off += K + 1
    return (jnp.concatenate(x_parts, axis=1),                 # (B, 256, 72)
            jnp.concatenate(w_parts, axis=0))                 # (72, 128)


def _build_wa_slab(params):
    """amp_layer4 weights/biases packed into one (26,128) slab."""
    wa0, ba0 = params["amp_layer4_0"]                         # (16,8), (8,)
    wa1, ba1 = params["amp_layer4_1"]                         # (8,16), (16,)
    slab = jnp.zeros((26, _LANES), jnp.float32)
    slab = slab.at[0:16, 0:8].set(wa0)
    slab = slab.at[16, 0:8].set(ba0)
    slab = slab.at[17:25, 0:16].set(wa1)
    slab = slab.at[25, 0:16].set(ba1)
    return slab


def _build_amp_branch_inputs(amp, fc_w, fc_b, wfc_rows):
    """ampT with a ones row (bias fold) and the fc weight rows scattered to the
    zero-padded flat (Hp*Hp) image layout (padding emitted for free in-kernel)."""
    B, C, K = amp.shape
    HH = fc_w.shape[1]
    H = int(math.sqrt(HH))
    Hp = H + 2
    ampT = jnp.transpose(amp.astype(jnp.float32), (0, 2, 1))  # (B, K, C)
    ampTb = jnp.concatenate([ampT, jnp.ones((B, 1, C), jnp.float32)], axis=1)
    wfcb = jnp.concatenate([jnp.transpose(fc_w), fc_b[:, None]], axis=1)  # (HH,K+1)
    grid = jnp.zeros((Hp, Hp, K + 1), jnp.float32)
    grid = grid.at[1:1 + H, 1:1 + H, :].set(wfcb.reshape(H, H, K + 1))
    wpad = jnp.zeros((wfc_rows, K + 1), jnp.float32)
    wpad = wpad.at[0:Hp * Hp, :].set(grid.reshape(Hp * Hp, K + 1))
    return ampTb, jnp.pad(wpad, ((0, 0), (0, _WFC_COLS - (K + 1))))


def _fold_conv_bn(w, b, gamma, beta, mean, var, eps=1e-5):
    """Fold eval-mode BN into the conv: weights as (9*Cin, 128), shift (128,)."""
    C, Cout = w.shape[2], w.shape[3]
    scale = gamma / jnp.sqrt(var + eps)
    wcol = (w * scale[None, None, None, :]).reshape(9 * C, Cout)
    shift = beta + scale * (b - mean)
    return (jnp.pad(wcol, ((0, 0), (0, _LANES - Cout))),
            jnp.pad(shift, (0, _LANES - Cout)))


# ------------------------------- forward pass ---------------------------------

def similarity_learn_forward(params, lay1, lay2, lay3, lay4,
                             amp1, amp2, amp3, amp4):
    B = lay1.shape[0]

    x_dense, w_dense = _build_dense_slabs(params, lay1, lay2, lay3, lay4, amp4)
    wa_slab = _build_wa_slab(params)
    a1, wfc1 = _build_amp_branch_inputs(amp1, *params["fc1"], _BRANCHES[0][4])
    a2, wfc2 = _build_amp_branch_inputs(amp2, *params["fc2"], _BRANCHES[1][4])
    a3, wfc3 = _build_amp_branch_inputs(amp3, *params["fc3"], _BRANCHES[2][4])
    wfc_slab = jnp.concatenate([wfc1, wfc2, wfc3], axis=0)        # (176, 29)
    wc1, sh1 = _fold_conv_bn(*params["amp_layer1"])
    wc2, sh2 = _fold_conv_bn(*params["amp_layer2"])
    wc3, sh3 = _fold_conv_bn(*params["amp_layer3"])
    wcol_slab = jnp.concatenate([wc1, wc2, wc3], axis=0)          # (2016, 128)
    shift_slab = jnp.stack([sh1, sh2, sh3], axis=0)               # (3, 128)

    out = pl.pallas_call(
        _fused_kernel,
        out_shape=jax.ShapeDtypeStruct((B, _OUT_ROWS, _LANES), jnp.float32),
        grid=(B,),
        in_specs=[
            pl.BlockSpec((1, _DENSE_ROWS, _DENSE_K), lambda b: (b, 0, 0)),
            pl.BlockSpec((_DENSE_K, _LANES), lambda b: (0, 0)),
            pl.BlockSpec((26, _LANES), lambda b: (0, 0)),
            pl.BlockSpec((1, 29, 128), lambda b: (b, 0, 0)),
            pl.BlockSpec((1, 16, 64), lambda b: (b, 0, 0)),
            pl.BlockSpec((1, 7, 32), lambda b: (b, 0, 0)),
            pl.BlockSpec((_WFC_ROWS, _WFC_COLS), lambda b: (0, 0)),
            pl.BlockSpec((_WCOL_ROWS, _LANES), lambda b: (0, 0)),
            pl.BlockSpec((3, _LANES), lambda b: (0, 0)),
        ],
        out_specs=pl.BlockSpec((1, _OUT_ROWS, _LANES), lambda b: (b, 0, 0)),
        scratch_shapes=[
            pltpu.VMEM((88, 128), jnp.float32),    # amp1 padded flat image
            pltpu.VMEM((56, 64), jnp.float32),     # amp2 padded flat image
            pltpu.VMEM((32, 32), jnp.float32),     # amp3 padded flat image
        ],
        compiler_params=pltpu.CompilerParams(
            dimension_semantics=("parallel",)),    # v7x megacore over batch
    )(x_dense, w_dense, wa_slab, a1, a2, a3, wfc_slab, wcol_slab, shift_slab)

    # -------- wrapper-side slicing back to the PyTorch output layouts --------
    def reshape_feature(x):
        b, l, c = x.shape
        h = int(math.sqrt(c))
        return x.reshape(b, l, h, h)

    def extract_conv(off, H, Cout):
        Hp = H + 2
        sec = out[:, off:off + H * Hp, :]
        sec = sec.reshape(B, H, Hp, _LANES)[:, :, :H, :Cout]      # (B,H,H,Cout)
        return jnp.transpose(sec, (0, 3, 1, 2))                   # NCHW

    l1 = reshape_feature(out[:, 0:128, 0:49])
    l2 = reshape_feature(out[:, 128:192, 0:25])
    l3 = reshape_feature(out[:, 192:224, 0:9])
    l4 = out[:, 224:240, 0:16]
    a4 = out[:, 240:256, 0:16]
    a1o = extract_conv(256, 7, 128)
    a2o = extract_conv(320, 5, 64)
    a3o = extract_conv(360, 3, 32)
    return l1, l2, l3, l4, a1o, a2o, a3o, a4


# --------------------------- parameter construction ---------------------------

def init_linear(key, fan_in, fan_out):
    k = 1.0 / math.sqrt(fan_in)
    kw, kb = jax.random.split(key)
    w = jax.random.uniform(kw, (fan_in, fan_out), jnp.float32, -k, k)
    b = jax.random.uniform(kb, (fan_out,), jnp.float32, -k, k)
    return w, b


def init_conv_bn(key, cin, cout):
    k = 1.0 / math.sqrt(cin * 9)
    kw, kb = jax.random.split(key)
    w = jax.random.uniform(kw, (3, 3, cin, cout), jnp.float32, -k, k)   # HWIO
    b = jax.random.uniform(kb, (cout,), jnp.float32, -k, k)
    gamma = jnp.ones((cout,), jnp.float32)
    beta = jnp.zeros((cout,), jnp.float32)
    mean = jnp.zeros((cout,), jnp.float32)
    var = jnp.ones((cout,), jnp.float32)
    return (w, b, gamma, beta, mean, var)


def make_params(seed=0):
    keys = jax.random.split(jax.random.PRNGKey(seed), 16)
    p = {}
    p["fc4"] = init_linear(keys[0], 9, 16)
    p["fc3"] = init_linear(keys[1], 6, 9)
    p["fc2"] = init_linear(keys[2], 15, 25)
    p["fc1"] = init_linear(keys[3], 28, 49)
    p["fcl4"] = init_linear(keys[4], 9, 16)
    p["fcl3"] = init_linear(keys[5], 6, 9)
    p["fcl2"] = init_linear(keys[6], 15, 25)
    p["fcl1"] = init_linear(keys[7], 28, 49)
    p["amp_layer1"] = init_conv_bn(keys[8], 128, 128)
    p["amp_layer2"] = init_conv_bn(keys[9], 64, 64)
    p["amp_layer3"] = init_conv_bn(keys[10], 32, 32)
    p["amp_layer4_0"] = init_linear(keys[11], 16, 8)
    p["amp_layer4_1"] = init_linear(keys[12], 8, 16)
    return p


# ------------------------------ reference (JAX) -------------------------------

def _reshape_feature(x):
    b, l, c = x.shape
    h = int(math.sqrt(c))
    return x.reshape(b, l, h, h)


def _ref_linear_relu(x, w, b):
    return jnp.maximum(x @ w + b, 0.0)


def _ref_conv_bn_relu(x_nchw, w, b, gamma, beta, mean, var, eps=1e-5):
    out = jax.lax.conv_general_dilated(
        x_nchw, jnp.transpose(w, (3, 2, 0, 1)),                  # HWIO -> OIHW
        window_strides=(1, 1), padding="SAME",
        dimension_numbers=("NCHW", "OIHW", "NCHW"))
    out = out + b[None, :, None, None]
    scale = (gamma / jnp.sqrt(var + eps))[None, :, None, None]
    out = scale * (out - mean[None, :, None, None]) + beta[None, :, None, None]
    return jnp.maximum(out, 0.0)


# ----------------------------------- main --------------------------------------

if __name__ == "__main__":
    params = make_params(seed=0)

    key = jax.random.PRNGKey(0)
    ks = jax.random.split(key, 8)
    B = 2
    lay1 = jax.random.normal(ks[0], (B, 128, 28), jnp.float32)
    lay2 = jax.random.normal(ks[1], (B, 64, 15), jnp.float32)
    lay3 = jax.random.normal(ks[2], (B, 32, 6), jnp.float32)
    lay4 = jax.random.normal(ks[3], (B, 16, 9), jnp.float32)
    amp1 = jax.random.normal(ks[4], (B, 128, 28), jnp.float32)
    amp2 = jax.random.normal(ks[5], (B, 64, 15), jnp.float32)
    amp3 = jax.random.normal(ks[6], (B, 32, 6), jnp.float32)
    amp4 = jax.random.normal(ks[7], (B, 16, 9), jnp.float32)

    fwd = jax.jit(lambda *a: similarity_learn_forward(params, *a))
    outs = fwd(lay1, lay2, lay3, lay4, amp1, amp2, amp3, amp4)
    outs = jax.block_until_ready(outs)
    l1, l2, l3, l4, a1, a2, a3, a4 = outs

    # shape checks (PyTorch-equivalent shapes)
    assert l1.shape == (B, 128, 7, 7) and a1.shape == (B, 128, 7, 7)
    assert l2.shape == (B, 64, 5, 5) and a2.shape == (B, 64, 5, 5)
    assert l3.shape == (B, 32, 3, 3) and a3.shape == (B, 32, 3, 3)
    assert l4.shape == (B, 16, 16) and a4.shape == (B, 16, 16)

    # numerical checks against a pure-JAX reference (all 8 outputs)
    l1_ref = _reshape_feature(_ref_linear_relu(lay1, *params["fcl1"]))
    l2_ref = _reshape_feature(_ref_linear_relu(lay2, *params["fcl2"]))
    l3_ref = _reshape_feature(_ref_linear_relu(lay3, *params["fcl3"]))
    l4_ref = _ref_linear_relu(lay4, *params["fcl4"])
    a1_ref = _ref_conv_bn_relu(
        _reshape_feature(_ref_linear_relu(amp1, *params["fc1"])),
        *params["amp_layer1"])
    a2_ref = _ref_conv_bn_relu(
        _reshape_feature(_ref_linear_relu(amp2, *params["fc2"])),
        *params["amp_layer2"])
    a3_ref = _ref_conv_bn_relu(
        _reshape_feature(_ref_linear_relu(amp3, *params["fc3"])),
        *params["amp_layer3"])
    a4_ref = _ref_linear_relu(
        _ref_linear_relu(_ref_linear_relu(amp4, *params["fc4"]),
                         *params["amp_layer4_0"]),
        *params["amp_layer4_1"])

    checks = [(l1, l1_ref), (l2, l2_ref), (l3, l3_ref), (l4, l4_ref),
              (a1, a1_ref), (a2, a2_ref), (a3, a3_ref), (a4, a4_ref)]
    for got, ref in checks:
        assert got.shape == ref.shape
        assert jnp.allclose(got, ref, atol=1e-4, rtol=1e-4)

    print("KERNEL_OK")
</pallas_src>

<mosaic_0001>
module attributes {stable_mosaic.version = 11 : i64} {
  func.func @_fused_kernel(%arg0: i32, %arg1: memref<1x256x72xf32, #tpu.memory_space<vmem>>, %arg2: memref<72x128xf32, #tpu.memory_space<vmem>>, %arg3: memref<26x128xf32, #tpu.memory_space<vmem>>, %arg4: memref<1x29x128xf32, #tpu.memory_space<vmem>>, %arg5: memref<1x16x64xf32, #tpu.memory_space<vmem>>, %arg6: memref<1x7x32xf32, #tpu.memory_space<vmem>>, %arg7: memref<176x29xf32, #tpu.memory_space<vmem>>, %arg8: memref<2016x128xf32, #tpu.memory_space<vmem>>, %arg9: memref<3x128xf32, #tpu.memory_space<vmem>>, %arg10: memref<1x376x128xf32, #tpu.memory_space<vmem>>, %arg11: memref<88x128xf32, #tpu.memory_space<vmem>>, %arg12: memref<56x64xf32, #tpu.memory_space<vmem>>, %arg13: memref<32x32xf32, #tpu.memory_space<vmem>>) attributes {dimension_semantics = [#tpu.dimension_semantics<parallel>], iteration_bounds = array<i64: 2>, scalar_prefetch = 0 : i64, scratch_operands = 3 : i64, tpu.core_type = #tpu.core_type<tc>, window_params = [{transform_indices = @transform_0, window_bounds = array<i64: 1, 256, 72>}, {pipeline_mode = #tpu.pipeline_mode<synchronous>, transform_indices = @transform_1, window_bounds = array<i64: 72, 128>}, {pipeline_mode = #tpu.pipeline_mode<synchronous>, transform_indices = @transform_2, window_bounds = array<i64: 26, 128>}, {transform_indices = @transform_3, window_bounds = array<i64: 1, 29, 128>}, {transform_indices = @transform_4, window_bounds = array<i64: 1, 16, 64>}, {transform_indices = @transform_5, window_bounds = array<i64: 1, 7, 32>}, {pipeline_mode = #tpu.pipeline_mode<synchronous>, transform_indices = @transform_6, window_bounds = array<i64: 176, 29>}, {pipeline_mode = #tpu.pipeline_mode<synchronous>, transform_indices = @transform_7, window_bounds = array<i64: 2016, 128>}, {pipeline_mode = #tpu.pipeline_mode<synchronous>, transform_indices = @transform_8, window_bounds = array<i64: 3, 128>}, {transform_indices = @transform_9, window_bounds = array<i64: 1, 376, 128>}]} {
    %c0 = arith.constant 0 : index
    %c0_0 = arith.constant 0 : index
    %c0_1 = arith.constant 0 : index
    %0 = vector.load %arg1[%c0, %c0_0, %c0_1] : memref<1x256x72xf32, #tpu.memory_space<vmem>>, vector<1x256x72xf32>
    %1 = vector.shape_cast %0 : vector<1x256x72xf32> to vector<256x72xf32>
    %c0_2 = arith.constant 0 : index
    %c0_3 = arith.constant 0 : index
    %2 = vector.load %arg2[%c0_2, %c0_3] : memref<72x128xf32, #tpu.memory_space<vmem>>, vector<72x128xf32>
    %cst = arith.constant dense<0.000000e+00> : vector<256x128xf32>
    %3 = tpu.matmul %1, %2, %cst {dimension_numbers = #tpu.dot_dimension_numbers<[1], [0], [0], [1], [0, 0, 1, 1], [], []>} : vector<256x72xf32>, vector<72x128xf32>, vector<256x128xf32> -> vector<256x128xf32>
    %cst_4 = arith.constant 0.000000e+00 : f32
    %4 = vector.broadcast %cst_4 : f32 to vector<256x128xf32>
    %5 = arith.maximumf %3, %4 : vector<256x128xf32>
    %6 = vector.extract_strided_slice %5 {offsets = [0, 0], sizes = [240, 128], strides = [1, 1]} : vector<256x128xf32> to vector<240x128xf32>
    %c0_5 = arith.constant 0 : index
    %c0_6 = arith.constant 0 : index
    %c0_7 = arith.constant 0 : index
    %7 = vector.load %arg10[%c0_5, %c0_6, %c0_7] : memref<1x376x128xf32, #tpu.memory_space<vmem>>, vector<1x240x128xf32>
    %8 = vector.shape_cast %7 : vector<1x240x128xf32> to vector<240x128xf32>
    %9 = vector.shape_cast %6 : vector<240x128xf32> to vector<1x240x128xf32>
    tpu.vector_store %arg10[%c0_5, %c0_6, %c0_7], %9 {strides = array<i32>} : memref<1x376x128xf32, #tpu.memory_space<vmem>>, vector<1x240x128xf32>,
    %10 = vector.extract_strided_slice %5 {offsets = [240, 0], sizes = [16, 16], strides = [1, 1]} : vector<256x128xf32> to vector<16x16xf32>
    %c0_8 = arith.constant 0 : index
    %c0_9 = arith.constant 0 : index
    %11 = vector.load %arg3[%c0_8, %c0_9] : memref<26x128xf32, #tpu.memory_space<vmem>>, vector<16x128xf32>
    %cst_10 = arith.constant dense<0.000000e+00> : vector<16x128xf32>
    %12 = tpu.matmul %10, %11, %cst_10 {dimension_numbers = #tpu.dot_dimension_numbers<[1], [0], [0], [1], [0, 0, 1, 1], [], []>} : vector<16x16xf32>, vector<16x128xf32>, vector<16x128xf32> -> vector<16x128xf32>
    %c16 = arith.constant 16 : index
    %c0_11 = arith.constant 0 : index
    %13 = vector.load %arg3[%c16, %c0_11] : memref<26x128xf32, #tpu.memory_space<vmem>>, vector<1x128xf32>
    %14 = vector.broadcast %13 : vector<1x128xf32> to vector<16x128xf32>
    %15 = arith.addf %12, %14 : vector<16x128xf32>
    %cst_12 = arith.constant 0.000000e+00 : f32
    %16 = vector.broadcast %cst_12 : f32 to vector<16x128xf32>
    %17 = arith.maximumf %15, %16 : vector<16x128xf32>
    %18 = vector.extract_strided_slice %17 {offsets = [0, 0], sizes = [16, 8], strides = [1, 1]} : vector<16x128xf32> to vector<16x8xf32>
    %c17 = arith.constant 17 : index
    %c0_13 = arith.constant 0 : index
    %19 = vector.load %arg3[%c17, %c0_13] : memref<26x128xf32, #tpu.memory_space<vmem>>, vector<8x128xf32>
    %cst_14 = arith.constant dense<0.000000e+00> : vector<16x128xf32>
    %20 = tpu.matmul %18, %19, %cst_14 {dimension_numbers = #tpu.dot_dimension_numbers<[1], [0], [0], [1], [0, 0, 1, 1], [], []>} : vector<16x8xf32>, vector<8x128xf32>, vector<16x128xf32> -> vector<16x128xf32>
    %c25 = arith.constant 25 : index
    %c0_15 = arith.constant 0 : index
    %21 = vector.load %arg3[%c25, %c0_15] : memref<26x128xf32, #tpu.memory_space<vmem>>, vector<1x128xf32>
    %22 = vector.broadcast %21 : vector<1x128xf32> to vector<16x128xf32>
    %23 = arith.addf %20, %22 : vector<16x128xf32>
    %cst_16 = arith.constant 0.000000e+00 : f32
    %24 = vector.broadcast %cst_16 : f32 to vector<16x128xf32>
    %25 = arith.maximumf %23, %24 : vector<16x128xf32>
    %c0_17 = arith.constant 0 : index
    %c240 = arith.constant 240 : index
    %c0_18 = arith.constant 0 : index
    %26 = vector.load %arg10[%c0_17, %c240, %c0_18] : memref<1x376x128xf32, #tpu.memory_space<vmem>>, vector<1x16x128xf32>
    %27 = vector.shape_cast %26 : vector<1x16x128xf32> to vector<16x128xf32>
    %28 = vector.shape_cast %25 : vector<16x128xf32> to vector<1x16x128xf32>
    tpu.vector_store %arg10[%c0_17, %c240, %c0_18], %28 {strides = array<i32>} : memref<1x376x128xf32, #tpu.memory_space<vmem>>, vector<1x16x128xf32>,
    %c0_19 = arith.constant 0 : index
    %c0_20 = arith.constant 0 : index
    %29 = vector.load %arg7[%c0_19, %c0_20] : memref<176x29xf32, #tpu.memory_space<vmem>>, vector<88x29xf32>
    %c0_21 = arith.constant 0 : index
    %c0_22 = arith.constant 0 : index
    %c0_23 = arith.constant 0 : index
    %30 = vector.load %arg4[%c0_21, %c0_22, %c0_23] : memref<1x29x128xf32, #tpu.memory_space<vmem>>, vector<1x29x128xf32>
    %31 = vector.shape_cast %30 : vector<1x29x128xf32> to vector<29x128xf32>
    %cst_24 = arith.constant dense<0.000000e+00> : vector<88x128xf32>
    %32 = tpu.matmul %29, %31, %cst_24 {dimension_numbers = #tpu.dot_dimension_numbers<[1], [0], [0], [1], [0, 0, 1, 1], [], []>} : vector<88x29xf32>, vector<29x128xf32>, vector<88x128xf32> -> vector<88x128xf32>
    %cst_25 = arith.constant 0.000000e+00 : f32
    %33 = vector.broadcast %cst_25 : f32 to vector<88x128xf32>
    %34 = arith.maximumf %32, %33 : vector<88x128xf32>
    %c0_26 = arith.constant 0 : index
    %c0_27 = arith.constant 0 : index
    %35 = vector.load %arg11[%c0_26, %c0_27] : memref<88x128xf32, #tpu.memory_space<vmem>>, vector<88x128xf32>
    tpu.vector_store %arg11[%c0_26, %c0_27], %34 {strides = array<i32>} : memref<88x128xf32, #tpu.memory_space<vmem>>, vector<88x128xf32>,
    %cst_28 = arith.constant 0.000000e+00 : f32
    %36 = vector.broadcast %cst_28 : f32 to vector<63x128xf32>
    %c0_29 = arith.constant 0 : index
    %c0_30 = arith.constant 0 : index
    %37 = vector.load %arg11[%c0_29, %c0_30] : memref<88x128xf32, #tpu.memory_space<vmem>>, vector<63x128xf32>
    %c0_31 = arith.constant 0 : index
    %c0_32 = arith.constant 0 : index
    %38 = vector.load %arg8[%c0_31, %c0_32] : memref<2016x128xf32, #tpu.memory_space<vmem>>, vector<128x128xf32>
    %cst_33 = arith.constant dense<0.000000e+00> : vector<63x128xf32>
    %39 = tpu.matmul %37, %38, %cst_33 {dimension_numbers = #tpu.dot_dimension_numbers<[1], [0], [0], [1], [0, 0, 1, 1], [], []>} : vector<63x128xf32>, vector<128x128xf32>, vector<63x128xf32> -> vector<63x128xf32>
    %40 = arith.addf %36, %39 : vector<63x128xf32>
    %c1 = arith.constant 1 : index
    %c0_34 = arith.constant 0 : index
    %41 = vector.load %arg11[%c1, %c0_34] : memref<88x128xf32, #tpu.memory_space<vmem>>, vector<63x128xf32>
    %c128 = arith.constant 128 : index
    %c0_35 = arith.constant 0 : index
    %42 = vector.load %arg8[%c128, %c0_35] : memref<2016x128xf32, #tpu.memory_space<vmem>>, vector<128x128xf32>
    %cst_36 = arith.constant dense<0.000000e+00> : vector<63x128xf32>
    %43 = tpu.matmul %41, %42, %cst_36 {dimension_numbers = #tpu.dot_dimension_numbers<[1], [0], [0], [1], [0, 0, 1, 1], [], []>} : vector<63x128xf32>, vector<128x128xf32>, vector<63x128xf32> -> vector<63x128xf32>
    %44 = arith.addf %40, %43 : vector<63x128xf32>
    %c2 = arith.constant 2 : index
    %c0_37 = arith.constant 0 : index
    %45 = vector.load %arg11[%c2, %c0_37] : memref<88x128xf32, #tpu.memory_space<vmem>>, vector<63x128xf32>
    %c256 = arith.constant 256 : index
    %c0_38 = arith.constant 0 : index
    %46 = vector.load %arg8[%c256, %c0_38] : memref<2016x128xf32, #tpu.memory_space<vmem>>, vector<128x128xf32>
    %cst_39 = arith.constant dense<0.000000e+00> : vector<63x128xf32>
    %47 = tpu.matmul %45, %46, %cst_39 {dimension_numbers = #tpu.dot_dimension_numbers<[1], [0], [0], [1], [0, 0, 1, 1], [], []>} : vector<63x128xf32>, vector<128x128xf32>, vector<63x128xf32> -> vector<63x128xf32>
    %48 = arith.addf %44, %47 : vector<63x128xf32>
    %c9 = arith.constant 9 : index
    %c0_40 = arith.constant 0 : index
    %49 = vector.load %arg11[%c9, %c0_40] : memref<88x128xf32, #tpu.memory_space<vmem>>, vector<63x128xf32>
    %c384 = arith.constant 384 : index
    %c0_41 = arith.constant 0 : index
    %50 = vector.load %arg8[%c384, %c0_41] : memref<2016x128xf32, #tpu.memory_space<vmem>>, vector<128x128xf32>
    %cst_42 = arith.constant dense<0.000000e+00> : vector<63x128xf32>
    %51 = tpu.matmul %49, %50, %cst_42 {dimension_numbers = #tpu.dot_dimension_numbers<[1], [0], [0], [1], [0, 0, 1, 1], [], []>} : vector<63x128xf32>, vector<128x128xf32>, vector<63x128xf32> -> vector<63x128xf32>
    %52 = arith.addf %48, %51 : vector<63x128xf32>
    %c10 = arith.constant 10 : index
    %c0_43 = arith.constant 0 : index
    %53 = vector.load %arg11[%c10, %c0_43] : memref<88x128xf32, #tpu.memory_space<vmem>>, vector<63x128xf32>
    %c512 = arith.constant 512 : index
    %c0_44 = arith.constant 0 : index
    %54 = vector.load %arg8[%c512, %c0_44] : memref<2016x128xf32, #tpu.memory_space<vmem>>, vector<128x128xf32>
    %cst_45 = arith.constant dense<0.000000e+00> : vector<63x128xf32>
    %55 = tpu.matmul %53, %54, %cst_45 {dimension_numbers = #tpu.dot_dimension_numbers<[1], [0], [0], [1], [0, 0, 1, 1], [], []>} : vector<63x128xf32>, vector<128x128xf32>, vector<63x128xf32> -> vector<63x128xf32>
    %56 = arith.addf %52, %55 : vector<63x128xf32>
    %c11 = arith.constant 11 : index
    %c0_46 = arith.constant 0 : index
    %57 = vector.load %arg11[%c11, %c0_46] : memref<88x128xf32, #tpu.memory_space<vmem>>, vector<63x128xf32>
    %c640 = arith.constant 640 : index
    %c0_47 = arith.constant 0 : index
    %58 = vector.load %arg8[%c640, %c0_47] : memref<2016x128xf32, #tpu.memory_space<vmem>>, vector<128x128xf32>
    %cst_48 = arith.constant dense<0.000000e+00> : vector<63x128xf32>
    %59 = tpu.matmul %57, %58, %cst_48 {dimension_numbers = #tpu.dot_dimension_numbers<[1], [0], [0], [1], [0, 0, 1, 1], [], []>} : vector<63x128xf32>, vector<128x128xf32>, vector<63x128xf32> -> vector<63x128xf32>
    %60 = arith.addf %56, %59 : vector<63x128xf32>
    %c18 = arith.constant 18 : index
    %c0_49 = arith.constant 0 : index
    %61 = vector.load %arg11[%c18, %c0_49] : memref<88x128xf32, #tpu.memory_space<vmem>>, vector<63x128xf32>
    %c768 = arith.constant 768 : index
    %c0_50 = arith.constant 0 : index
    %62 = vector.load %arg8[%c768, %c0_50] : memref<2016x128xf32, #tpu.memory_space<vmem>>, vector<128x128xf32>
    %cst_51 = arith.constant dense<0.000000e+00> : vector<63x128xf32>
    %63 = tpu.matmul %61, %62, %cst_51 {dimension_numbers = #tpu.dot_dimension_numbers<[1], [0], [0], [1], [0, 0, 1, 1], [], []>} : vector<63x128xf32>, vector<128x128xf32>, vector<63x128xf32> -> vector<63x128xf32>
    %64 = arith.addf %60, %63 : vector<63x128xf32>
    %c19 = arith.constant 19 : index
    %c0_52 = arith.constant 0 : index
    %65 = vector.load %arg11[%c19, %c0_52] : memref<88x128xf32, #tpu.memory_space<vmem>>, vector<63x128xf32>
    %c896 = arith.constant 896 : index
    %c0_53 = arith.constant 0 : index
    %66 = vector.load %arg8[%c896, %c0_53] : memref<2016x128xf32, #tpu.memory_space<vmem>>, vector<128x128xf32>
    %cst_54 = arith.constant dense<0.000000e+00> : vector<63x128xf32>
    %67 = tpu.matmul %65, %66, %cst_54 {dimension_numbers = #tpu.dot_dimension_numbers<[1], [0], [0], [1], [0, 0, 1, 1], [], []>} : vector<63x128xf32>, vector<128x128xf32>, vector<63x128xf32> -> vector<63x128xf32>
    %68 = arith.addf %64, %67 : vector<63x128xf32>
    %c20 = arith.constant 20 : index
    %c0_55 = arith.constant 0 : index
    %69 = vector.load %arg11[%c20, %c0_55] : memref<88x128xf32, #tpu.memory_space<vmem>>, vector<63x128xf32>
    %c1024 = arith.constant 1024 : index
    %c0_56 = arith.constant 0 : index
    %70 = vector.load %arg8[%c1024, %c0_56] : memref<2016x128xf32, #tpu.memory_space<vmem>>, vector<128x128xf32>
    %cst_57 = arith.constant dense<0.000000e+00> : vector<63x128xf32>
    %71 = tpu.matmul %69, %70, %cst_57 {dimension_numbers = #tpu.dot_dimension_numbers<[1], [0], [0], [1], [0, 0, 1, 1], [], []>} : vector<63x128xf32>, vector<128x128xf32>, vector<63x128xf32> -> vector<63x128xf32>
    %72 = arith.addf %68, %71 : vector<63x128xf32>
    %c0_58 = arith.constant 0 : index
    %c0_59 = arith.constant 0 : index
    %73 = vector.load %arg9[%c0_58, %c0_59] : memref<3x128xf32, #tpu.memory_space<vmem>>, vector<1x128xf32>
    %74 = vector.broadcast %73 : vector<1x128xf32> to vector<63x128xf32>
    %75 = arith.addf %72, %74 : vector<63x128xf32>
    %cst_60 = arith.constant 0.000000e+00 : f32
    %76 = vector.broadcast %cst_60 : f32 to vector<63x128xf32>
    %77 = arith.maximumf %75, %76 : vector<63x128xf32>
    %c0_61 = arith.constant 0 : index
    %c256_62 = arith.constant 256 : index
    %c0_63 = arith.constant 0 : index
    %78 = vector.load %arg10[%c0_61, %c256_62, %c0_63] : memref<1x376x128xf32, #tpu.memory_space<vmem>>, vector<1x63x128xf32>
    %79 = vector.shape_cast %78 : vector<1x63x128xf32> to vector<63x128xf32>
    %80 = vector.shape_cast %77 : vector<63x128xf32> to vector<1x63x128xf32>
    tpu.vector_store %arg10[%c0_61, %c256_62, %c0_63], %80 {strides = array<i32>} : memref<1x376x128xf32, #tpu.memory_space<vmem>>, vector<1x63x128xf32>,
    %cst_64 = arith.constant 0.000000e+00 : f32
    %81 = vector.broadcast %cst_64 : f32 to vector<1x128xf32>
    %c0_65 = arith.constant 0 : index
    %c319 = arith.constant 319 : index
    %c0_66 = arith.constant 0 : index
    %82 = vector.load %arg10[%c0_65, %c319, %c0_66] : memref<1x376x128xf32, #tpu.memory_space<vmem>>, vector<1x1x128xf32>
    %83 = vector.shape_cast %82 : vector<1x1x128xf32> to vector<1x128xf32>
    %84 = vector.shape_cast %81 : vector<1x128xf32> to vector<1x1x128xf32>
    tpu.vector_store %arg10[%c0_65, %c319, %c0_66], %84 {strides = array<i32>} : memref<1x376x128xf32, #tpu.memory_space<vmem>>, vector<1x1x128xf32>,
    %c88 = arith.constant 88 : index
    %c0_67 = arith.constant 0 : index
    %85 = vector.load %arg7[%c88, %c0_67] : memref<176x29xf32, #tpu.memory_space<vmem>>, vector<56x16xf32>
    %c0_68 = arith.constant 0 : index
    %c0_69 = arith.constant 0 : index
    %c0_70 = arith.constant 0 : index
    %86 = vector.load %arg5[%c0_68, %c0_69, %c0_70] : memref<1x16x64xf32, #tpu.memory_space<vmem>>, vector<1x16x64xf32>
    %87 = vector.shape_cast %86 : vector<1x16x64xf32> to vector<16x64xf32>
    %cst_71 = arith.constant dense<0.000000e+00> : vector<56x64xf32>
    %88 = tpu.matmul %85, %87, %cst_71 {dimension_numbers = #tpu.dot_dimension_numbers<[1], [0], [0], [1], [0, 0, 1, 1], [], []>} : vector<56x16xf32>, vector<16x64xf32>, vector<56x64xf32> -> vector<56x64xf32>
    %cst_72 = arith.constant 0.000000e+00 : f32
    %89 = vector.broadcast %cst_72 : f32 to vector<56x64xf32>
    %90 = arith.maximumf %88, %89 : vector<56x64xf32>
    %c0_73 = arith.constant 0 : index
    %c0_74 = arith.constant 0 : index
    %91 = vector.load %arg12[%c0_73, %c0_74] : memref<56x64xf32, #tpu.memory_space<vmem>>, vector<56x64xf32>
    tpu.vector_store %arg12[%c0_73, %c0_74], %90 {strides = array<i32>} : memref<56x64xf32, #tpu.memory_space<vmem>>, vector<56x64xf32>,
    %cst_75 = arith.constant 0.000000e+00 : f32
    %92 = vector.broadcast %cst_75 : f32 to vector<35x128xf32>
    %c0_76 = arith.constant 0 : index
    %c0_77 = arith.constant 0 : index
    %93 = vector.load %arg12[%c0_76, %c0_77] : memref<56x64xf32, #tpu.memory_space<vmem>>, vector<35x64xf32>
    %c1152 = arith.constant 1152 : index
    %c0_78 = arith.constant 0 : index
    %94 = vector.load %arg8[%c1152, %c0_78] : memref<2016x128xf32, #tpu.memory_space<vmem>>, vector<64x128xf32>
    %cst_79 = arith.constant dense<0.000000e+00> : vector<35x128xf32>
    %95 = tpu.matmul %93, %94, %cst_79 {dimension_numbers = #tpu.dot_dimension_numbers<[1], [0], [0], [1], [0, 0, 1, 1], [], []>} : vector<35x64xf32>, vector<64x128xf32>, vector<35x128xf32> -> vector<35x128xf32>
    %96 = arith.addf %92, %95 : vector<35x128xf32>
    %c1_80 = arith.constant 1 : index
    %c0_81 = arith.constant 0 : index
    %97 = vector.load %arg12[%c1_80, %c0_81] : memref<56x64xf32, #tpu.memory_space<vmem>>, vector<35x64xf32>
    %c1216 = arith.constant 1216 : index
    %c0_82 = arith.constant 0 : index
    %98 = vector.load %arg8[%c1216, %c0_82] : memref<2016x128xf32, #tpu.memory_space<vmem>>, vector<64x128xf32>
    %cst_83 = arith.constant dense<0.000000e+00> : vector<35x128xf32>
    %99 = tpu.matmul %97, %98, %cst_83 {dimension_numbers = #tpu.dot_dimension_numbers<[1], [0], [0], [1], [0, 0, 1, 1], [], []>} : vector<35x64xf32>, vector<64x128xf32>, vector<35x128xf32> -> vector<35x128xf32>
    %100 = arith.addf %96, %99 : vector<35x128xf32>
    %c2_84 = arith.constant 2 : index
    %c0_85 = arith.constant 0 : index
    %101 = vector.load %arg12[%c2_84, %c0_85] : memref<56x64xf32, #tpu.memory_space<vmem>>, vector<35x64xf32>
    %c1280 = arith.constant 1280 : index
    %c0_86 = arith.constant 0 : index
    %102 = vector.load %arg8[%c1280, %c0_86] : memref<2016x128xf32, #tpu.memory_space<vmem>>, vector<64x128xf32>
    %cst_87 = arith.constant dense<0.000000e+00> : vector<35x128xf32>
    %103 = tpu.matmul %101, %102, %cst_87 {dimension_numbers = #tpu.dot_dimension_numbers<[1], [0], [0], [1], [0, 0, 1, 1], [], []>} : vector<35x64xf32>, vector<64x128xf32>, vector<35x128xf32> -> vector<35x128xf32>
    %104 = arith.addf %100, %103 : vector<35x128xf32>
    %c7 = arith.constant 7 : index
    %c0_88 = arith.constant 0 : index
    %105 = vector.load %arg12[%c7, %c0_88] : memref<56x64xf32, #tpu.memory_space<vmem>>, vector<35x64xf32>
    %c1344 = arith.constant 1344 : index
    %c0_89 = arith.constant 0 : index
    %106 = vector.load %arg8[%c1344, %c0_89] : memref<2016x128xf32, #tpu.memory_space<vmem>>, vector<64x128xf32>
    %cst_90 = arith.constant dense<0.000000e+00> : vector<35x128xf32>
    %107 = tpu.matmul %105, %106, %cst_90 {dimension_numbers = #tpu.dot_dimension_numbers<[1], [0], [0], [1], [0, 0, 1, 1], [], []>} : vector<35x64xf32>, vector<64x128xf32>, vector<35x128xf32> -> vector<35x128xf32>
    %108 = arith.addf %104, %107 : vector<35x128xf32>
    %c8 = arith.constant 8 : index
    %c0_91 = arith.constant 0 : index
    %109 = vector.load %arg12[%c8, %c0_91] : memref<56x64xf32, #tpu.memory_space<vmem>>, vector<35x64xf32>
    %c1408 = arith.constant 1408 : index
    %c0_92 = arith.constant 0 : index
    %110 = vector.load %arg8[%c1408, %c0_92] : memref<2016x128xf32, #tpu.memory_space<vmem>>, vector<64x128xf32>
    %cst_93 = arith.constant dense<0.000000e+00> : vector<35x128xf32>
    %111 = tpu.matmul %109, %110, %cst_93 {dimension_numbers = #tpu.dot_dimension_numbers<[1], [0], [0], [1], [0, 0, 1, 1], [], []>} : vector<35x64xf32>, vector<64x128xf32>, vector<35x128xf32> -> vector<35x128xf32>
    %112 = arith.addf %108, %111 : vector<35x128xf32>
    %c9_94 = arith.constant 9 : index
    %c0_95 = arith.constant 0 : index
    %113 = vector.load %arg12[%c9_94, %c0_95] : memref<56x64xf32, #tpu.memory_space<vmem>>, vector<35x64xf32>
    %c1472 = arith.constant 1472 : index
    %c0_96 = arith.constant 0 : index
    %114 = vector.load %arg8[%c1472, %c0_96] : memref<2016x128xf32, #tpu.memory_space<vmem>>, vector<64x128xf32>
    %cst_97 = arith.constant dense<0.000000e+00> : vector<35x128xf32>
    %115 = tpu.matmul %113, %114, %cst_97 {dimension_numbers = #tpu.dot_dimension_numbers<[1], [0], [0], [1], [0, 0, 1, 1], [], []>} : vector<35x64xf32>, vector<64x128xf32>, vector<35x128xf32> -> vector<35x128xf32>
    %116 = arith.addf %112, %115 : vector<35x128xf32>
    %c14 = arith.constant 14 : index
    %c0_98 = arith.constant 0 : index
    %117 = vector.load %arg12[%c14, %c0_98] : memref<56x64xf32, #tpu.memory_space<vmem>>, vector<35x64xf32>
    %c1536 = arith.constant 1536 : index
    %c0_99 = arith.constant 0 : index
    %118 = vector.load %arg8[%c1536, %c0_99] : memref<2016x128xf32, #tpu.memory_space<vmem>>, vector<64x128xf32>
    %cst_100 = arith.constant dense<0.000000e+00> : vector<35x128xf32>
    %119 = tpu.matmul %117, %118, %cst_100 {dimension_numbers = #tpu.dot_dimension_numbers<[1], [0], [0], [1], [0, 0, 1, 1], [], []>} : vector<35x64xf32>, vector<64x128xf32>, vector<35x128xf32> -> vector<35x128xf32>
    %120 = arith.addf %116, %119 : vector<35x128xf32>
    %c15 = arith.constant 15 : index
    %c0_101 = arith.constant 0 : index
    %121 = vector.load %arg12[%c15, %c0_101] : memref<56x64xf32, #tpu.memory_space<vmem>>, vector<35x64xf32>
    %c1600 = arith.constant 1600 : index
    %c0_102 = arith.constant 0 : index
    %122 = vector.load %arg8[%c1600, %c0_102] : memref<2016x128xf32, #tpu.memory_space<vmem>>, vector<64x128xf32>
    %cst_103 = arith.constant dense<0.000000e+00> : vector<35x128xf32>
    %123 = tpu.matmul %121, %122, %cst_103 {dimension_numbers = #tpu.dot_dimension_numbers<[1], [0], [0], [1], [0, 0, 1, 1], [], []>} : vector<35x64xf32>, vector<64x128xf32>, vector<35x128xf32> -> vector<35x128xf32>
    %124 = arith.addf %120, %123 : vector<35x128xf32>
    %c16_104 = arith.constant 16 : index
    %c0_105 = arith.constant 0 : index
    %125 = vector.load %arg12[%c16_104, %c0_105] : memref<56x64xf32, #tpu.memory_space<vmem>>, vector<35x64xf32>
    %c1664 = arith.constant 1664 : index
    %c0_106 = arith.constant 0 : index
    %126 = vector.load %arg8[%c1664, %c0_106] : memref<2016x128xf32, #tpu.memory_space<vmem>>, vector<64x128xf32>
    %cst_107 = arith.constant dense<0.000000e+00> : vector<35x128xf32>
    %127 = tpu.matmul %125, %126, %cst_107 {dimension_numbers = #tpu.dot_dimension_numbers<[1], [0], [0], [1], [0, 0, 1, 1], [], []>} : vector<35x64xf32>, vector<64x128xf32>, vector<35x128xf32> -> vector<35x128xf32>
    %128 = arith.addf %124, %127 : vector<35x128xf32>
    %c1_108 = arith.constant 1 : index
    %c0_109 = arith.constant 0 : index
    %129 = vector.load %arg9[%c1_108, %c0_109] : memref<3x128xf32, #tpu.memory_space<vmem>>, vector<1x128xf32>
    %130 = vector.broadcast %129 : vector<1x128xf32> to vector<35x128xf32>
    %131 = arith.addf %128, %130 : vector<35x128xf32>
    %cst_110 = arith.constant 0.000000e+00 : f32
    %132 = vector.broadcast %cst_110 : f32 to vector<35x128xf32>
    %133 = arith.maximumf %131, %132 : vector<35x128xf32>
    %c0_111 = arith.constant 0 : index
    %c320 = arith.constant 320 : index
    %c0_112 = arith.constant 0 : index
    %134 = vector.load %arg10[%c0_111, %c320, %c0_112] : memref<1x376x128xf32, #tpu.memory_space<vmem>>, vector<1x35x128xf32>
    %135 = vector.shape_cast %134 : vector<1x35x128xf32> to vector<35x128xf32>
    %136 = vector.shape_cast %133 : vector<35x128xf32> to vector<1x35x128xf32>
    tpu.vector_store %arg10[%c0_111, %c320, %c0_112], %136 {strides = array<i32>} : memref<1x376x128xf32, #tpu.memory_space<vmem>>, vector<1x35x128xf32>,
    %cst_113 = arith.constant 0.000000e+00 : f32
    %137 = vector.broadcast %cst_113 : f32 to vector<5x128xf32>
    %c0_114 = arith.constant 0 : index
    %c355 = arith.constant 355 : index
    %c0_115 = arith.constant 0 : index
    %138 = vector.load %arg10[%c0_114, %c355, %c0_115] : memref<1x376x128xf32, #tpu.memory_space<vmem>>, vector<1x5x128xf32>
    %139 = vector.shape_cast %138 : vector<1x5x128xf32> to vector<5x128xf32>
    %140 = vector.shape_cast %137 : vector<5x128xf32> to vector<1x5x128xf32>
    tpu.vector_store %arg10[%c0_114, %c355, %c0_115], %140 {strides = array<i32>} : memref<1x376x128xf32, #tpu.memory_space<vmem>>, vector<1x5x128xf32>,
    %c144 = arith.constant 144 : index
    %c0_116 = arith.constant 0 : index
    %141 = vector.load %arg7[%c144, %c0_116] : memref<176x29xf32, #tpu.memory_space<vmem>>, vector<32x7xf32>
    %c0_117 = arith.constant 0 : index
    %c0_118 = arith.constant 0 : index
    %c0_119 = arith.constant 0 : index
    %142 = vector.load %arg6[%c0_117, %c0_118, %c0_119] : memref<1x7x32xf32, #tpu.memory_space<vmem>>, vector<1x7x32xf32>
    %143 = vector.shape_cast %142 : vector<1x7x32xf32> to vector<7x32xf32>
    %cst_120 = arith.constant dense<0.000000e+00> : vector<32x32xf32>
    %144 = tpu.matmul %141, %143, %cst_120 {dimension_numbers = #tpu.dot_dimension_numbers<[1], [0], [0], [1], [0, 0, 1, 1], [], []>} : vector<32x7xf32>, vector<7x32xf32>, vector<32x32xf32> -> vector<32x32xf32>
    %cst_121 = arith.constant 0.000000e+00 : f32
    %145 = vector.broadcast %cst_121 : f32 to vector<32x32xf32>
    %146 = arith.maximumf %144, %145 : vector<32x32xf32>
    %c0_122 = arith.constant 0 : index
    %c0_123 = arith.constant 0 : index
    %147 = vector.load %arg13[%c0_122, %c0_123] : memref<32x32xf32, #tpu.memory_space<vmem>>, vector<32x32xf32>
    tpu.vector_store %arg13[%c0_122, %c0_123], %146 {strides = array<i32>} : memref<32x32xf32, #tpu.memory_space<vmem>>, vector<32x32xf32>,
    %cst_124 = arith.constant 0.000000e+00 : f32
    %148 = vector.broadcast %cst_124 : f32 to vector<15x128xf32>
    %c0_125 = arith.constant 0 : index
    %c0_126 = arith.constant 0 : index
    %149 = vector.load %arg13[%c0_125, %c0_126] : memref<32x32xf32, #tpu.memory_space<vmem>>, vector<15x32xf32>
    %c1728 = arith.constant 1728 : index
    %c0_127 = arith.constant 0 : index
    %150 = vector.load %arg8[%c1728, %c0_127] : memref<2016x128xf32, #tpu.memory_space<vmem>>, vector<32x128xf32>
    %cst_128 = arith.constant dense<0.000000e+00> : vector<15x128xf32>
    %151 = tpu.matmul %149, %150, %cst_128 {dimension_numbers = #tpu.dot_dimension_numbers<[1], [0], [0], [1], [0, 0, 1, 1], [], []>} : vector<15x32xf32>, vector<32x128xf32>, vector<15x128xf32> -> vector<15x128xf32>
    %152 = arith.addf %148, %151 : vector<15x128xf32>
    %c1_129 = arith.constant 1 : index
    %c0_130 = arith.constant 0 : index
    %153 = vector.load %arg13[%c1_129, %c0_130] : memref<32x32xf32, #tpu.memory_space<vmem>>, vector<15x32xf32>
    %c1760 = arith.constant 1760 : index
    %c0_131 = arith.constant 0 : index
    %154 = vector.load %arg8[%c1760, %c0_131] : memref<2016x128xf32, #tpu.memory_space<vmem>>, vector<32x128xf32>
    %cst_132 = arith.constant dense<0.000000e+00> : vector<15x128xf32>
    %155 = tpu.matmul %153, %154, %cst_132 {dimension_numbers = #tpu.dot_dimension_numbers<[1], [0], [0], [1], [0, 0, 1, 1], [], []>} : vector<15x32xf32>, vector<32x128xf32>, vector<15x128xf32> -> vector<15x128xf32>
    %156 = arith.addf %152, %155 : vector<15x128xf32>
    %c2_133 = arith.constant 2 : index
    %c0_134 = arith.constant 0 : index
    %157 = vector.load %arg13[%c2_133, %c0_134] : memref<32x32xf32, #tpu.memory_space<vmem>>, vector<15x32xf32>
    %c1792 = arith.constant 1792 : index
    %c0_135 = arith.constant 0 : index
    %158 = vector.load %arg8[%c1792, %c0_135] : memref<2016x128xf32, #tpu.memory_space<vmem>>, vector<32x128xf32>
    %cst_136 = arith.constant dense<0.000000e+00> : vector<15x128xf32>
    %159 = tpu.matmul %157, %158, %cst_136 {dimension_numbers = #tpu.dot_dimension_numbers<[1], [0], [0], [1], [0, 0, 1, 1], [], []>} : vector<15x32xf32>, vector<32x128xf32>, vector<15x128xf32> -> vector<15x128xf32>
    %160 = arith.addf %156, %159 : vector<15x128xf32>
    %c5 = arith.constant 5 : index
    %c0_137 = arith.constant 0 : index
    %161 = vector.load %arg13[%c5, %c0_137] : memref<32x32xf32, #tpu.memory_space<vmem>>, vector<15x32xf32>
    %c1824 = arith.constant 1824 : index
    %c0_138 = arith.constant 0 : index
    %162 = vector.load %arg8[%c1824, %c0_138] : memref<2016x128xf32, #tpu.memory_space<vmem>>, vector<32x128xf32>
    %cst_139 = arith.constant dense<0.000000e+00> : vector<15x128xf32>
    %163 = tpu.matmul %161, %162, %cst_139 {dimension_numbers = #tpu.dot_dimension_numbers<[1], [0], [0], [1], [0, 0, 1, 1], [], []>} : vector<15x32xf32>, vector<32x128xf32>, vector<15x128xf32> -> vector<15x128xf32>
    %164 = arith.addf %160, %163 : vector<15x128xf32>
    %c6 = arith.constant 6 : index
    %c0_140 = arith.constant 0 : index
    %165 = vector.load %arg13[%c6, %c0_140] : memref<32x32xf32, #tpu.memory_space<vmem>>, vector<15x32xf32>
    %c1856 = arith.constant 1856 : index
    %c0_141 = arith.constant 0 : index
    %166 = vector.load %arg8[%c1856, %c0_141] : memref<2016x128xf32, #tpu.memory_space<vmem>>, vector<32x128xf32>
    %cst_142 = arith.constant dense<0.000000e+00> : vector<15x128xf32>
    %167 = tpu.matmul %165, %166, %cst_142 {dimension_numbers = #tpu.dot_dimension_numbers<[1], [0], [0], [1], [0, 0, 1, 1], [], []>} : vector<15x32xf32>, vector<32x128xf32>, vector<15x128xf32> -> vector<15x128xf32>
    %168 = arith.addf %164, %167 : vector<15x128xf32>
    %c7_143 = arith.constant 7 : index
    %c0_144 = arith.constant 0 : index
    %169 = vector.load %arg13[%c7_143, %c0_144] : memref<32x32xf32, #tpu.memory_space<vmem>>, vector<15x32xf32>
    %c1888 = arith.constant 1888 : index
    %c0_145 = arith.constant 0 : index
    %170 = vector.load %arg8[%c1888, %c0_145] : memref<2016x128xf32, #tpu.memory_space<vmem>>, vector<32x128xf32>
    %cst_146 = arith.constant dense<0.000000e+00> : vector<15x128xf32>
    %171 = tpu.matmul %169, %170, %cst_146 {dimension_numbers = #tpu.dot_dimension_numbers<[1], [0], [0], [1], [0, 0, 1, 1], [], []>} : vector<15x32xf32>, vector<32x128xf32>, vector<15x128xf32> -> vector<15x128xf32>
    %172 = arith.addf %168, %171 : vector<15x128xf32>
    %c10_147 = arith.constant 10 : index
    %c0_148 = arith.constant 0 : index
    %173 = vector.load %arg13[%c10_147, %c0_148] : memref<32x32xf32, #tpu.memory_space<vmem>>, vector<15x32xf32>
    %c1920 = arith.constant 1920 : index
    %c0_149 = arith.constant 0 : index
    %174 = vector.load %arg8[%c1920, %c0_149] : memref<2016x128xf32, #tpu.memory_space<vmem>>, vector<32x128xf32>
    %cst_150 = arith.constant dense<0.000000e+00> : vector<15x128xf32>
    %175 = tpu.matmul %173, %174, %cst_150 {dimension_numbers = #tpu.dot_dimension_numbers<[1], [0], [0], [1], [0, 0, 1, 1], [], []>} : vector<15x32xf32>, vector<32x128xf32>, vector<15x128xf32> -> vector<15x128xf32>
    %176 = arith.addf %172, %175 : vector<15x128xf32>
    %c11_151 = arith.constant 11 : index
    %c0_152 = arith.constant 0 : index
    %177 = vector.load %arg13[%c11_151, %c0_152] : memref<32x32xf32, #tpu.memory_space<vmem>>, vector<15x32xf32>
    %c1952 = arith.constant 1952 : index
    %c0_153 = arith.constant 0 : index
    %178 = vector.load %arg8[%c1952, %c0_153] : memref<2016x128xf32, #tpu.memory_space<vmem>>, vector<32x128xf32>
    %cst_154 = arith.constant dense<0.000000e+00> : vector<15x128xf32>
    %179 = tpu.matmul %177, %178, %cst_154 {dimension_numbers = #tpu.dot_dimension_numbers<[1], [0], [0], [1], [0, 0, 1, 1], [], []>} : vector<15x32xf32>, vector<32x128xf32>, vector<15x128xf32> -> vector<15x128xf32>
    %180 = arith.addf %176, %179 : vector<15x128xf32>
    %c12 = arith.constant 12 : index
    %c0_155 = arith.constant 0 : index
    %181 = vector.load %arg13[%c12, %c0_155] : memref<32x32xf32, #tpu.memory_space<vmem>>, vector<15x32xf32>
    %c1984 = arith.constant 1984 : index
    %c0_156 = arith.constant 0 : index
    %182 = vector.load %arg8[%c1984, %c0_156] : memref<2016x128xf32, #tpu.memory_space<vmem>>, vector<32x128xf32>
    %cst_157 = arith.constant dense<0.000000e+00> : vector<15x128xf32>
    %183 = tpu.matmul %181, %182, %cst_157 {dimension_numbers = #tpu.dot_dimension_numbers<[1], [0], [0], [1], [0, 0, 1, 1], [], []>} : vector<15x32xf32>, vector<32x128xf32>, vector<15x128xf32> -> vector<15x128xf32>
    %184 = arith.addf %180, %183 : vector<15x128xf32>
    %c2_158 = arith.constant 2 : index
    %c0_159 = arith.constant 0 : index
    %185 = vector.load %arg9[%c2_158, %c0_159] : memref<3x128xf32, #tpu.memory_space<vmem>>, vector<1x128xf32>
    %186 = vector.broadcast %185 : vector<1x128xf32> to vector<15x128xf32>
    %187 = arith.addf %184, %186 : vector<15x128xf32>
    %cst_160 = arith.constant 0.000000e+00 : f32
    %188 = vector.broadcast %cst_160 : f32 to vector<15x128xf32>
    %189 = arith.maximumf %187, %188 : vector<15x128xf32>
    %c0_161 = arith.constant 0 : index
    %c360 = arith.constant 360 : index
    %c0_162 = arith.constant 0 : index
    %190 = vector.load %arg10[%c0_161, %c360, %c0_162] : memref<1x376x128xf32, #tpu.memory_space<vmem>>, vector<1x15x128xf32>
    %191 = vector.shape_cast %190 : vector<1x15x128xf32> to vector<15x128xf32>
    %192 = vector.shape_cast %189 : vector<15x128xf32> to vector<1x15x128xf32>
    tpu.vector_store %arg10[%c0_161, %c360, %c0_162], %192 {strides = array<i32>} : memref<1x376x128xf32, #tpu.memory_space<vmem>>, vector<1x15x128xf32>,
    %cst_163 = arith.constant 0.000000e+00 : f32
    %193 = vector.broadcast %cst_163 : f32 to vector<1x128xf32>
    %c0_164 = arith.constant 0 : index
    %c375 = arith.constant 375 : index
    %c0_165 = arith.constant 0 : index
    %194 = vector.load %arg10[%c0_164, %c375, %c0_165] : memref<1x376x128xf32, #tpu.memory_space<vmem>>, vector<1x1x128xf32>
    %195 = vector.shape_cast %194 : vector<1x1x128xf32> to vector<1x128xf32>
    %196 = vector.shape_cast %193 : vector<1x128xf32> to vector<1x1x128xf32>
    tpu.vector_store %arg10[%c0_164, %c375, %c0_165], %196 {strides = array<i32>} : memref<1x376x128xf32, #tpu.memory_space<vmem>>, vector<1x1x128xf32>,
    return
  }
  func.func @transform_0(%arg0: i32) -> (i32, i32, i32) {
    %c0_i32 = arith.constant 0 : i32
    %c0_i32_0 = arith.constant 0 : i32
    %c0_i32_1 = arith.constant 0 : i32
    return %arg0, %c0_i32, %c0_i32_0 : i32, i32, i32
  }
  func.func @transform_1(%arg0: i32) -> (i32, i32) {
    %c0_i32 = arith.constant 0 : i32
    %c0_i32_0 = arith.constant 0 : i32
    %c0_i32_1 = arith.constant 0 : i32
    return %c0_i32, %c0_i32_0 : i32, i32
  }
  func.func @transform_2(%arg0: i32) -> (i32, i32) {
    %c0_i32 = arith.constant 0 : i32
    %c0_i32_0 = arith.constant 0 : i32
    %c0_i32_1 = arith.constant 0 : i32
    return %c0_i32, %c0_i32_0 : i32, i32
  }
  func.func @transform_3(%arg0: i32) -> (i32, i32, i32) {
    %c0_i32 = arith.constant 0 : i32
    %c0_i32_0 = arith.constant 0 : i32
    %c0_i32_1 = arith.constant 0 : i32
    return %arg0, %c0_i32, %c0_i32_0 : i32, i32, i32
  }
  func.func @transform_4(%arg0: i32) -> (i32, i32, i32) {
    %c0_i32 = arith.constant 0 : i32
    %c0_i32_0 = arith.constant 0 : i32
    %c0_i32_1 = arith.constant 0 : i32
    return %arg0, %c0_i32, %c0_i32_0 : i32, i32, i32
  }
  func.func @transform_5(%arg0: i32) -> (i32, i32, i32) {
    %c0_i32 = arith.constant 0 : i32
    %c0_i32_0 = arith.constant 0 : i32
    %c0_i32_1 = arith.constant 0 : i32
    return %arg0, %c0_i32, %c0_i32_0 : i32, i32, i32
  }
  func.func @transform_6(%arg0: i32) -> (i32, i32) {
    %c0_i32 = arith.constant 0 : i32
    %c0_i32_0 = arith.constant 0 : i32
    %c0_i32_1 = arith.constant 0 : i32
    return %c0_i32, %c0_i32_0 : i32, i32
  }
  func.func @transform_7(%arg0: i32) -> (i32, i32) {
    %c0_i32 = arith.constant 0 : i32
    %c0_i32_0 = arith.constant 0 : i32
    %c0_i32_1 = arith.constant 0 : i32
    return %c0_i32, %c0_i32_0 : i32, i32
  }
  func.func @transform_8(%arg0: i32) -> (i32, i32) {
    %c0_i32 = arith.constant 0 : i32
    %c0_i32_0 = arith.constant 0 : i32
    %c0_i32_1 = arith.constant 0 : i32
    return %c0_i32, %c0_i32_0 : i32, i32
  }
  func.func @transform_9(%arg0: i32) -> (i32, i32, i32) {
    %c0_i32 = arith.constant 0 : i32
    %c0_i32_0 = arith.constant 0 : i32
    %c0_i32_1 = arith.constant 0 : i32
    return %arg0, %c0_i32, %c0_i32_0 : i32, i32, i32
  }
}

</mosaic_0001>

<bundles_post_ra>
// kernel: _lambda_.1
= control target key start
LH: loop header
LB: loop body
LE: loop exit
PB: predicated region body
PF: predicated region fallthrough
CT: control target
= control target key end

     0   :  { %14 = vsyncpa [#allocation6], 0  ;;  %s8102_s0 = inlined_call_operand.vmem [shape: f32[2,256,72], index: 0, kind: input, shape index: {}]   ;;  %s8103_s1 = inlined_call_operand.vmem [shape: f32[72,128], index: 1, kind: input, shape index: {}]   ;;  %s8104_s2 = inlined_call_operand.vmem [shape: f32[26,128], index: 2, kind: input, shape index: {}]   ;;  %s8105_s3 = inlined_call_operand.vmem [shape: f32[2,29,128], index: 3, kind: input, shape index: {}]   ;;  %s8106_s4 = inlined_call_operand.vmem [shape: f32[2,16,64], index: 4, kind: input, shape index: {}]   ;;  %s8107_s5 = inlined_call_operand.vmem [shape: f32[2,7,32], index: 5, kind: input, shape index: {}]   ;;  %s8108_s6 = inlined_call_operand.hbm [shape: f32[176,29], index: 6, kind: input, shape index: {}]   ;;  %s8109_s7 = inlined_call_operand.vmem [shape: f32[2016,128], index: 7, kind: input, shape index: {}]   ;;  %s8110_s8 = inlined_call_operand.hbm [shape: f32[3,128], index: 8, kind: input, shape index: {}]   ;;  %s8111_s9 = inlined_call_operand.vmem [shape: f32[2,376,128], index: 9, kind: output, shape index: {}]  }
   0x1   :  { %15 = vsyncpa [#allocation8], 0  ;;  %s6467_s30 = smov 0  }
   0x2 LB: > { %s6473_s10 = sadd.s32 4294967295, %s6409_s30   ;;  %p4771_p0 = scmp.ge.s32.totalorder %s6409_s30, 1  ;;  %s6409_s30 = sphi %s6467_s30, %s21_s30  }
   0x3   : > { %p261_p1 = scmp.lt.s32.totalorder %s6409_s30, 3  ;;  %s6411_s11 = smov [#allocation5]  }
   0x4   : > { %s279_s12 = sshll.u32 %s6411_s11, 4  ;;  %p6325_p3 = scmp.eq.s32.totalorder %s6473_s10, 0  ;;  %s280_s12 = int_to_ptr.vmem [resolvable:$true] %s279_s12 }
   0x5   : > { %p6477_p2 = pnand %p4771_p0, %p261_p1  ;;  %s6412_s14 = smov [#allocation7]  }
   0x6   : > { %s296_s15 = sshll.u32 %s6412_s14, 4  ;;  %s6354_s17 = scalar_lea.vmem %s280_s12, 2816  ;;  %s297_s15 = int_to_ptr.vmem [resolvable:$true] %s296_s15 }
   0x7   : > { %p6318_p4 = pneg %p6477_p2  ;;  %p6355_p7 = scmp.ne.s32.totalorder %s280_s12, %s6354_s17 }
   0x8   : > { %p6362_p10 = scmp.lt.s32.totalorder %s280_s12, %s280_s12  ;;  %p6363_p11 = scmp.lt.s32.totalorder %s6354_s17, %s6354_s17 }
   0x9   : > { %p6486_p5 = pnand %p6325_p3, %p6318_p4 }
   0xa   : > { %p6364_p12 = por %p6363_p11, %p6362_p10 }
   0xb   : > { %p6345_p6 = pneg %p6486_p5 }
   0xd   : > { %p6357_p8 = pnand %p6355_p7, %p6345_p6 }
   0xf   : > { %p6358_p9 = pneg %p6357_p8 }
  0x11   : > { %p6365_p13 = pnand %p6364_p12, %p6358_p9 }
  0x13   : > { %6368 = shalt.err (!%p6365_p13)
}
  0x14   : > { %s6413_s18 = smov 128   ;;  %s6414_s19 = smov 8  }
  0x15   : > { %6321 = dma.hbm_to_vmem [thread:$0]  (!%p6486_p5), %s8108_s6, 2816, %s280_s12, [#allocation6], %s6413_s18, %s6413_s18, %s6414_s19  }
  0x16   : > { %s6380_s22 = scalar_lea.vmem %s297_s15, 64  ;;  %p6388_p7 = scmp.lt.s32.totalorder %s297_s15, %s297_s15 }
  0x17   : > { %p6381_p0 = scmp.ne.s32.totalorder %s297_s15, %s6380_s22  ;;  %p6389_p8 = scmp.lt.s32.totalorder %s6380_s22, %s6380_s22 }
  0x19   : > { %p6383_p1 = pnand %p6381_p0, %p6345_p6  ;;  %p6390_p10 = por %p6389_p8, %p6388_p7 }
  0x1b   : > { %p6384_p4 = pneg %p6383_p1 }
  0x1d   : > { %p6391_p9 = pnand %p6390_p10, %p6384_p4 }
  0x1f   : > { %6394 = shalt.err (!%p6391_p9)
}
  0x20   : > { %6324 = dma.hbm_to_vmem [thread:$0]  (!%p6486_p5), %s8110_s8, 64, %s297_s15, [#allocation8]  }
  0x21   : > { %340 = sbr.rel (%p6477_p2) target bundleno = 1609 (0x649), region = 56 }
  0x26   : > { %6400 = dma.done.wait (%p6325_p3), [#allocation6], 2816  }
  0x27   : > { %6402 = vsyncadd (%p6325_p3), [#allocation6], 4294964480 }
  0x28   : > { %6404 = dma.done.wait (%p6325_p3), [#allocation8], 64  }
  0x29   : > { %6406 = vsyncadd (%p6325_p3), [#allocation8], 4294967232  ;;  %p394_p6 = scmp.lt.s32.totalorder %s6473_s10, 1  ;;  %v8112_v0 = vmov 0.0   ;;  %v458_v1 = vld [vmem:[%s8103_s1 + $0x40] sm:$0xff]  ;;  %v457_v2 = vld [vmem:[%s8103_s1 + $0x38] sm:$0xff] }
  0x2a   : > { %5383 = vmatprep.subr.mxu0 %v458_v1  ;;  %vm459_vm0 = vcmask 588800   ;;  %v456_v3 = vld [vmem:[%s8103_s1 + $0x30] sm:$0xff]  ;;  %v455_v5 = vld [vmem:[%s8103_s1 + $0x28] sm:$0xff]  ;;  %v454_v6 = vld [vmem:[%s8103_s1 + $0x20] sm:$0xff]  ;;  %vm850_vm1 = vcmask 130048   ;;  %vm940_vm2 = vcmask 64512  }
  0x2b   : > { %s8134_s10 = smov (!%p394_p6, %s6473_s10), 1  ;;  %5384 = vmatpush3.msra.mxu0 %v458_v1  ;;  %v453_v7 = vld [vmem:[%s8103_s1 + $0x18] sm:$0xff]  ;;  %v452_v8 = vld [vmem:[%s8103_s1 + $0x10] sm:$0xff]  ;;  %v451_v9 = vld [vmem:[%s8103_s1 + $0x8] sm:$0xff]  ;;  %vm1075_vm3 = vcmask 1044480   ;;  %vm6416_vm4 = vmmov 0  }
  0x2c   : > { %s6309_s25 = smul.u32 376, %s8134_s10  ;;  %s4916_s26 = sshll.u32 %s8134_s10, 8  ;;  %5385 = vmatprep.subr.mxu0 %v457_v2  ;;  %v450_v10 = vld [vmem:[%s8103_s1] sm:$0xff]  ;;  %v844_v42 = vld [vmem:[%s8104_s2 + $0x8] sm:$0xff]  ;;  %vm1041_vm5 = vcmask 236544   ;;  %vm2605_vm6 = vcmask 523264  }
  0x2d   : > { %s6544_s17 = scalar_lea.vmem %s8102_s0, %s4916_s26  ;;  %5386 = vmatpush3.msra.mxu0 %v457_v2  ;;  %5449 = vmatprep.subr.mxu1 %v844_v42  ;;  %v843_v43 = vld [vmem:[%s8104_s2] sm:$0xff]  ;;  %s4917_s26 = sshll.u32 %s8134_s10, 5  ;;  %vm3749_vm7 = vcmask 1046528   ;;  %vm3736_vm8 = vcmask 56320   ;;  %vm3842_vm9 = vcmask 261120  }
  0x2e   : > { %s6527_s29 = scalar_lea.vmem %s8111_s9, %s6309_s25  ;;  %v418_v4 = vld [vmem:[%s6544_s17] sm:$0xff]  ;;  %5387 = vmatprep.subr.mxu0 %v456_v3  ;;  %v419_v11 = vld [vmem:[%s6544_s17 + $0x8] sm:$0xff]  ;;  %v420_v12 = vld [vmem:[%s6544_s17 + $0x10] sm:$0xff]  ;;  %5450 = vmatpush3.msra.mxu1 %v844_v42  ;;  %s403_s11 = scalar_lea.vmem %s8105_s3, %s4917_s26 }
  0x2f   : > { %2467 = vst [vmem:[%s6527_s29 + $0x13f] sm:$0x1] %v8112_v0  ;;  %3730 = vst [vmem:[%s6527_s29 + $0x163] sm:$0x1f] %v8112_v0  ;;  %5401 = vmatprep.mubr.msk.f32.mxu0 %vm459_vm0, %v418_v4  ;;  %5388 = vmatpush3.msra.mxu0 %v456_v3  ;;  %v421_v13 = vld [vmem:[%s6544_s17 + $0x18] sm:$0xff]  ;;  %v422_v14 = vld [vmem:[%s6544_s17 + $0x20] sm:$0xff] }
  0x30   : > { %4655 = vst [vmem:[%s6527_s29 + $0x177] sm:$0x1] %v8112_v0  ;;  %5389 = vmatprep.subr.mxu0 %v455_v5  ;;  %v423_v15 = vld [vmem:[%s6544_s17 + $0x28] sm:$0xff]  ;;  %v424_v16 = vld [vmem:[%s6544_s17 + $0x30] sm:$0xff]  ;;  %v425_v17 = vld [vmem:[%s6544_s17 + $0x38] sm:$0xff]  ;;  %5451 = vmatprep.subr.mxu1 %v843_v43  ;;  %s4918_s24 = sshll.u32 %s8134_s10, 4 }
  0x31   : > { %5390 = vmatpush3.msra.mxu0 %v455_v5  ;;  %v426_v18 = vld [vmem:[%s6544_s17 + $0x40] sm:$0xff]  ;;  %v427_v19 = vld [vmem:[%s6544_s17 + $0x48] sm:$0xff]  ;;  %v428_v20 = vld [vmem:[%s6544_s17 + $0x50] sm:$0xff]  ;;  %5452 = vmatpush3.msra.mxu1 %v843_v43  ;;  %s408_s13 = scalar_lea.vmem %s8106_s4, %s4918_s24  ;;  %s4784_s24 = sshll.u32 %s8134_s10, 3 }
  0x32   : > { %5391 = vmatprep.subr.mxu0 %v454_v6  ;;  %v429_v21 = vld [vmem:[%s6544_s17 + $0x58] sm:$0xff]  ;;  %v430_v22 = vld [vmem:[%s6544_s17 + $0x60] sm:$0xff]  ;;  %v431_v23 = vld [vmem:[%s6544_s17 + $0x68] sm:$0xff]  ;;  %s412_s14 = scalar_lea.vmem %s8107_s5, %s4784_s24 }
  0x33   : > { %5392 = vmatpush3.msra.mxu0 %v454_v6  ;;  %v432_v24 = vld [vmem:[%s6544_s17 + $0x70] sm:$0xff]  ;;  %v433_v25 = vld [vmem:[%s6544_s17 + $0x78] sm:$0xff]  ;;  %v434_v26 = vld [vmem:[%s6544_s17 + $0x80] sm:$0xff] }
  0x34   : > { %5393 = vmatprep.subr.mxu0 %v453_v7  ;;  %v435_v27 = vld [vmem:[%s6544_s17 + $0x88] sm:$0xff]  ;;  %v436_v28 = vld [vmem:[%s6544_s17 + $0x90] sm:$0xff]  ;;  %v437_v29 = vld [vmem:[%s6544_s17 + $0x98] sm:$0xff] }
  0x35   : > { %5394 = vmatpush3.msra.mxu0 %v453_v7  ;;  %v438_v30 = vld [vmem:[%s6544_s17 + $0xa0] sm:$0xff]  ;;  %v439_v31 = vld [vmem:[%s6544_s17 + $0xa8] sm:$0xff]  ;;  %v440_v32 = vld [vmem:[%s6544_s17 + $0xb0] sm:$0xff] }
  0x36   : > { %5395 = vmatprep.subr.mxu0 %v452_v8  ;;  %v441_v33 = vld [vmem:[%s6544_s17 + $0xb8] sm:$0xff]  ;;  %v442_v34 = vld [vmem:[%s6544_s17 + $0xc0] sm:$0xff]  ;;  %v443_v35 = vld [vmem:[%s6544_s17 + $0xc8] sm:$0xff] }
  0x37   : > { %5396 = vmatpush3.msra.mxu0 %v452_v8  ;;  %v444_v36 = vld [vmem:[%s6544_s17 + $0xd0] sm:$0xff]  ;;  %v445_v37 = vld [vmem:[%s6544_s17 + $0xd8] sm:$0xff]  ;;  %v446_v38 = vld [vmem:[%s6544_s17 + $0xe0] sm:$0xff] }
  0x38   : > { %5397 = vmatprep.subr.mxu0 %v451_v9  ;;  %v447_v39 = vld [vmem:[%s6544_s17 + $0xe8] sm:$0xff]  ;;  %v448_v40 = vld [vmem:[%s6544_s17 + $0xf0] sm:$0xff]  ;;  %v449_v41 = vld [vmem:[%s6544_s17 + $0xf8] sm:$0xff] }
  0x39   : > { %5398 = vmatpush3.msra.mxu0 %v451_v9 }
  0x3a   : > { %5399 = vmatprep.subr.mxu0 %v450_v10 }
  0x3b   : > { %5400 = vmatpush3.msra.mxu0 %v450_v10 }
  0x3c   : > { %5402 = vmatmul.mubr.msk.f32.vlgmr.msra.gmra.mxu0 %vm459_vm0, %v419_v11 }
  0x3d   : > { %5404 = vmatprep.mubr.msk.f32.mxu0 %vm459_vm0, %v420_v12 }
  0x40   : > { %5405 = vmatmul.mubr.msk.f32.gmra.mxu0 %vm459_vm0, %v421_v13 }
  0x41   : > { %5407 = vmatprep.mubr.msk.f32.mxu0 %vm459_vm0, %v422_v14 }
  0x44   : > { %5408 = vmatmul.mubr.msk.f32.gmra.mxu0 %vm459_vm0, %v423_v15 }
  0x45   : > { %5410 = vmatprep.mubr.msk.f32.mxu0 %vm459_vm0, %v424_v16 }
  0x48   : > { %5411 = vmatmul.mubr.msk.f32.gmra.mxu0 %vm459_vm0, %v425_v17 }
  0x49   : > { %5413 = vmatprep.mubr.msk.f32.mxu0 %vm459_vm0, %v426_v18 }
  0x4c   : > { %5414 = vmatmul.mubr.msk.f32.gmra.mxu0 %vm459_vm0, %v427_v19 }
  0x4d   : > { %5416 = vmatprep.mubr.msk.f32.mxu0 %vm459_vm0, %v428_v20 }
  0x50   : > { %5417 = vmatmul.mubr.msk.f32.gmra.mxu0 %vm459_vm0, %v429_v21 }
  0x51   : > { %5419 = vmatprep.mubr.msk.f32.mxu0 %vm459_vm0, %v430_v22 }
  0x54   : > { %5420 = vmatmul.mubr.msk.f32.gmra.mxu0 %vm459_vm0, %v431_v23 }
  0x55   : > { %5422 = vmatprep.mubr.msk.f32.mxu0 %vm459_vm0, %v432_v24 }
  0x58   : > { %5423 = vmatmul.mubr.msk.f32.gmra.mxu0 %vm459_vm0, %v433_v25 }
  0x59   : > { %5425 = vmatprep.mubr.msk.f32.mxu0 %vm459_vm0, %v434_v26 }
  0x5c   : > { %5426 = vmatmul.mubr.msk.f32.gmra.mxu0 %vm459_vm0, %v435_v27 }
  0x5d   : > { %5428 = vmatprep.mubr.msk.f32.mxu0 %vm459_vm0, %v436_v28 }
  0x60   : > { %5429 = vmatmul.mubr.msk.f32.gmra.mxu0 %vm459_vm0, %v437_v29 }
  0x61   : > { %5431 = vmatprep.mubr.msk.f32.mxu0 %vm459_vm0, %v438_v30 }
  0x64   : > { %5432 = vmatmul.mubr.msk.f32.gmra.mxu0 %vm459_vm0, %v439_v31 }
  0x65   : > { %5434 = vmatprep.mubr.msk.f32.mxu0 %vm459_vm0, %v440_v32 }
  0x68   : > { %5435 = vmatmul.mubr.msk.f32.gmra.mxu0 %vm459_vm0, %v441_v33 }
  0x69   : > { %5437 = vmatprep.mubr.msk.f32.mxu0 %vm459_vm0, %v442_v34 }
  0x6c   : > { %5438 = vmatmul.mubr.msk.f32.gmra.mxu0 %vm459_vm0, %v443_v35 }
  0x6d   : > { %5440 = vmatprep.mubr.msk.f32.mxu0 %vm459_vm0, %v444_v36 }
  0x70   : > { %5441 = vmatmul.mubr.msk.f32.gmra.mxu0 %vm459_vm0, %v445_v37 }
  0x71   : > { %5443 = vmatprep.mubr.msk.f32.mxu0 %vm459_vm0, %v446_v38 }
  0x74   : > { %5444 = vmatmul.mubr.msk.f32.gmra.mxu0 %vm459_vm0, %v447_v39 }
  0x75   : > { %5446 = vmatprep.mubr.msk.f32.mxu0 %vm459_vm0, %v448_v40 }
  0x78   : > { %5447 = vmatmul.mubr.msk.f32.gmra.mxu0 %vm459_vm0, %v449_v41 }
  0xfc   : > { %v5403_v44 = vpop.f32.mrf.mxu0 }
  0xfd   : > { %v782_v45 = vmax.f32 %v5403_v44, 0.0 }
  0xfe   : > { %v622_v46 = vpop.f32.mrf.mxu0 }
  0xff   : > { %814 = vst [vmem:[%s6527_s29 + $0x8] sm:$0xff] %v782_v45  ;;  %v781_v47 = vmax.f32 %v622_v46, 0.0  ;;  %v934_v45 = vld [vmem:[%s8104_s2 + $0x11] sm:$0xff] }
 0x100   : > { %v5406_v48 = vpop.f32.mrf.mxu0  ;;  %5456 = vmatprep.subr.mxu1 %v934_v45  ;;  %v1244_v46 = vld [vmem:[%s8109_s7 + $0x78] sm:$0xff] }
 0x101   : > { %813 = vst [vmem:[%s6527_s29] sm:$0xff] %v781_v47  ;;  %v784_v49 = vmax.f32 %v5406_v48, 0.0  ;;  %v1243_v47 = vld [vmem:[%s8109_s7 + $0x70] sm:$0xff]  ;;  %5546 = vmatprep.subr.mxu0 %v1244_v46  ;;  %v1242_v48 = vld [vmem:[%s8109_s7 + $0x68] sm:$0xff] }
 0x102   : > { %v632_v50 = vpop.f32.mrf.mxu0  ;;  %5547 = vmatpush3.msra.mxu0 %v1244_v46 }
 0x103   : > { %816 = vst [vmem:[%s6527_s29 + $0x18] sm:$0xff] %v784_v49  ;;  %v783_v51 = vmax.f32 %v632_v50, 0.0  ;;  %5548 = vmatprep.subr.mxu0 %v1243_v47  ;;  %v1241_v49 = vld [vmem:[%s8109_s7 + $0x60] sm:$0xff]  ;;  %v1240_v50 = vld [vmem:[%s8109_s7 + $0x58] sm:$0xff] }
 0x104   : > { %v5409_v52 = vpop.f32.mrf.mxu0  ;;  %5549 = vmatpush3.msra.mxu0 %v1243_v47 }
 0x105   : > { %815 = vst [vmem:[%s6527_s29 + $0x10] sm:$0xff] %v783_v51  ;;  %v786_v53 = vmax.f32 %v5409_v52, 0.0  ;;  %5550 = vmatprep.subr.mxu0 %v1242_v48  ;;  %v1239_v51 = vld [vmem:[%s8109_s7 + $0x50] sm:$0xff]  ;;  %v1238_v52 = vld [vmem:[%s8109_s7 + $0x48] sm:$0xff] }
 0x106   : > { %v642_v54 = vpop.f32.mrf.mxu0  ;;  %5551 = vmatpush3.msra.mxu0 %v1242_v48 }
 0x107   : > { %818 = vst [vmem:[%s6527_s29 + $0x28] sm:$0xff] %v786_v53  ;;  %v785_v55 = vmax.f32 %v642_v54, 0.0  ;;  %5552 = vmatprep.subr.mxu0 %v1241_v49  ;;  %v1237_v53 = vld [vmem:[%s8109_s7 + $0x40] sm:$0xff]  ;;  %v1236_v54 = vld [vmem:[%s8109_s7 + $0x38] sm:$0xff] }
 0x108   : > { %v5412_v56 = vpop.f32.mrf.mxu0  ;;  %5553 = vmatpush3.msra.mxu0 %v1241_v49 }
 0x109   : > { %817 = vst [vmem:[%s6527_s29 + $0x20] sm:$0xff] %v785_v55  ;;  %v788_v57 = vmax.f32 %v5412_v56, 0.0  ;;  %5554 = vmatprep.subr.mxu0 %v1240_v50  ;;  %v1235_v55 = vld [vmem:[%s8109_s7 + $0x30] sm:$0xff]  ;;  %v1234_v56 = vld [vmem:[%s8109_s7 + $0x28] sm:$0xff] }
 0x10a   : > { %v652_v58 = vpop.f32.mrf.mxu0  ;;  %5555 = vmatpush3.msra.mxu0 %v1240_v50 }
 0x10b   : > { %820 = vst [vmem:[%s6527_s29 + $0x38] sm:$0xff] %v788_v57  ;;  %v787_v59 = vmax.f32 %v652_v58, 0.0  ;;  %5556 = vmatprep.subr.mxu0 %v1239_v51  ;;  %v4818_v57 = vld [vmem:[%s8104_s2 + $0x10] ss:$0 sm:$0xff] }
 0x10c   : > { %v5415_v60 = vpop.f32.mrf.mxu0  ;;  %5557 = vmatpush3.msra.mxu0 %v1239_v51 }
 0x10d   : > { %819 = vst [vmem:[%s6527_s29 + $0x30] sm:$0xff] %v787_v59  ;;  %v790_v61 = vmax.f32 %v5415_v60, 0.0  ;;  %5558 = vmatprep.subr.mxu0 %v1238_v52 }
 0x10e   : > { %v662_v62 = vpop.f32.mrf.mxu0  ;;  %5559 = vmatpush3.msra.mxu0 %v1238_v52  ;;  %v1638_v52 = vld [vmem:[%s8109_s7 + $0x1f0] sm:$0xff] }
 0x10f   : > { %822 = vst [vmem:[%s6527_s29 + $0x48] sm:$0xff] %v790_v61  ;;  %v789_v63 = vmax.f32 %v662_v62, 0.0  ;;  %5560 = vmatprep.subr.mxu0 %v1237_v53 }
 0x110   : > { %v5418_v1 = vpop.f32.mrf.mxu0  ;;  %5561 = vmatpush3.msra.mxu0 %v1237_v53 }
 0x111   : > { %821 = vst [vmem:[%s6527_s29 + $0x40] sm:$0xff] %v789_v63  ;;  %v792_v2 = vmax.f32 %v5418_v1, 0.0  ;;  %5562 = vmatprep.subr.mxu0 %v1236_v54  ;;  %v1040_v1 = vld [vmem:[%s403_s11 + $0x18] sm:$0x1f] }
 0x112   : > { %v672_v3 = vpop.f32.mrf.mxu0  ;;  %5563 = vmatpush3.msra.mxu0 %v1236_v54  ;;  %v1637_v54 = vld [vmem:[%s8109_s7 + $0x1e8] sm:$0xff] }
 0x113   : > { %824 = vst [vmem:[%s6527_s29 + $0x58] sm:$0xff] %v792_v2  ;;  %v791_v4 = vmax.f32 %v672_v3, 0.0  ;;  %5564 = vmatprep.subr.mxu0 %v1235_v55  ;;  %v1039_v2 = vld [vmem:[%s403_s11 + $0x10] sm:$0xff]  ;;  %v1038_v3 = vld [vmem:[%s403_s11 + $0x8] sm:$0xff] }
 0x114   : > { %v5421_v5 = vpop.f32.mrf.mxu0  ;;  %5565 = vmatpush3.msra.mxu0 %v1235_v55 }
 0x115   : > { %823 = vst [vmem:[%s6527_s29 + $0x50] sm:$0xff] %v791_v4  ;;  %v794_v6 = vmax.f32 %v5421_v5, 0.0  ;;  %5566 = vmatprep.subr.mxu0 %v1234_v56  ;;  %v1037_v4 = vld [vmem:[%s403_s11] sm:$0xff]  ;;  %v1026_v5 = vld [vmem:[#allocation5] sm:$0xff] }
 0x116   : > { %v682_v7 = vpop.f32.mrf.mxu0  ;;  %5567 = vmatpush3.msra.mxu0 %v1234_v56 }
 0x117   : > { %826 = vst [vmem:[%s6527_s29 + $0x68] sm:$0xff] %v794_v6  ;;  %v793_v8 = vmax.f32 %v682_v7, 0.0  ;;  %v1268_v6 = vld [vmem:[%s8109_s7 + $0xf8] sm:$0xff]  ;;  %v1267_v7 = vld [vmem:[%s8109_s7 + $0xf0] sm:$0xff] }
 0x118   : > { %v5424_v9 = vpop.f32.mrf.mxu0 }
 0x119   : > { %825 = vst [vmem:[%s6527_s29 + $0x60] sm:$0xff] %v793_v8  ;;  %v796_v10 = vmax.f32 %v5424_v9, 0.0  ;;  %v1027_v8 = vld [vmem:[#allocation5 + $0x8] sm:$0xff]  ;;  %v1266_v9 = vld [vmem:[%s8109_s7 + $0xe8] sm:$0xff] }
 0x11a   : > { %v692_v11 = vpop.f32.mrf.mxu0 }
 0x11b   : > { %828 = vst [vmem:[%s6527_s29 + $0x78] sm:$0xff] %v796_v10  ;;  %v795_v12 = vmax.f32 %v692_v11, 0.0  ;;  %v1265_v10 = vld [vmem:[%s8109_s7 + $0xe0] sm:$0xff] }
 0x11c   : > { %v5427_v13 = vpop.f32.mrf.mxu0  ;;  %v1028_v11 = vld [vmem:[#allocation5 + $0x10] sm:$0xff] }
 0x11d   : > { %827 = vst [vmem:[%s6527_s29 + $0x70] sm:$0xff] %v795_v12  ;;  %v798_v14 = vmax.f32 %v5427_v13, 0.0  ;;  %v1029_v12 = vld [vmem:[#allocation5 + $0x18] sm:$0xff]  ;;  %v1030_v13 = vld [vmem:[#allocation5 + $0x20] sm:$0xff] }
 0x11e   : > { %v702_v15 = vpop.f32.mrf.mxu0 }
 0x11f   : > { %830 = vst [vmem:[%s6527_s29 + $0x88] sm:$0xff] %v798_v14  ;;  %v797_v16 = vmax.f32 %v702_v15, 0.0  ;;  %v1031_v14 = vld [vmem:[#allocation5 + $0x28] sm:$0xff]  ;;  %v1032_v15 = vld [vmem:[#allocation5 + $0x30] sm:$0xff] }
 0x120   : > { %v5430_v17 = vpop.f32.mrf.mxu0 }
 0x121   : > { %829 = vst [vmem:[%s6527_s29 + $0x80] sm:$0xff] %v797_v16  ;;  %v800_v18 = vmax.f32 %v5430_v17, 0.0  ;;  %v1033_v16 = vld [vmem:[#allocation5 + $0x38] sm:$0xff]  ;;  %v1034_v17 = vld [vmem:[#allocation5 + $0x40] sm:$0xff] }
 0x122   : > { %v712_v19 = vpop.f32.mrf.mxu0 }
 0x123   : > { %832 = vst [vmem:[%s6527_s29 + $0x98] sm:$0xff] %v800_v18  ;;  %v799_v20 = vmax.f32 %v712_v19, 0.0  ;;  %v1035_v18 = vld [vmem:[#allocation5 + $0x48] sm:$0xff]  ;;  %v1036_v19 = vld [vmem:[#allocation5 + $0x50] sm:$0xff] }
 0x124   : > { %v5433_v21 = vpop.f32.mrf.mxu0 }
 0x125   : > { %831 = vst [vmem:[%s6527_s29 + $0x90] sm:$0xff] %v799_v20  ;;  %v802_v22 = vmax.f32 %v5433_v21, 0.0  ;;  %v1264_v20 = vld [vmem:[%s8109_s7 + $0xd8] sm:$0xff]  ;;  %v1263_v21 = vld [vmem:[%s8109_s7 + $0xd0] sm:$0xff] }
 0x126   : > { %v722_v23 = vpop.f32.mrf.mxu0 }
 0x127   : > { %834 = vst [vmem:[%s6527_s29 + $0xa8] sm:$0xff] %v802_v22  ;;  %v801_v24 = vmax.f32 %v722_v23, 0.0  ;;  %v1233_v22 = vld [vmem:[%s8109_s7 + $0x20] sm:$0xff]  ;;  %v1262_v23 = vld [vmem:[%s8109_s7 + $0xc8] sm:$0xff] }
 0x128   : > { %v5436_v25 = vpop.f32.mrf.mxu0  ;;  %5568 = vmatprep.subr.mxu0 %v1233_v22 }
 0x129   : > { %833 = vst [vmem:[%s6527_s29 + $0xa0] sm:$0xff] %v801_v24  ;;  %v804_v26 = vmax.f32 %v5436_v25, 0.0  ;;  %5569 = vmatpush3.msra.mxu0 %v1233_v22  ;;  %v1232_v24 = vld [vmem:[%s8109_s7 + $0x18] sm:$0xff]  ;;  %v1261_v25 = vld [vmem:[%s8109_s7 + $0xc0] sm:$0xff] }
 0x12a   : > { %v732_v27 = vpop.f32.mrf.mxu0  ;;  %5570 = vmatprep.subr.mxu0 %v1232_v24 }
 0x12b   : > { %836 = vst [vmem:[%s6527_s29 + $0xb8] sm:$0xff] %v804_v26  ;;  %v803_v28 = vmax.f32 %v732_v27, 0.0  ;;  %5571 = vmatpush3.msra.mxu0 %v1232_v24  ;;  %v1231_v26 = vld [vmem:[%s8109_s7 + $0x10] sm:$0xff]  ;;  %v1260_v27 = vld [vmem:[%s8109_s7 + $0xb8] sm:$0xff] }
 0x12c   : > { %v5439_v29 = vpop.f32.mrf.mxu0  ;;  %5572 = vmatprep.subr.mxu0 %v1231_v26 }
 0x12d   : > { %835 = vst [vmem:[%s6527_s29 + $0xb0] sm:$0xff] %v803_v28  ;;  %v806_v30 = vmax.f32 %v5439_v29, 0.0  ;;  %5573 = vmatpush3.msra.mxu0 %v1231_v26  ;;  %v1230_v28 = vld [vmem:[%s8109_s7 + $0x8] sm:$0xff]  ;;  %v1259_v29 = vld [vmem:[%s8109_s7 + $0xb0] sm:$0xff] }
 0x12e   : > { %v742_v31 = vpop.f32.mrf.mxu0  ;;  %5574 = vmatprep.subr.mxu0 %v1230_v28 }
 0x12f   : > { %838 = vst [vmem:[%s6527_s29 + $0xc8] sm:$0xff] %v806_v30  ;;  %v805_v32 = vmax.f32 %v742_v31, 0.0  ;;  %5575 = vmatpush3.msra.mxu0 %v1230_v28  ;;  %v1229_v30 = vld [vmem:[%s8109_s7] sm:$0xff]  ;;  %v1258_v31 = vld [vmem:[%s8109_s7 + $0xa8] sm:$0xff] }
 0x130   : > { %v5442_v33 = vpop.f32.mrf.mxu0  ;;  %5576 = vmatprep.subr.mxu0 %v1229_v30  ;;  %v1495_v28 = vld [vmem:[%s8109_s7 + $0x140] sm:$0xff] }
 0x131   : > { %837 = vst [vmem:[%s6527_s29 + $0xc0] sm:$0xff] %v805_v32  ;;  %v808_v34 = vmax.f32 %v5442_v33, 0.0  ;;  %5577 = vmatpush3.msra.mxu0 %v1229_v30  ;;  %v1257_v32 = vld [vmem:[%s8109_s7 + $0xa0] sm:$0xff]  ;;  %v1256_v33 = vld [vmem:[%s8109_s7 + $0x98] sm:$0xff] }
 0x132   : > { %v752_v35 = vpop.f32.mrf.mxu0 }
 0x133   : > { %840 = vst [vmem:[%s6527_s29 + $0xd8] sm:$0xff] %v808_v34  ;;  %v807_v36 = vmax.f32 %v752_v35, 0.0  ;;  %v1639_v34 = vld [vmem:[%s8109_s7 + $0x1f8] sm:$0xff]  ;;  %v1255_v35 = vld [vmem:[%s8109_s7 + $0x90] sm:$0xff] }
 0x134   : > { %v5445_v37 = vpop.f32.mrf.mxu0  ;;  %5634 = vmatprep.subr.mxu0 %v1639_v34 }
 0x135   : > { %839 = vst [vmem:[%s6527_s29 + $0xd0] sm:$0xff] %v807_v36  ;;  %v810_v38 = vmax.f32 %v5445_v37, 0.0  ;;  %v1254_v36 = vld [vmem:[%s8109_s7 + $0x88] sm:$0xff]  ;;  %v1253_v37 = vld [vmem:[%s8109_s7 + $0x80] sm:$0xff] }
 0x136   : > { %v762_v39 = vpop.f32.mrf.mxu0 }
 0x137   : > { %842 = vst [vmem:[%s6527_s29 + $0xe8] sm:$0xff] %v810_v38  ;;  %v809_v40 = vmax.f32 %v762_v39, 0.0  ;;  %v1502_v38 = vld [vmem:[%s8109_s7 + $0x178] sm:$0xff] }
 0x138   : > { %v5448_v41 = vpop.f32.mrf.mxu0  ;;  %v4821_v39 = vld [vmem:[%s8104_s2 + $0x19] ss:$0 sm:$0xff] }
 0x139   : > { %841 = vst [vmem:[%s6527_s29 + $0xe0] sm:$0xff] %v809_v40  ;;  %v812_v44 = vmax.f32 %v5448_v41, 0.0 }
 0x13a   : > { %v772_v42 = vpop.f32.mrf.mxu0 }
 0x13b   : > { %v811_v43 = vmax.f32 %v772_v42, 0.0 }
 0x13d   : > { %5453 = vmatprep.mubr.msk.f32.mxu1 %vm850_vm1, %v811_v43 }
 0x13e   : > { %5454 = vmatmul.mubr.msk.f32.vlgmr.msra.gmra.mxu1 %vm850_vm1, %v812_v44 }
 0x13f   : > { %5457 = vmatpush3.msra.mxu1 %v934_v45 }
 0x140   : > { %5461 = vmatprep.subr.mxu1 %v8112_v0 }
 0x1fe   : > { %v5455_v58 = vpop.f32.mrf.mxu1 }
 0x1ff   : > { %v929_v59 = vadd.f32 %v5455_v58, %v4818_v57 }
 0x200   : > { %v923_v60 = vpop.f32.mrf.mxu1 }
 0x201   : > { %v924_v61 = vadd.f32 %v4818_v57, %v923_v60  ;;  %v933_v63 = vmax.f32 %v929_v59, 0.0  ;;  %v1636_v57 = vld [vmem:[%s8109_s7 + $0x1e0] sm:$0xff]  ;;  %v1635_v59 = vld [vmem:[%s8109_s7 + $0x1d8] sm:$0xff] }
 0x203   : > { %v932_v62 = vmax.f32 %v924_v61, 0.0 }
 0x205   : > { %5458 = vmatprep.mubr.msk.f32.mxu1 %vm940_vm2, %v932_v62 }
 0x206   : > { %5459 = vmatmul.mubr.msk.f32.vlgmr.msra.gmra.mxu1 %vm940_vm2, %v933_v63  ;;  %v1634_v63 = vld [vmem:[%s8109_s7 + $0x1d0] sm:$0xff] }
 0x207   : > { %5462 = vmatpush3.msk.msra.mxu1 %vm1075_vm3, %v1040_v1  ;;  %5469 = vmatprep.mubr.msk.f32.mxu1 %vm6416_vm4, %v8112_v0 }
 0x208   : > { %5463 = vmatprep.subr.mxu1 %v8112_v0 }
 0x209   : > { %5464 = vmatpush3.msra.mxu1 %v1039_v2  ;;  %v1633_v2 = vld [vmem:[%s8109_s7 + $0x1c8] sm:$0xff] }
 0x20a   : > { %5465 = vmatprep.subr.mxu1 %v8112_v0 }
 0x20b   : > { %5466 = vmatpush3.msra.mxu1 %v1038_v3 }
 0x20c   : > { %5467 = vmatprep.subr.mxu1 %v8112_v0 }
 0x20d   : > { %5468 = vmatpush3.msra.mxu1 %v1037_v4 }
 0x20e   : > { %5470 = vmatmul.mubr.msk.f32.vlgmr.msra.gmra.mxu1 %vm1041_vm5, %v1026_v5  ;;  %5502 = vmatprep.subr.mxu1 %v1268_v6 }
 0x20f   : > { %5472 = vmatprep.mubr.msk.f32.mxu1 %vm6416_vm4, %v8112_v0  ;;  %5503 = vmatpush3.msra.mxu1 %v1268_v6  ;;  %v1501_v6 = vld [vmem:[%s8109_s7 + $0x170] sm:$0xff] }
 0x210   : > { %5504 = vmatprep.subr.mxu1 %v1267_v7 }
 0x211   : > { %5505 = vmatpush3.msra.mxu1 %v1267_v7  ;;  %v1632_v7 = vld [vmem:[%s8109_s7 + $0x1c0] sm:$0xff] }
 0x212   : > { %5473 = vmatmul.mubr.msk.f32.gmra.mxu1 %vm1041_vm5, %v1027_v8  ;;  %5506 = vmatprep.subr.mxu1 %v1266_v9 }
 0x213   : > { %5475 = vmatprep.mubr.msk.f32.mxu1 %vm6416_vm4, %v8112_v0  ;;  %5507 = vmatpush3.msra.mxu1 %v1266_v9  ;;  %v1500_v9 = vld [vmem:[%s8109_s7 + $0x168] sm:$0xff] }
 0x214   : > { %5508 = vmatprep.subr.mxu1 %v1265_v10 }
 0x215   : > { %5509 = vmatpush3.msra.mxu1 %v1265_v10 }
 0x216   : > { %5476 = vmatmul.mubr.msk.f32.gmra.mxu1 %vm1041_vm5, %v1028_v11  ;;  %5510 = vmatprep.subr.mxu1 %v1264_v20  ;;  %v1631_v11 = vld [vmem:[%s8109_s7 + $0x1b8] sm:$0xff] }
 0x217   : > { %5478 = vmatprep.mubr.msk.f32.mxu1 %vm6416_vm4, %v8112_v0  ;;  %5511 = vmatpush3.msra.mxu1 %v1264_v20 }
 0x218   : > { %5512 = vmatprep.subr.mxu1 %v1263_v21 }
 0x219   : > { %5513 = vmatpush3.msra.mxu1 %v1263_v21  ;;  %v1497_v21 = vld [vmem:[%s8109_s7 + $0x150] sm:$0xff] }
 0x21a   : > { %5479 = vmatmul.mubr.msk.f32.gmra.mxu1 %vm1041_vm5, %v1029_v12  ;;  %5514 = vmatprep.subr.mxu1 %v1262_v23 }
 0x21b   : > { %5481 = vmatprep.mubr.msk.f32.mxu1 %vm6416_vm4, %v8112_v0  ;;  %5515 = vmatpush3.msra.mxu1 %v1262_v23  ;;  %v1496_v23 = vld [vmem:[%s8109_s7 + $0x148] sm:$0xff] }
 0x21c   : > { %5516 = vmatprep.subr.mxu1 %v1261_v25 }
 0x21d   : > { %5517 = vmatpush3.msra.mxu1 %v1261_v25  ;;  %v1629_v25 = vld [vmem:[%s8109_s7 + $0x1a8] sm:$0xff] }
 0x21e   : > { %5482 = vmatmul.mubr.msk.f32.gmra.mxu1 %vm1041_vm5, %v1030_v13  ;;  %5518 = vmatprep.subr.mxu1 %v1260_v27 }
 0x21f   : > { %5484 = vmatprep.mubr.msk.f32.mxu1 %vm6416_vm4, %v8112_v0  ;;  %5519 = vmatpush3.msra.mxu1 %v1260_v27 }
 0x220   : > { %5520 = vmatprep.subr.mxu1 %v1259_v29 }
 0x221   : > { %5521 = vmatpush3.msra.mxu1 %v1259_v29  ;;  %v1628_v29 = vld [vmem:[%s8109_s7 + $0x1a0] sm:$0xff] }
 0x222   : > { %5485 = vmatmul.mubr.msk.f32.gmra.mxu1 %vm1041_vm5, %v1031_v14  ;;  %5522 = vmatprep.subr.mxu1 %v1258_v31  ;;  %v1499_v14 = vld [vmem:[%s8109_s7 + $0x160] sm:$0xff] }
 0x223   : > { %5487 = vmatprep.mubr.msk.f32.mxu1 %vm6416_vm4, %v8112_v0  ;;  %5523 = vmatpush3.msra.mxu1 %v1258_v31  ;;  %v1494_v31 = vld [vmem:[%s8109_s7 + $0x138] sm:$0xff] }
 0x224   : > { %5524 = vmatprep.subr.mxu1 %v1257_v32 }
 0x225   : > { %5525 = vmatpush3.msra.mxu1 %v1257_v32 }
 0x226   : > { %5488 = vmatmul.mubr.msk.f32.gmra.mxu1 %vm1041_vm5, %v1032_v15  ;;  %5526 = vmatprep.subr.mxu1 %v1256_v33 }
 0x227   : > { %5490 = vmatprep.mubr.msk.f32.mxu1 %vm6416_vm4, %v8112_v0  ;;  %5527 = vmatpush3.msra.mxu1 %v1256_v33 }
 0x228   : > { %5528 = vmatprep.subr.mxu1 %v1255_v35 }
 0x229   : > { %5529 = vmatpush3.msra.mxu1 %v1255_v35 }
 0x22a   : > { %5491 = vmatmul.mubr.msk.f32.gmra.mxu1 %vm1041_vm5, %v1033_v16  ;;  %5530 = vmatprep.subr.mxu1 %v1254_v36  ;;  %v1498_v16 = vld [vmem:[%s8109_s7 + $0x158] sm:$0xff] }
 0x22b   : > { %5493 = vmatprep.mubr.msk.f32.mxu1 %vm6416_vm4, %v8112_v0  ;;  %5531 = vmatpush3.msra.mxu1 %v1254_v36  ;;  %v1627_v36 = vld [vmem:[%s8109_s7 + $0x198] sm:$0xff] }
 0x22c   : > { %5532 = vmatprep.subr.mxu1 %v1253_v37 }
 0x22d   : > { %5533 = vmatpush3.msra.mxu1 %v1253_v37  ;;  %v1492_v37 = vld [vmem:[%s8109_s7 + $0x128] sm:$0xff] }
 0x22e   : > { %5494 = vmatmul.mubr.msk.f32.gmra.mxu1 %vm1041_vm5, %v1034_v17  ;;  %5590 = vmatprep.subr.mxu1 %v1502_v38 }
 0x22f   : > { %5496 = vmatprep.mubr.msk.f32.mxu1 %vm6416_vm4, %v8112_v0 }
 0x232   : > { %5497 = vmatmul.mubr.msk.f32.gmra.mxu1 %vm1041_vm5, %v1035_v18  ;;  %v1630_v18 = vld [vmem:[%s8109_s7 + $0x1b0] sm:$0xff] }
 0x233   : > { %5499 = vmatprep.mubr.msk.f32.mxu1 %vm6416_vm4, %v8112_v0 }
 0x236   : > { %5500 = vmatmul.mubr.msk.f32.gmra.mxu1 %vm1041_vm5, %v1036_v19 }
 0x2c6   : > { %v5460_v40 = vpop.f32.mrf.mxu1 }
 0x2c7   : > { %v1019_v41 = vadd.f32 %v5460_v40, %v4821_v39 }
 0x2c8   : > { %v1013_v42 = vpop.f32.mrf.mxu1 }
 0x2c9   : > { %v1023_v43 = vmax.f32 %v1019_v41, 0.0  ;;  %v1014_v44 = vadd.f32 %v4821_v39, %v1013_v42 }
 0x2cb   : > { %1025 = vst [vmem:[%s6527_s29 + $0xf8] sm:$0xff] %v1023_v43  ;;  %v1022_v45 = vmax.f32 %v1014_v44, 0.0  ;;  %v1491_v44 = vld [vmem:[%s8109_s7 + $0x120] sm:$0xff] }
 0x2cd   : > { %1024 = vst [vmem:[%s6527_s29 + $0xf0] sm:$0xff] %v1022_v45  ;;  %v1626_v45 = vld [vmem:[%s8109_s7 + $0x190] sm:$0xff] }
 0x2ce   : > { %v1145_v46 = vpop.f32.mrf.mxu1 }
 0x2cf   : > { %v1199_v47 = vmax.f32 %v1145_v46, 0.0 }
 0x2d0   : > { %v5471_v48 = vpop.f32.mrf.mxu1 }
 0x2d1   : > { %1210 = vst [vmem:[#allocation2] sm:$0xff] %v1199_v47  ;;  %5578 = vmatprep.mubr.f32.mxu0 %v1199_v47  ;;  %v1490_v48 = vld [vmem:[%s8109_s7 + $0x118] sm:$0xff] }
 0x2d2   : > { %v1150_v49 = vpop.f32.mrf.mxu1 }
 0x2d3   : > { %v1200_v50 = vmax.f32 %v1150_v49, 0.0  ;;  %v1625_v49 = vld [vmem:[%s8109_s7 + $0x188] sm:$0xff] }
 0x2d4   : > { %v5474_v51 = vpop.f32.mrf.mxu1 }
 0x2d5   : > { %1211 = vst [vmem:[#allocation2 + $0x8] sm:$0xff] %v1200_v50  ;;  %5579 = vmatmul.mubr.f32.vlgmr.msra.gmra.mxu0 %v1200_v50 }
 0x2d6   : > { %v1155_v53 = vpop.f32.mrf.mxu1  ;;  %5635 = vmatpush3.msra.mxu0 %v1639_v34  ;;  %v1493_v34 = vld [vmem:[%s8109_s7 + $0x130] sm:$0xff] }
 0x2d7   : > { %v1201_v55 = vmax.f32 %v1155_v53, 0.0  ;;  %5636 = vmatprep.subr.mxu0 %v1638_v52  ;;  %v1624_v53 = vld [vmem:[%s8109_s7 + $0x180] sm:$0xff] }
 0x2d8   : > { %v5477_v56 = vpop.f32.mrf.mxu1  ;;  %5637 = vmatpush3.msra.mxu0 %v1638_v52  ;;  %v1489_v52 = vld [vmem:[%s8109_s7 + $0x110] sm:$0xff] }
 0x2d9   : > { %1212 = vst [vmem:[#allocation2 + $0x10] sm:$0xff] %v1201_v55  ;;  %5638 = vmatprep.subr.mxu0 %v1637_v54  ;;  %5581 = vmatprep.mubr.f32.mxu0 %v1201_v55  ;;  %v1913_v55 = vld [vmem:[%s8109_s7 + $0x2f8] sm:$0xff]  ;;  %v1487_v56 = vld [vmem:[%s8109_s7 + $0x100] sm:$0xff] }
 0x2da   : > { %v1160_v58 = vpop.f32.mrf.mxu1  ;;  %5639 = vmatpush3.msra.mxu0 %v1637_v54  ;;  %v1488_v54 = vld [vmem:[%s8109_s7 + $0x108] sm:$0xff] }
 0x2db   : > { %v1202_v60 = vmax.f32 %v1160_v58, 0.0  ;;  %5640 = vmatprep.subr.mxu0 %v1636_v57  ;;  %v1776_v58 = vld [vmem:[%s8109_s7 + $0x278] sm:$0xff] }
 0x2dc   : > { %v5480_v61 = vpop.f32.mrf.mxu1  ;;  %v1245_v62 = vld [vmem:[#allocation2 + $0x1] sm:$0xff]  ;;  %5641 = vmatpush3.msra.mxu0 %v1636_v57  ;;  %v1912_v57 = vld [vmem:[%s8109_s7 + $0x2f0] sm:$0xff] }
 0x2dd   : > { %1213 = vst [vmem:[#allocation2 + $0x18] sm:$0xff] %v1202_v60  ;;  %5534 = vmatprep.mubr.f32.mxu1 %v1245_v62  ;;  %5642 = vmatprep.subr.mxu0 %v1635_v59  ;;  %v1479_v51 = vld [vmem:[#allocation2 + $0x2] sm:$0xff]  ;;  %v1775_v62 = vld [vmem:[%s8109_s7 + $0x270] sm:$0xff] }
 0x2de   : > { %v1165_v1 = vpop.f32.mrf.mxu1  ;;  %5643 = vmatpush3.msra.mxu0 %v1635_v59  ;;  %v1911_v59 = vld [vmem:[%s8109_s7 + $0x2e8] sm:$0xff] }
 0x2df   : > { %v1203_v3 = vmax.f32 %v1165_v1, 0.0  ;;  %5644 = vmatprep.subr.mxu0 %v1634_v63  ;;  %5582 = vmatmul.mubr.f32.gmra.mxu0 %v1202_v60  ;;  %v1774_v1 = vld [vmem:[%s8109_s7 + $0x268] sm:$0xff] }
 0x2e0   : > { %v5483_v4 = vpop.f32.mrf.mxu1  ;;  %v6841_v5 = vld [vmem:[#allocation2 + $0x9] sm:$0xff]  ;;  %5645 = vmatpush3.msra.mxu0 %v1634_v63  ;;  %v1910_v63 = vld [vmem:[%s8109_s7 + $0x2e0] sm:$0xff] }
 0x2e1   : > { %1214 = vst [vmem:[#allocation2 + $0x20] sm:$0xff] %v1203_v3  ;;  %5535 = vmatmul.mubr.f32.vlgmr.msra.gmra.mxu1 %v6841_v5  ;;  %5646 = vmatprep.subr.mxu0 %v1633_v2  ;;  %v6946_v60 = vld [vmem:[#allocation2 + $0xa] sm:$0xff]  ;;  %v1773_v4 = vld [vmem:[%s8109_s7 + $0x260] sm:$0xff] }
 0x2e2   : > { %5591 = vmatpush3.msra.mxu1 %v1502_v38  ;;  %v1170_v8 = vpop.f32.mrf.mxu1  ;;  %5647 = vmatpush3.msra.mxu0 %v1633_v2  ;;  %v1909_v2 = vld [vmem:[%s8109_s7 + $0x2d8] sm:$0xff] }
 0x2e3   : > { %v1204_v10 = vmax.f32 %v1170_v8, 0.0  ;;  %5592 = vmatprep.subr.mxu1 %v1501_v6  ;;  %5648 = vmatprep.subr.mxu0 %v1632_v7 }
 0x2e4   : > { %5593 = vmatpush3.msra.mxu1 %v1501_v6  ;;  %v5486_v12 = vpop.f32.mrf.mxu1  ;;  %v6856_v13 = vld [vmem:[#allocation2 + $0x11] sm:$0xff]  ;;  %5649 = vmatpush3.msra.mxu0 %v1632_v7 }
 0x2e5   : > { %1215 = vst [vmem:[#allocation2 + $0x28] sm:$0xff] %v1204_v10  ;;  %5594 = vmatprep.subr.mxu1 %v1500_v9  ;;  %5537 = vmatprep.mubr.f32.mxu1 %v6856_v13  ;;  %v6950_v61 = vld [vmem:[#allocation2 + $0x12] sm:$0xff] }
 0x2e6   : > { %5595 = vmatpush3.msra.mxu1 %v1500_v9  ;;  %v1175_v15 = vpop.f32.mrf.mxu1  ;;  %5650 = vmatprep.subr.mxu0 %v1631_v11  ;;  %v1908_v7 = vld [vmem:[%s8109_s7 + $0x2d0] sm:$0xff]  ;;  %v1772_v9 = vld [vmem:[%s8109_s7 + $0x258] sm:$0xff] }
 0x2e7   : > { %v1205_v17 = vmax.f32 %v1175_v15, 0.0  ;;  %5596 = vmatprep.subr.mxu1 %v1499_v14  ;;  %5584 = vmatprep.mubr.f32.mxu0 %v1203_v3  ;;  %v1890_v15 = vld [vmem:[#allocation2 + $0xb] sm:$0xff] }
 0x2e8   : > { %5597 = vmatpush3.msra.mxu1 %v1499_v14  ;;  %v5489_v19 = vpop.f32.mrf.mxu1  ;;  %v6868_v20 = vld [vmem:[#allocation2 + $0x19] sm:$0xff]  ;;  %5651 = vmatpush3.msra.mxu0 %v1631_v11 }
 0x2e9   : > { %1216 = vst [vmem:[#allocation2 + $0x30] sm:$0xff] %v1205_v17  ;;  %5598 = vmatprep.subr.mxu1 %v1498_v16  ;;  %5538 = vmatmul.mubr.f32.gmra.mxu1 %v6868_v20  ;;  %v6966_v3 = vld [vmem:[#allocation2 + $0x1a] sm:$0xff] }
 0x2ea   : > { %5599 = vmatpush3.msra.mxu1 %v1498_v16  ;;  %v1180_v22 = vpop.f32.mrf.mxu1  ;;  %5652 = vmatprep.subr.mxu0 %v1630_v18  ;;  %v1906_v14 = vld [vmem:[%s8109_s7 + $0x2c0] sm:$0xff]  ;;  %v1770_v16 = vld [vmem:[%s8109_s7 + $0x248] sm:$0xff] }
 0x2eb   : > { %v1206_v24 = vmax.f32 %v1180_v22, 0.0  ;;  %5600 = vmatprep.subr.mxu1 %v1497_v21  ;;  %5585 = vmatmul.mubr.f32.gmra.mxu0 %v1204_v10  ;;  %v1907_v10 = vld [vmem:[%s8109_s7 + $0x2c8] sm:$0xff]  ;;  %v1769_v19 = vld [vmem:[%s8109_s7 + $0x240] sm:$0xff] }
 0x2ec   : > { %5601 = vmatpush3.msra.mxu1 %v1497_v21  ;;  %v5492_v26 = vpop.f32.mrf.mxu1  ;;  %v6880_v27 = vld [vmem:[#allocation2 + $0x21] sm:$0xff]  ;;  %5653 = vmatpush3.msra.mxu0 %v1630_v18  ;;  %v1768_v21 = vld [vmem:[%s8109_s7 + $0x238] sm:$0xff] }
 0x2ed   : > { %1217 = vst [vmem:[#allocation2 + $0x38] sm:$0xff] %v1206_v24  ;;  %5602 = vmatprep.subr.mxu1 %v1496_v23  ;;  %5540 = vmatprep.mubr.f32.mxu1 %v6880_v27  ;;  %v1903_v22 = vld [vmem:[%s8109_s7 + $0x2a8] sm:$0xff]  ;;  %v1902_v24 = vld [vmem:[%s8109_s7 + $0x2a0] sm:$0xff]  ;;  %v1901_v26 = vld [vmem:[%s8109_s7 + $0x298] sm:$0xff] }
 0x2ee   : > { %5603 = vmatpush3.msra.mxu1 %v1496_v23  ;;  %v1185_v30 = vpop.f32.mrf.mxu1  ;;  %5654 = vmatprep.subr.mxu0 %v1629_v25  ;;  %v1767_v23 = vld [vmem:[%s8109_s7 + $0x230] sm:$0xff] }
 0x2ef   : > { %v1207_v32 = vmax.f32 %v1185_v30, 0.0  ;;  %5604 = vmatprep.subr.mxu1 %v1495_v28  ;;  %5655 = vmatpush3.msra.mxu0 %v1629_v25  ;;  %v1766_v25 = vld [vmem:[%s8109_s7 + $0x228] sm:$0xff] }
 0x2f0   : > { %5605 = vmatpush3.msra.mxu1 %v1495_v28  ;;  %v6892_v33 = vld [vmem:[#allocation2 + $0x29] sm:$0xff]  ;;  %5656 = vmatprep.subr.mxu0 %v1628_v29  ;;  %v5495_v35 = vpop.f32.mrf.mxu1 }
 0x2f1   : > { %1218 = vst [vmem:[#allocation2 + $0x40] sm:$0xff] %v1207_v32  ;;  %5606 = vmatprep.subr.mxu1 %v1494_v31  ;;  %5541 = vmatmul.mubr.f32.gmra.mxu1 %v6892_v33  ;;  %v6985_v11 = vld [vmem:[#allocation2 + $0x2a] sm:$0xff]  ;;  %v1898_v32 = vld [vmem:[%s8109_s7 + $0x280] sm:$0xff]  ;;  %v1891_v35 = vld [vmem:[#allocation2 + $0x13] sm:$0xff] }
 0x2f2   : > { %5607 = vmatpush3.msra.mxu1 %v1494_v31  ;;  %5657 = vmatpush3.msra.mxu0 %v1628_v29  ;;  %v1190_v38 = vpop.f32.mrf.mxu1  ;;  %v1900_v28 = vld [vmem:[%s8109_s7 + $0x290] sm:$0xff]  ;;  %v1764_v29 = vld [vmem:[%s8109_s7 + $0x218] sm:$0xff]  ;;  %v1899_v30 = vld [vmem:[%s8109_s7 + $0x288] sm:$0xff] }
 0x2f3   : > { %5608 = vmatprep.subr.mxu1 %v1493_v34  ;;  %5587 = vmatprep.mubr.f32.mxu0 %v1205_v17  ;;  %v1208_v39 = vmax.f32 %v1190_v38, 0.0  ;;  %v1905_v17 = vld [vmem:[%s8109_s7 + $0x2b8] sm:$0xff]  ;;  %v1763_v31 = vld [vmem:[%s8109_s7 + $0x210] sm:$0xff] }
 0x2f4   : > { %5609 = vmatpush3.msra.mxu1 %v1493_v34  ;;  %5658 = vmatprep.subr.mxu0 %v1627_v36  ;;  %v6904_v40 = vld [vmem:[#allocation2 + $0x31] sm:$0xff]  ;;  %v1252_v42 = vld [vmem:[#allocation2 + $0x39] sm:$0x7f]  ;;  %v5498_v43 = vpop.f32.mrf.mxu1 }
 0x2f5   : > { %v1228_v41 = vld [vmem:[#allocation2 + $0x38] sm:$0x7f]  ;;  %5610 = vmatprep.subr.mxu1 %v1492_v37  ;;  %5543 = vmatprep.mubr.f32.mxu1 %v6904_v40  ;;  %1219 = vst [vmem:[#allocation2 + $0x48] sm:$0xff] %v1208_v39  ;;  %v2049_v43 = vld [vmem:[%s8109_s7 + $0x370] sm:$0xff] }
 0x2f6   : > { %5588 = vmatmul.mubr.f32.gmra.mxu0 %v1228_v41  ;;  %5611 = vmatpush3.msra.mxu1 %v1492_v37  ;;  %v1195_v46 = vpop.f32.mrf.mxu1  ;;  %v6988_v12 = vld [vmem:[#allocation2 + $0x32] sm:$0xff]  ;;  %v7058_v38 = vld [vmem:[#allocation2 + $0x1b] sm:$0xff]  ;;  %v7067_v41 = vld [vmem:[#allocation2 + $0x23] sm:$0xff] }
 0x2f7   : > { %5659 = vmatpush3.msra.mxu0 %v1627_v36  ;;  %5544 = vmatmul.mubr.f32.gmra.mxu1 %v1252_v42  ;;  %v1209_v47 = vmax.f32 %v1195_v46, 0.0  ;;  %v2187_v34 = vld [vmem:[%s8109_s7 + $0x3f8] sm:$0xff]  ;;  %v1761_v36 = vld [vmem:[%s8109_s7 + $0x200] sm:$0xff]  ;;  %v2186_v37 = vld [vmem:[%s8109_s7 + $0x3f0] sm:$0xff] }
 0x2f8   : > { %5612 = vmatprep.subr.mxu1 %v1491_v44  ;;  %5660 = vmatprep.subr.mxu0 %v1626_v45  ;;  %v5501_v50 = vpop.f32.mrf.mxu1  ;;  %v1622_v6 = vld [vmem:[#allocation2 + $0x39] sm:$0xff]  ;;  %v1623_v8 = vld [vmem:[#allocation2 + $0x41] sm:$0x7f]  ;;  %v7071_v42 = vld [vmem:[#allocation2 + $0x2b] sm:$0xff] }
 0x2f9   : > { %5666 = vmatprep.mubr.f32.mxu0 %v6841_v5  ;;  %5613 = vmatpush3.msra.mxu1 %v1491_v44  ;;  %1220 = vst [vmem:[#allocation2 + $0x50] sm:$0xff] %v1209_v47  ;;  %v6973_v5 = vld [vmem:[#allocation2 + $0x22] sm:$0xff]  ;;  %v1486_v18 = vld [vmem:[#allocation2 + $0x3a] sm:$0x7f]  ;;  %v2182_v50 = vld [vmem:[%s8109_s7 + $0x3d0] sm:$0xff] }
 0x2fa   : > { %5622 = vmatprep.mubr.f32.mxu1 %v1479_v51  ;;  %5661 = vmatpush3.msra.mxu0 %v1626_v45  ;;  %v2050_v39 = vld [vmem:[%s8109_s7 + $0x378] sm:$0xff]  ;;  %v2184_v44 = vld [vmem:[%s8109_s7 + $0x3e0] sm:$0xff]  ;;  %v2048_v45 = vld [vmem:[%s8109_s7 + $0x368] sm:$0xff] }
 0x2fb   : > { %5614 = vmatprep.subr.mxu1 %v1490_v48  ;;  %5662 = vmatprep.subr.mxu0 %v1625_v49  ;;  %v2183_v46 = vld [vmem:[%s8109_s7 + $0x3d8] sm:$0xff] }
 0x2fc   : > { %5615 = vmatpush3.msra.mxu1 %v1490_v48  ;;  %5663 = vmatpush3.msra.mxu0 %v1625_v49  ;;  %v7087_v47 = vld [vmem:[#allocation2 + $0x33] sm:$0xff]  ;;  %v7091_v48 = vld [vmem:[#allocation2 + $0x3b] sm:$0xff] }
 0x2fd   : > { %5616 = vmatprep.subr.mxu1 %v1489_v52  ;;  %5664 = vmatprep.subr.mxu0 %v1624_v53  ;;  %v2047_v49 = vld [vmem:[%s8109_s7 + $0x360] sm:$0xff]  ;;  %v2046_v51 = vld [vmem:[%s8109_s7 + $0x358] sm:$0xff] }
 0x2fe   : > { %5617 = vmatpush3.msra.mxu1 %v1489_v52  ;;  %5665 = vmatpush3.msra.mxu0 %v1624_v53  ;;  %v2181_v52 = vld [vmem:[%s8109_s7 + $0x3c8] sm:$0xff] }
 0x2ff   : > { %5618 = vmatprep.subr.mxu1 %v1488_v54  ;;  %5667 = vmatmul.mubr.f32.vlgmr.msra.gmra.mxu0 %v6856_v13  ;;  %v1771_v13 = vld [vmem:[%s8109_s7 + $0x250] sm:$0xff]  ;;  %v1897_v53 = vld [vmem:[#allocation2 + $0x43] sm:$0x7f] }
 0x300   : > { %5722 = vmatprep.subr.mxu0 %v1913_v55  ;;  %5619 = vmatpush3.msra.mxu1 %v1488_v54  ;;  %v7108_v54 = vld [vmem:[#allocation2 + $0x3a] sm:$0xff] }
 0x301   : > { %5669 = vmatprep.mubr.f32.mxu0 %v6868_v20  ;;  %5723 = vmatpush3.msra.mxu0 %v1913_v55  ;;  %v1904_v20 = vld [vmem:[%s8109_s7 + $0x2b0] sm:$0xff] }
 0x302   : > { %5620 = vmatprep.subr.mxu1 %v1487_v56  ;;  %5724 = vmatprep.subr.mxu0 %v1912_v57  ;;  %v2045_v55 = vld [vmem:[%s8109_s7 + $0x350] sm:$0xff] }
 0x303   : > { %5621 = vmatpush3.msra.mxu1 %v1487_v56  ;;  %5725 = vmatpush3.msra.mxu0 %v1912_v57  ;;  %v2180_v56 = vld [vmem:[%s8109_s7 + $0x3c0] sm:$0xff]  ;;  %v2044_v57 = vld [vmem:[%s8109_s7 + $0x348] sm:$0xff] }
 0x304   : > { %5623 = vmatmul.mubr.f32.vlgmr.msra.gmra.mxu1 %v6946_v60  ;;  %5670 = vmatmul.mubr.f32.gmra.mxu0 %v6880_v27  ;;  %v1765_v27 = vld [vmem:[%s8109_s7 + $0x220] sm:$0xff] }
 0x305   : > { %5678 = vmatprep.subr.mxu1 %v1776_v58  ;;  %5726 = vmatprep.subr.mxu0 %v1911_v59 }
 0x306   : > { %5625 = vmatprep.mubr.f32.mxu1 %v6950_v61  ;;  %5672 = vmatprep.mubr.f32.mxu0 %v6892_v33  ;;  %v1762_v33 = vld [vmem:[%s8109_s7 + $0x208] sm:$0xff] }
 0x307   : > { %5679 = vmatpush3.msra.mxu1 %v1776_v58  ;;  %5727 = vmatpush3.msra.mxu0 %v1911_v59  ;;  %v2179_v58 = vld [vmem:[%s8109_s7 + $0x3b8] sm:$0xff]  ;;  %v1760_v59 = vld [vmem:[#allocation2 + $0x42] sm:$0x7f] }
 0x308   : > { %5680 = vmatprep.subr.mxu1 %v1775_v62  ;;  %5728 = vmatprep.subr.mxu0 %v1910_v63 }
 0x309   : > { %5681 = vmatpush3.msra.mxu1 %v1775_v62  ;;  %5729 = vmatpush3.msra.mxu0 %v1910_v63  ;;  %v2178_v62 = vld [vmem:[%s8109_s7 + $0x3b0] sm:$0xff]  ;;  %v2042_v63 = vld [vmem:[%s8109_s7 + $0x338] sm:$0xff] }
 0x30a   : > { %5626 = vmatmul.mubr.f32.gmra.mxu1 %v6966_v3  ;;  %5673 = vmatmul.mubr.f32.gmra.mxu0 %v6904_v40  ;;  %v2185_v40 = vld [vmem:[%s8109_s7 + $0x3e8] sm:$0xff] }
 0x30b   : > { %5682 = vmatprep.subr.mxu1 %v1774_v1  ;;  %5730 = vmatprep.subr.mxu0 %v1909_v2 }
 0x30c   : > { %5628 = vmatprep.mubr.f32.mxu1 %v6973_v5  ;;  %5675 = vmatprep.mubr.f32.mxu0 %v1622_v6  ;;  %v2175_v6 = vld [vmem:[%s8109_s7 + $0x398] sm:$0xff] }
 0x30d   : > { %5683 = vmatpush3.msra.mxu1 %v1774_v1  ;;  %5731 = vmatpush3.msra.mxu0 %v1909_v2  ;;  %v2177_v1 = vld [vmem:[%s8109_s7 + $0x3a8] sm:$0xff]  ;;  %v2041_v2 = vld [vmem:[%s8109_s7 + $0x330] sm:$0xff] }
 0x30e   : > { %5684 = vmatprep.subr.mxu1 %v1773_v4  ;;  %5732 = vmatprep.subr.mxu0 %v1908_v7 }
 0x30f   : > { %5685 = vmatpush3.msra.mxu1 %v1773_v4  ;;  %5733 = vmatpush3.msra.mxu0 %v1908_v7  ;;  %v2040_v4 = vld [vmem:[%s8109_s7 + $0x328] sm:$0xff]  ;;  %v2039_v7 = vld [vmem:[%s8109_s7 + $0x320] sm:$0xff] }
 0x310   : > { %5629 = vmatmul.mubr.f32.gmra.mxu1 %v6985_v11  ;;  %5676 = vmatmul.mubr.f32.gmra.mxu0 %v1623_v8  ;;  %v2174_v8 = vld [vmem:[%s8109_s7 + $0x390] sm:$0xff] }
 0x311   : > { %5686 = vmatprep.subr.mxu1 %v1772_v9  ;;  %5734 = vmatprep.subr.mxu0 %v1907_v10 }
 0x312   : > { %5631 = vmatprep.mubr.f32.mxu1 %v6988_v12  ;;  %5687 = vmatpush3.msra.mxu1 %v1772_v9  ;;  %v2038_v9 = vld [vmem:[%s8109_s7 + $0x318] sm:$0xff] }
 0x313   : > { %5735 = vmatpush3.msra.mxu0 %v1907_v10  ;;  %5754 = vmatprep.mubr.f32.mxu0 %v1890_v15  ;;  %v2173_v10 = vld [vmem:[%s8109_s7 + $0x388] sm:$0xff] }
 0x314   : > { %5688 = vmatprep.subr.mxu1 %v1771_v13  ;;  %5736 = vmatprep.subr.mxu0 %v1906_v14  ;;  %v2036_v15 = vld [vmem:[%s8109_s7 + $0x308] sm:$0xff] }
 0x315   : > { %5689 = vmatpush3.msra.mxu1 %v1771_v13  ;;  %5737 = vmatpush3.msra.mxu0 %v1906_v14  ;;  %v2037_v13 = vld [vmem:[%s8109_s7 + $0x310] sm:$0xff]  ;;  %v2172_v14 = vld [vmem:[%s8109_s7 + $0x380] sm:$0xff] }
 0x316   : > { %5632 = vmatmul.mubr.f32.gmra.mxu1 %v1486_v18  ;;  %5690 = vmatprep.subr.mxu1 %v1770_v16  ;;  %v2324_v18 = vld [vmem:[%s8109_s7 + $0x478] sm:$0xff] }
 0x317   : > { %5738 = vmatprep.subr.mxu0 %v1905_v17  ;;  %5691 = vmatpush3.msra.mxu1 %v1770_v16  ;;  %v2476_v16 = vld [vmem:[%s408_s13 + $0x8] sm:$0xff] }
 0x318   : > { %5710 = vmatprep.mubr.f32.mxu1 %v6946_v60  ;;  %5739 = vmatpush3.msra.mxu0 %v1905_v17  ;;  %v2043_v60 = vld [vmem:[%s8109_s7 + $0x340] sm:$0xff] }
 0x319   : > { %5692 = vmatprep.subr.mxu1 %v1769_v19  ;;  %5740 = vmatprep.subr.mxu0 %v1904_v20  ;;  %v2035_v17 = vld [vmem:[%s8109_s7 + $0x300] sm:$0xff] }
 0x31a   : > { %5693 = vmatpush3.msra.mxu1 %v1769_v19  ;;  %5741 = vmatpush3.msra.mxu0 %v1904_v20  ;;  %v2475_v19 = vld [vmem:[%s408_s13] sm:$0xff]  ;;  %v2323_v20 = vld [vmem:[%s8109_s7 + $0x470] sm:$0xff] }
 0x31b   : > { %5694 = vmatprep.subr.mxu1 %v1768_v21  ;;  %5742 = vmatprep.subr.mxu0 %v1903_v22 }
 0x31c   : > { %5695 = vmatpush3.msra.mxu1 %v1768_v21  ;;  %5743 = vmatpush3.msra.mxu0 %v1903_v22  ;;  %v2322_v21 = vld [vmem:[%s8109_s7 + $0x468] sm:$0xff] }
 0x31d   : > { %5696 = vmatprep.subr.mxu1 %v1767_v23  ;;  %5744 = vmatprep.subr.mxu0 %v1902_v24  ;;  %v2170_v22 = vld [vmem:[#allocation2 + $0x43] sm:$0xff] }
 0x31e   : > { %5697 = vmatpush3.msra.mxu1 %v1767_v23  ;;  %5745 = vmatpush3.msra.mxu0 %v1902_v24  ;;  %v2320_v23 = vld [vmem:[%s8109_s7 + $0x458] sm:$0xff]  ;;  %v2319_v24 = vld [vmem:[%s8109_s7 + $0x450] sm:$0xff] }
 0x31f   : > { %5698 = vmatprep.subr.mxu1 %v1766_v25  ;;  %5746 = vmatprep.subr.mxu0 %v1901_v26 }
 0x320   : > { %5699 = vmatpush3.msra.mxu1 %v1766_v25  ;;  %5747 = vmatpush3.msra.mxu0 %v1901_v26  ;;  %v2318_v25 = vld [vmem:[%s8109_s7 + $0x448] sm:$0xff] }
 0x321   : > { %5700 = vmatprep.subr.mxu1 %v1765_v27  ;;  %5748 = vmatprep.subr.mxu0 %v1900_v28  ;;  %v2034_v26 = vld [vmem:[#allocation2 + $0x4a] sm:$0x7f] }
 0x322   : > { %5701 = vmatpush3.msra.mxu1 %v1765_v27  ;;  %5749 = vmatpush3.msra.mxu0 %v1900_v28  ;;  %v2317_v27 = vld [vmem:[%s8109_s7 + $0x440] sm:$0xff]  ;;  %v2469_v28 = vld [vmem:[#allocation5 + $0x60] sm:$0xff] }
 0x323   : > { %5702 = vmatprep.subr.mxu1 %v1764_v29  ;;  %5750 = vmatprep.subr.mxu0 %v1899_v30 }
 0x324   : > { %5703 = vmatpush3.msra.mxu1 %v1764_v29  ;;  %5751 = vmatpush3.msra.mxu0 %v1899_v30  ;;  %v2301_v29 = vld [vmem:[#allocation2 + $0x14] sm:$0xff] }
 0x325   : > { %5704 = vmatprep.subr.mxu1 %v1763_v31  ;;  %5752 = vmatprep.subr.mxu0 %v1898_v32  ;;  %v2316_v30 = vld [vmem:[%s8109_s7 + $0x438] sm:$0xff] }
 0x326   : > { %5705 = vmatpush3.msra.mxu1 %v1763_v31  ;;  %5753 = vmatpush3.msra.mxu0 %v1898_v32  ;;  %v2315_v31 = vld [vmem:[%s8109_s7 + $0x430] sm:$0xff]  ;;  %v2470_v32 = vld [vmem:[#allocation5 + $0x68] sm:$0xff] }
 0x327   : > { %5706 = vmatprep.subr.mxu1 %v1762_v33  ;;  %5755 = vmatmul.mubr.f32.vlgmr.msra.gmra.mxu0 %v1891_v35 }
 0x328   : > { %5810 = vmatprep.subr.mxu0 %v2187_v34  ;;  %5707 = vmatpush3.msra.mxu1 %v1762_v33  ;;  %v2314_v33 = vld [vmem:[%s8109_s7 + $0x428] sm:$0xff] }
 0x329   : > { %5757 = vmatprep.mubr.f32.mxu0 %v7058_v38  ;;  %5811 = vmatpush3.msra.mxu0 %v2187_v34  ;;  %v2313_v34 = vld [vmem:[%s8109_s7 + $0x420] sm:$0xff] }
 0x32a   : > { %5708 = vmatprep.subr.mxu1 %v1761_v36  ;;  %5812 = vmatprep.subr.mxu0 %v2186_v37 }
 0x32b   : > { %5709 = vmatpush3.msra.mxu1 %v1761_v36  ;;  %5813 = vmatpush3.msra.mxu0 %v2186_v37  ;;  %v2312_v36 = vld [vmem:[%s8109_s7 + $0x418] sm:$0xff]  ;;  %v2311_v37 = vld [vmem:[%s8109_s7 + $0x410] sm:$0xff] }
 0x32c   : > { %5711 = vmatmul.mubr.f32.vlgmr.msra.gmra.mxu1 %v6950_v61  ;;  %5758 = vmatmul.mubr.f32.gmra.mxu0 %v7067_v41 }
 0x32d   : > { %5766 = vmatprep.subr.mxu1 %v2050_v39  ;;  %5814 = vmatprep.subr.mxu0 %v2185_v40 }
 0x32e   : > { %5713 = vmatprep.mubr.f32.mxu1 %v6966_v3  ;;  %5760 = vmatprep.mubr.f32.mxu0 %v7071_v42 }
 0x32f   : > { %5767 = vmatpush3.msra.mxu1 %v2050_v39  ;;  %5815 = vmatpush3.msra.mxu0 %v2185_v40  ;;  %v2310_v39 = vld [vmem:[%s8109_s7 + $0x408] sm:$0xff]  ;;  %v2309_v40 = vld [vmem:[%s8109_s7 + $0x400] sm:$0xff] }
 0x330   : > { %5768 = vmatprep.subr.mxu1 %v2049_v43  ;;  %5816 = vmatprep.subr.mxu0 %v2184_v44 }
 0x331   : > { %5769 = vmatpush3.msra.mxu1 %v2049_v43  ;;  %5817 = vmatpush3.msra.mxu0 %v2184_v44  ;;  %v2474_v43 = vld [vmem:[#allocation5 + $0x88] sm:$0xff]  ;;  %v2303_v44 = vld [vmem:[#allocation2 + $0x24] sm:$0xff] }
 0x332   : > { %5714 = vmatmul.mubr.f32.gmra.mxu1 %v6973_v5  ;;  %5761 = vmatmul.mubr.f32.gmra.mxu0 %v7087_v47 }
 0x333   : > { %5770 = vmatprep.subr.mxu1 %v2048_v45  ;;  %5818 = vmatprep.subr.mxu0 %v2183_v46 }
 0x334   : > { %5716 = vmatprep.mubr.f32.mxu1 %v6985_v11  ;;  %5763 = vmatprep.mubr.f32.mxu0 %v7091_v48 }
 0x335   : > { %5771 = vmatpush3.msra.mxu1 %v2048_v45  ;;  %5819 = vmatpush3.msra.mxu0 %v2183_v46  ;;  %v2304_v45 = vld [vmem:[#allocation2 + $0x2c] sm:$0xff]  ;;  %v2305_v46 = vld [vmem:[#allocation2 + $0x34] sm:$0xff] }
 0x336   : > { %5772 = vmatprep.subr.mxu1 %v2047_v49  ;;  %5820 = vmatprep.subr.mxu0 %v2182_v50 }
 0x337   : > { %5773 = vmatpush3.msra.mxu1 %v2047_v49  ;;  %5821 = vmatpush3.msra.mxu0 %v2182_v50  ;;  %v2308_v49 = vld [vmem:[#allocation2 + $0x4c] sm:$0x7f]  ;;  %v2625_v50 = vld [vmem:[%s8109_s7 + $0x4b8] sm:$0xff] }
 0x338   : > { %5717 = vmatmul.mubr.f32.gmra.mxu1 %v6988_v12  ;;  %5764 = vmatmul.mubr.f32.gmra.mxu0 %v1897_v53  ;;  %v2622_v53 = vld [vmem:[%s8109_s7 + $0x4a0] sm:$0xff] }
 0x339   : > { %5774 = vmatprep.subr.mxu1 %v2046_v51  ;;  %5822 = vmatprep.subr.mxu0 %v2181_v52 }
 0x33a   : > { %5719 = vmatprep.mubr.f32.mxu1 %v7108_v54  ;;  %5775 = vmatpush3.msra.mxu1 %v2046_v51  ;;  %v2624_v51 = vld [vmem:[%s8109_s7 + $0x4b0] sm:$0xff] }
 0x33b   : > { %5823 = vmatpush3.msra.mxu0 %v2181_v52  ;;  %5842 = vmatprep.mubr.f32.mxu0 %v1891_v35  ;;  %v2471_v35 = vld [vmem:[#allocation5 + $0x70] sm:$0xff]  ;;  %v2623_v52 = vld [vmem:[%s8109_s7 + $0x4a8] sm:$0xff] }
 0x33c   : > { %5776 = vmatprep.subr.mxu1 %v2045_v55  ;;  %5824 = vmatprep.subr.mxu0 %v2180_v56 }
 0x33d   : > { %5777 = vmatpush3.msra.mxu1 %v2045_v55  ;;  %5825 = vmatpush3.msra.mxu0 %v2180_v56  ;;  %v2621_v55 = vld [vmem:[%s8109_s7 + $0x498] sm:$0xff]  ;;  %v2637_v56 = vld [vmem:[%s8109_s7 + $0x4f0] sm:$0xff] }
 0x33e   : > { %5720 = vmatmul.mubr.f32.gmra.mxu1 %v1760_v59  ;;  %5778 = vmatprep.subr.mxu1 %v2044_v57  ;;  %v2635_v59 = vld [vmem:[%s8109_s7 + $0x4e0] sm:$0xff] }
 0x33f   : > { %5826 = vmatprep.subr.mxu0 %v2179_v58  ;;  %5779 = vmatpush3.msra.mxu1 %v2044_v57  ;;  %v2636_v57 = vld [vmem:[%s8109_s7 + $0x4e8] sm:$0xff] }
 0x340   : > { %5798 = vmatprep.mubr.f32.mxu1 %v6950_v61  ;;  %5827 = vmatpush3.msra.mxu0 %v2179_v58  ;;  %v2176_v61 = vld [vmem:[%s8109_s7 + $0x3a0] sm:$0xff]  ;;  %v2620_v58 = vld [vmem:[%s8109_s7 + $0x490] sm:$0xff] }
 0x341   : > { %5780 = vmatprep.subr.mxu1 %v2043_v60  ;;  %5828 = vmatprep.subr.mxu0 %v2178_v62 }
 0x342   : > { %5781 = vmatpush3.msra.mxu1 %v2043_v60  ;;  %5829 = vmatpush3.msra.mxu0 %v2178_v62  ;;  %v2619_v60 = vld [vmem:[%s8109_s7 + $0x488] sm:$0xff]  ;;  %v2634_v62 = vld [vmem:[%s8109_s7 + $0x4d8] sm:$0xff] }
 0x343   : > { %5782 = vmatprep.subr.mxu1 %v2042_v63  ;;  %5830 = vmatprep.subr.mxu0 %v2177_v1 }
 0x344   : > { %5783 = vmatpush3.msra.mxu1 %v2042_v63  ;;  %5831 = vmatpush3.msra.mxu0 %v2177_v1  ;;  %v2618_v63 = vld [vmem:[%s8109_s7 + $0x480] sm:$0xff]  ;;  %v2633_v1 = vld [vmem:[%s8109_s7 + $0x4d0] sm:$0xff] }
 0x345   : > { %5784 = vmatprep.subr.mxu1 %v2041_v2  ;;  %5832 = vmatprep.subr.mxu0 %v2176_v61 }
 0x346   : > { %5785 = vmatpush3.msra.mxu1 %v2041_v2  ;;  %5833 = vmatpush3.msra.mxu0 %v2176_v61  ;;  %v2632_v2 = vld [vmem:[%s8109_s7 + $0x4c8] sm:$0xff]  ;;  %v2631_v61 = vld [vmem:[%s8109_s7 + $0x4c0] sm:$0xff] }
 0x347   : > { %5786 = vmatprep.subr.mxu1 %v2040_v4  ;;  %5834 = vmatprep.subr.mxu0 %v2175_v6 }
 0x348   : > { %5787 = vmatpush3.msra.mxu1 %v2040_v4  ;;  %5835 = vmatpush3.msra.mxu0 %v2175_v6 }
 0x349   : > { %5788 = vmatprep.subr.mxu1 %v2039_v7  ;;  %5836 = vmatprep.subr.mxu0 %v2174_v8 }
 0x34a   : > { %5789 = vmatpush3.msra.mxu1 %v2039_v7  ;;  %5837 = vmatpush3.msra.mxu0 %v2174_v8 }
 0x34b   : > { %5790 = vmatprep.subr.mxu1 %v2038_v9  ;;  %5838 = vmatprep.subr.mxu0 %v2173_v10 }
 0x34c   : > { %5791 = vmatpush3.msra.mxu1 %v2038_v9  ;;  %5839 = vmatpush3.msra.mxu0 %v2173_v10 }
 0x34d   : > { %5792 = vmatprep.subr.mxu1 %v2037_v13  ;;  %5840 = vmatprep.subr.mxu0 %v2172_v14 }
 0x34e   : > { %5793 = vmatpush3.msra.mxu1 %v2037_v13  ;;  %5841 = vmatpush3.msra.mxu0 %v2172_v14 }
 0x34f   : > { %5794 = vmatprep.subr.mxu1 %v2036_v15  ;;  %5843 = vmatmul.mubr.f32.vlgmr.msra.gmra.mxu0 %v7058_v38  ;;  %v2472_v38 = vld [vmem:[#allocation5 + $0x78] sm:$0xff] }
 0x350   : > { %5898 = vmatprep.subr.mxu0 %v8112_v0  ;;  %5795 = vmatpush3.msra.mxu1 %v2036_v15 }
 0x351   : > { %5845 = vmatprep.mubr.f32.mxu0 %v7067_v41  ;;  %5899 = vmatpush3.msra.mxu0 %v2476_v16  ;;  %v2473_v41 = vld [vmem:[#allocation5 + $0x80] sm:$0xff] }
 0x352   : > { %5796 = vmatprep.subr.mxu1 %v2035_v17  ;;  %5900 = vmatprep.subr.mxu0 %v8112_v0 }
 0x353   : > { %5797 = vmatpush3.msra.mxu1 %v2035_v17  ;;  %5846 = vmatmul.mubr.f32.gmra.mxu0 %v7071_v42  ;;  %v2302_v42 = vld [vmem:[#allocation2 + $0x1c] sm:$0xff] }
 0x354   : > { %5799 = vmatmul.mubr.f32.vlgmr.msra.gmra.mxu1 %v6966_v3  ;;  %5854 = vmatprep.subr.mxu1 %v2324_v18  ;;  %v2321_v3 = vld [vmem:[%s8109_s7 + $0x460] sm:$0xff] }
 0x355   : > { %5801 = vmatprep.mubr.f32.mxu1 %v6973_v5  ;;  %5848 = vmatprep.mubr.f32.mxu0 %v7087_v47  ;;  %v2171_v5 = vld [vmem:[#allocation2 + $0x4b] sm:$0x7f]  ;;  %v2306_v47 = vld [vmem:[#allocation2 + $0x3c] sm:$0xff] }
 0x356   : > { %5855 = vmatpush3.msra.mxu1 %v2324_v18  ;;  %5901 = vmatpush3.msra.mxu0 %v2475_v19 }
 0x357   : > { %5856 = vmatprep.subr.mxu1 %v2323_v20  ;;  %5849 = vmatmul.mubr.f32.gmra.mxu0 %v7091_v48  ;;  %v2307_v48 = vld [vmem:[#allocation2 + $0x44] sm:$0xff] }
 0x358   : > { %5857 = vmatpush3.msra.mxu1 %v2323_v20  ;;  %5851 = vmatprep.mubr.f32.mxu0 %v2170_v22 }
 0x359   : > { %5802 = vmatmul.mubr.f32.gmra.mxu1 %v6985_v11  ;;  %5858 = vmatprep.subr.mxu1 %v2322_v21  ;;  %v2468_v11 = vld [vmem:[#allocation5 + $0x58] sm:$0xff] }
 0x35a   : > { %5804 = vmatprep.mubr.f32.mxu1 %v6988_v12  ;;  %5859 = vmatpush3.msra.mxu1 %v2322_v21  ;;  %v2033_v12 = vld [vmem:[#allocation2 + $0x42] sm:$0xff] }
 0x35b   : > { %5860 = vmatprep.subr.mxu1 %v2321_v3  ;;  %5852 = vmatmul.mubr.f32.gmra.mxu0 %v2171_v5 }
 0x35c   : > { %5861 = vmatpush3.msra.mxu1 %v2321_v3  ;;  %5902 = vmatprep.mubr.msk.f32.mxu0 %vm6416_vm4, %v8112_v0 }
 0x35d   : > { %5805 = vmatmul.mubr.f32.gmra.mxu1 %v7108_v54  ;;  %5862 = vmatprep.subr.mxu1 %v2320_v23  ;;  %v2638_v54 = vld [vmem:[%s8109_s7 + $0x4f8] sm:$0xff] }
 0x35e   : > { %5807 = vmatprep.mubr.f32.mxu1 %v2033_v12  ;;  %5863 = vmatpush3.msra.mxu1 %v2320_v23 }
 0x35f   : > { %5864 = vmatprep.subr.mxu1 %v2319_v24  ;;  %5903 = vmatmul.mubr.msk.f32.vlgmr.msra.gmra.mxu0 %vm850_vm1, %v2468_v11 }
 0x360   : > { %5865 = vmatpush3.msra.mxu1 %v2319_v24  ;;  %5905 = vmatprep.mubr.msk.f32.mxu0 %vm6416_vm4, %v8112_v0 }
 0x361   : > { %5808 = vmatmul.mubr.f32.gmra.mxu1 %v2034_v26  ;;  %5866 = vmatprep.subr.mxu1 %v2318_v25 }
 0x362   : > { %5867 = vmatpush3.msra.mxu1 %v2318_v25  ;;  %5886 = vmatprep.mubr.f32.mxu1 %v2301_v29 }
 0x363   : > { %5868 = vmatprep.subr.mxu1 %v2317_v27  ;;  %5906 = vmatmul.mubr.msk.f32.gmra.mxu0 %vm850_vm1, %v2469_v28 }
 0x364   : > { %5869 = vmatpush3.msra.mxu1 %v2317_v27  ;;  %5908 = vmatprep.mubr.msk.f32.mxu0 %vm6416_vm4, %v8112_v0 }
 0x365   : > { %5870 = vmatprep.subr.mxu1 %v2316_v30  ;;  %5954 = vmatprep.subr.mxu0 %v8112_v0 }
 0x366   : > { %5871 = vmatpush3.msra.mxu1 %v2316_v30  ;;  %5955 = vmatpush3.msra.mxu0 %v2625_v50 }
 0x367   : > { %5872 = vmatprep.subr.mxu1 %v2315_v31  ;;  %5909 = vmatmul.mubr.msk.f32.gmra.mxu0 %vm850_vm1, %v2470_v32 }
 0x368   : > { %5873 = vmatpush3.msra.mxu1 %v2315_v31  ;;  %5911 = vmatprep.mubr.msk.f32.mxu0 %vm6416_vm4, %v8112_v0 }
 0x369   : > { %5874 = vmatprep.subr.mxu1 %v2314_v33  ;;  %5956 = vmatprep.subr.mxu0 %v8112_v0 }
 0x36a   : > { %5875 = vmatpush3.msra.mxu1 %v2314_v33  ;;  %5957 = vmatpush3.msra.mxu0 %v2624_v51 }
 0x36b   : > { %5876 = vmatprep.subr.mxu1 %v2313_v34  ;;  %5912 = vmatmul.mubr.msk.f32.gmra.mxu0 %vm850_vm1, %v2471_v35 }
 0x36c   : > { %5877 = vmatpush3.msra.mxu1 %v2313_v34  ;;  %5914 = vmatprep.mubr.msk.f32.mxu0 %vm6416_vm4, %v8112_v0 }
 0x36d   : > { %5878 = vmatprep.subr.mxu1 %v2312_v36  ;;  %5958 = vmatprep.subr.mxu0 %v8112_v0 }
 0x36e   : > { %5879 = vmatpush3.msra.mxu1 %v2312_v36  ;;  %5959 = vmatpush3.msra.mxu0 %v2623_v52 }
 0x36f   : > { %5880 = vmatprep.subr.mxu1 %v2311_v37  ;;  %5915 = vmatmul.mubr.msk.f32.gmra.mxu0 %vm850_vm1, %v2472_v38 }
 0x370   : > { %5881 = vmatpush3.msra.mxu1 %v2311_v37  ;;  %5917 = vmatprep.mubr.msk.f32.mxu0 %vm6416_vm4, %v8112_v0 }
 0x371   : > { %5882 = vmatprep.subr.mxu1 %v2310_v39  ;;  %5960 = vmatprep.subr.mxu0 %v8112_v0 }
 0x372   : > { %5883 = vmatpush3.msra.mxu1 %v2310_v39  ;;  %5961 = vmatpush3.msra.mxu0 %v2622_v53 }
 0x373   : > { %5884 = vmatprep.subr.mxu1 %v2309_v40  ;;  %5918 = vmatmul.mubr.msk.f32.gmra.mxu0 %vm850_vm1, %v2473_v41 }
 0x374   : > { %5885 = vmatpush3.msra.mxu1 %v2309_v40  ;;  %5920 = vmatprep.mubr.msk.f32.mxu0 %vm6416_vm4, %v8112_v0 }
 0x375   : > { %5887 = vmatmul.mubr.f32.vlgmr.msra.gmra.mxu1 %v2302_v42  ;;  %5923 = vmatprep.subr.mxu1 %v8112_v0 }
 0x376   : > { %5889 = vmatprep.mubr.f32.mxu1 %v2303_v44  ;;  %5962 = vmatprep.subr.mxu0 %v8112_v0 }
 0x377   : > { %5921 = vmatmul.mubr.msk.f32.gmra.mxu0 %vm850_vm1, %v2474_v43  ;;  %5924 = vmatpush3.msra.mxu1 %v2638_v54 }
 0x378   : > { %5970 = vmatprep.mubr.msk.f32.mxu0 %vm6416_vm4, %v8112_v0  ;;  %5963 = vmatpush3.msra.mxu0 %v2621_v55 }
 0x379   : > { %5890 = vmatmul.mubr.f32.gmra.mxu1 %v2304_v45  ;;  %5925 = vmatprep.subr.mxu1 %v8112_v0 }
 0x37a   : > { %5892 = vmatprep.mubr.f32.mxu1 %v2305_v46  ;;  %5964 = vmatprep.subr.mxu0 %v8112_v0 }
 0x37b   : > { %5926 = vmatpush3.msra.mxu1 %v2637_v56  ;;  %5965 = vmatpush3.msra.mxu0 %v2620_v58 }
 0x37c   : > { %5927 = vmatprep.subr.mxu1 %v8112_v0  ;;  %5966 = vmatprep.subr.mxu0 %v8112_v0 }
 0x37d   : > { %5893 = vmatmul.mubr.f32.gmra.mxu1 %v2306_v47  ;;  %5967 = vmatpush3.msra.mxu0 %v2619_v60 }
 0x37e   : > { %5895 = vmatprep.mubr.f32.mxu1 %v2307_v48  ;;  %5928 = vmatpush3.msra.mxu1 %v2636_v57 }
 0x37f   : > { %5929 = vmatprep.subr.mxu1 %v8112_v0  ;;  %5968 = vmatprep.subr.mxu0 %v8112_v0 }
 0x380   : > { %5930 = vmatpush3.msra.mxu1 %v2635_v59  ;;  %5969 = vmatpush3.msra.mxu0 %v2618_v63 }
 0x381   : > { %5896 = vmatmul.mubr.f32.gmra.mxu1 %v2308_v49  ;;  %5931 = vmatprep.subr.mxu1 %v8112_v0 }
 0x382   : > { %5939 = vmatprep.mubr.msk.f32.mxu1 %vm6416_vm4, %v8112_v0  ;;  %5932 = vmatpush3.msra.mxu1 %v2634_v62 }
 0x383   : > { %5933 = vmatprep.subr.mxu1 %v8112_v0  ;;  %6016 = vmatprep.subr.mxu0 %v8112_v0 }
 0x384   : > { %5934 = vmatpush3.msra.mxu1 %v2633_v1 }
 0x385   : > { %5935 = vmatprep.subr.mxu1 %v8112_v0 }
 0x386   : > { %5936 = vmatpush3.msra.mxu1 %v2632_v2 }
 0x387   : > { %5937 = vmatprep.subr.mxu1 %v8112_v0 }
 0x388   : > { %5938 = vmatpush3.msra.mxu1 %v2631_v61 }
 0x389   : > { %5985 = vmatprep.subr.mxu1 %v8112_v0 }
 0x395   : > { %v7327_v4 = vpop.f32.mrf.mxu0 }
 0x397   : > { %v7329_v6 = vpop.f32.mrf.mxu0 }
 0x39f   : > { %v7331_v8 = vpop.f32.mrf.mxu0 }
 0x3a1   : > { %v5536_v7 = vpop.f32.mrf.mxu1  ;;  %v7335_v10 = vpop.f32.mrf.mxu0 }
 0x3a2   : > { %v1446_v61 = vadd.f32 %v7327_v4, %v5536_v7 }
 0x3a3   : > { %v7333_v9 = vpop.f32.mrf.mxu1 }
 0x3a9   : > { %v7337_v13 = vpop.f32.mrf.mxu1 }
 0x3ab   : > { %v7339_v14 = vpop.f32.mrf.mxu0  ;;  %v7341_v15 = vpop.f32.mrf.mxu1 }
 0x3ac   : > { %v1451_v7 = vadd.f32 %v7335_v10, %v7341_v15  ;;  %v2983_v10 = vld [vmem:[%s8109_s7 + $0x570] sm:$0xff] }
 0x3ad   : > { %v7343_v16 = vpop.f32.mrf.mxu0 }
 0x3b1   : > { %v7345_v17 = vpop.f32.mrf.mxu1 }
 0x3b3   : > { %v7349_v19 = vpop.f32.mrf.mxu1 }
 0x3b4   : > { %v1461_v15 = vadd.f32 %v7343_v16, %v7349_v19 }
 0x3b6   : > { %v7347_v18 = vpop.f32.mrf.mxu0 }
 0x3b7   : > { %v7353_v21 = vpop.f32.mrf.mxu1 }
 0x3b8   : > { %v7351_v20 = vpop.f32.mrf.mxu0 }
 0x3b9   : > { %v7357_v3 = vpop.f32.mrf.mxu1 }
 0x3bf   : > { %v7355_v22 = vpop.f32.mrf.mxu0 }
 0x3c1   : > { %v7359_v5 = vpop.f32.mrf.mxu0 }
 0x3c4   : > { %v5624_v23 = vpop.f32.mrf.mxu1  ;;  %v7361_v24 = vpop.f32.mrf.mxu0 }
 0x3c6   : > { %v1569_v11 = vpop.f32.mrf.mxu1  ;;  %v7363_v12 = vpop.f32.mrf.mxu0 }
 0x3ca   : > { %v5627_v25 = vpop.f32.mrf.mxu1  ;;  %v7365_v26 = vpop.f32.mrf.mxu0 }
 0x3cc   : > { %v1579_v27 = vpop.f32.mrf.mxu1  ;;  %v7367_v28 = vpop.f32.mrf.mxu0 }
 0x3d0   : > { %v7369_v29 = vpop.f32.mrf.mxu1  ;;  %v7371_v30 = vpop.f32.mrf.mxu0 }
 0x3d2   : > { %v7373_v31 = vpop.f32.mrf.mxu1  ;;  %v7375_v32 = vpop.f32.mrf.mxu0 }
 0x3d3   : > { %v1612_v16 = vadd.f32 %v7373_v31, %v1461_v15 }
 0x3d6   : > { %v7379_v34 = vpop.f32.mrf.mxu1 }
 0x3d8   : > { %v7383_v36 = vpop.f32.mrf.mxu1 }
 0x3e7   : > { %v7377_v33 = vpop.f32.mrf.mxu0 }
 0x3e9   : > { %v7381_v35 = vpop.f32.mrf.mxu0 }
 0x3ec   : > { %v5712_v37 = vpop.f32.mrf.mxu1  ;;  %v7385_v38 = vpop.f32.mrf.mxu0 }
 0x3ee   : > { %v1843_v39 = vpop.f32.mrf.mxu1  ;;  %v7387_v40 = vpop.f32.mrf.mxu0 }
 0x3f2   : > { %v7389_v41 = vpop.f32.mrf.mxu1  ;;  %v7391_v42 = vpop.f32.mrf.mxu0 }
 0x3f4   : > { %v7393_v43 = vpop.f32.mrf.mxu1  ;;  %v7395_v44 = vpop.f32.mrf.mxu0 }
 0x3f8   : > { %v7397_v45 = vpop.f32.mrf.mxu1  ;;  %v7399_v46 = vpop.f32.mrf.mxu0 }
 0x3f9   : > { %8116 = vst [vmem:[#allocation11_spill] sm:$0xff] %v7399_v46 }
 0x3fa   : > { %v7401_v47 = vpop.f32.mrf.mxu1  ;;  %v7403_v48 = vpop.f32.mrf.mxu0 }
 0x3fb   : > { %8117 = vst [vmem:[#allocation12_spill] sm:$0xff] %v7403_v48  ;;  %v1609_v48 = vadd.f32 %v5624_v23, %v1446_v61  ;;  %v1610_v23 = vadd.f32 %v1579_v27, %v1451_v7 }
 0x3fe   : > { %v7407_v50 = vpop.f32.mrf.mxu1 }
 0x400   : > { %v7413_v53 = vpop.f32.mrf.mxu1 }
 0x40f   : > { %v7405_v49 = vpop.f32.mrf.mxu0 }
 0x411   : > { %v7409_v51 = vpop.f32.mrf.mxu0 }
 0x413   : > { %v7411_v52 = vpop.f32.mrf.mxu0 }
 0x414   : > { %8118 = vst [vmem:[#allocation13_spill] sm:$0xff] %v7411_v52  ;;  %v7417_v55 = vpop.f32.mrf.mxu1 }
 0x415   : > { %v7415_v54 = vpop.f32.mrf.mxu0 }
 0x416   : > { %8119 = vst [vmem:[#allocation14_spill] sm:$0xff] %v7415_v54  ;;  %v7423_v58 = vpop.f32.mrf.mxu1 }
 0x417   : > { %v7419_v56 = vpop.f32.mrf.mxu0 }
 0x418   : > { %8120 = vst [vmem:[#allocation15_spill] sm:$0xff] %v7419_v56 }
 0x419   : > { %v7421_v57 = vpop.f32.mrf.mxu0  ;;  %v7429_v62 = vpop.f32.mrf.mxu1 }
 0x41a   : > { %8121 = vst [vmem:[#allocation16_spill] sm:$0xff] %v7421_v57  ;;  %v1441_v57 = vadd.f32 %v7329_v6, %v7333_v9  ;;  %v2984_v6 = vld [vmem:[%s8109_s7 + $0x578] sm:$0xff] }
 0x41b   : > { %v7425_v59 = vpop.f32.mrf.mxu0  ;;  %v7433_v0 = vpop.f32.mrf.mxu1 }
 0x41c   : > { %8122 = vst [vmem:[#allocation17_spill] sm:$0xff] %v7425_v59  ;;  %v1608_v46 = vadd.f32 %v1569_v11, %v1441_v57 }
 0x41d   : > { %v7427_v60 = vpop.f32.mrf.mxu0 }
 0x41e   : > { %8123 = vst [vmem:[#allocation18_spill] sm:$0xff] %v7427_v60  ;;  %v1456_v60 = vadd.f32 %v7331_v8, %v7337_v13  ;;  %v1466_v8 = vadd.f32 %v7339_v14, %v7345_v17 }
 0x41f   : > { %v2564_v63 = vpop.f32.mrf.mxu0 }
 0x420   : > { %v2598_v1 = vmax.f32 %v2564_v63, 0.0  ;;  %v7440_v63 = vpop.f32.mrf.mxu1 }
 0x421   : > { %v5904_v2 = vpop.f32.mrf.mxu0 }
 0x422   : > { %2606 = vst.msk [vmem:[#allocation3] sm:$0xff] %vm2605_vm6, %v2598_v1  ;;  %v1611_v1 = vadd.f32 %v5627_v25, %v1456_v60  ;;  %v1746_v2 = vadd.f32 %v7355_v22, %v1609_v48  ;;  %v1613_v22 = vadd.f32 %v7369_v29, %v1466_v8  ;;  %v7459_v14 = vpop.f32.mrf.mxu1  ;;  %v8124_v25 = vmov 0.0  }
 0x423   : > { %v2569_v56 = vpop.f32.mrf.mxu0 }
 0x424   : > { %v2599_v59 = vmax.f32 %v2569_v56, 0.0  ;;  %v1883_v11 = vadd.f32 %v5712_v37, %v1746_v2  ;;  %v1748_v27 = vadd.f32 %v7361_v24, %v1611_v1  ;;  %v1747_v24 = vadd.f32 %v7363_v12, %v1610_v23 }
 0x425   : > { %v5907_v54 = vpop.f32.mrf.mxu0  ;;  %v1750_v12 = vadd.f32 %v7365_v26, %v1613_v22 }
 0x426   : > { %2607 = vst.msk [vmem:[#allocation3 + $0x8] sm:$0xff] %vm2605_vm6, %v2599_v59  ;;  %v1745_v54 = vadd.f32 %v7359_v5, %v1608_v46  ;;  %v1476_v46 = vadd.f32 %v7347_v18, %v7353_v21  ;;  %v2020_v56 = vadd.f32 %v7377_v33, %v1883_v11  ;;  %v2861_v18 = vld [vmem:[%s8109_s7 + $0x538] sm:$0xff]  ;;  %v1471_v21 = vadd.f32 %v7351_v20, %v7357_v3  ;;  %v2981_v20 = vld [vmem:[%s8109_s7 + $0x560] sm:$0xff] }
 0x427   : > { %v2574_v4 = vpop.f32.mrf.mxu0  ;;  %v1884_v57 = vadd.f32 %v7393_v43, %v1747_v24  ;;  %v1887_v26 = vadd.f32 %v7397_v45, %v1750_v12 }
 0x428   : > { %v2600_v52 = vmax.f32 %v2574_v4, 0.0  ;;  %v1882_v5 = vadd.f32 %v1843_v39, %v1745_v54  ;;  %v1885_v39 = vadd.f32 %v7389_v41, %v1748_v27  ;;  %v1615_v31 = vadd.f32 %v7379_v34, %v1476_v46  ;;  %v7487_v41 = vpop.f32.mrf.mxu1 }
 0x429   : > { %v5910_v9 = vpop.f32.mrf.mxu0  ;;  %v2613_v13 = vld [vmem:[#allocation3] sm:$0xff]  ;;  %v2157_v59 = vadd.f32 %v7417_v55, %v2020_v56  ;;  %v1614_v3 = vadd.f32 %v7383_v36, %v1471_v21  ;;  %v1749_v34 = vadd.f32 %v7367_v28, %v1612_v16  ;;  %v2860_v28 = vld [vmem:[%s8109_s7 + $0x530] sm:$0xff]  ;;  %v2024_v23 = vadd.f32 %v7391_v42, %v1887_v26  ;;  %v8126_v16 = vld [vmem:[#allocation11_spill] sm:$0xff] }
 0x42a   : > { %2608 = vst.msk [vmem:[#allocation3 + $0x10] sm:$0xff] %vm2605_vm6, %v2600_v52  ;;  %5971 = vmatmul.mubr.msk.f32.vlgmr.msra.gmra.mxu0 %vm2605_vm6, %v2613_v13  ;;  %v2982_v52 = vld [vmem:[%s8109_s7 + $0x568] sm:$0xff]  ;;  %v2019_v60 = vadd.f32 %v7381_v35, %v1882_v5  ;;  %v2022_v7 = vadd.f32 %v7385_v38, %v1885_v39  ;;  %v1752_v36 = vadd.f32 %v7371_v30, %v1615_v31  ;;  %v7520_v1 = vpop.f32.mrf.mxu1  ;;  %v2980_v38 = vld [vmem:[%s8109_s7 + $0x558] sm:$0xff]  ;;  %v7529_v9 = vld [vmem:[#allocation7] ss:$0 sm:$0xff] }
 0x42b   : > { %v2579_v17 = vpop.f32.mrf.mxu0  ;;  %6017 = vmatpush3.msra.mxu0 %v2984_v6  ;;  %5973 = vmatprep.mubr.msk.f32.mxu0 %vm6416_vm4, %v8124_v25  ;;  %v1886_v45 = vadd.f32 %v7401_v47, %v1749_v34  ;;  %v2021_v6 = vadd.f32 %v7387_v40, %v1884_v57  ;;  %v2294_v8 = vadd.f32 %v7405_v49, %v2157_v59  ;;  %v8127_v31 = vld [vmem:[#allocation14_spill] sm:$0xff] }
 0x42c   : > { %v2601_v37 = vmax.f32 %v2579_v17, 0.0  ;;  %6018 = vmatprep.subr.mxu0 %v8124_v25  ;;  %v2156_v35 = vadd.f32 %v7423_v58, %v2019_v60  ;;  %v2159_v2 = vadd.f32 %v7429_v62, %v2022_v7  ;;  %v1751_v47 = vadd.f32 %v7375_v32, %v1614_v3  ;;  %v2859_v62 = vld [vmem:[%s8109_s7 + $0x528] sm:$0xff] }
 0x42d   : > { %v5913_v19 = vpop.f32.mrf.mxu0  ;;  %v2626_v29 = vld [vmem:[#allocation3 + $0x1] sm:$0xff]  ;;  %6019 = vmatpush3.msra.mxu0 %v2983_v10  ;;  %v1889_v13 = vadd.f32 %v7407_v50, %v1752_v36  ;;  %v2158_v32 = vadd.f32 %v7433_v0, %v2021_v6  ;;  %v2979_v50 = vld [vmem:[%s8109_s7 + $0x550] sm:$0xff]  ;;  %v2161_v22 = vadd.f32 %v7440_v63, %v2024_v23  ;;  %v2023_v17 = vadd.f32 %v7395_v44, %v1886_v45  ;;  %v8129_v60 = vld [vmem:[#allocation15_spill] sm:$0xff] }
 0x42e   : > { %v7468_v48 = vld [vmem:[#allocation3 + $0x8] sm:$0xff]  ;;  %2609 = vst.msk [vmem:[#allocation3 + $0x18] sm:$0xff] %vm2605_vm6, %v2601_v37  ;;  %5940 = vmatmul.mubr.msk.f32.vlgmr.msra.gmra.mxu1 %vm2605_vm6, %v2626_v29  ;;  %6020 = vmatprep.subr.mxu0 %v8124_v25  ;;  %v2293_v42 = vadd.f32 %v7409_v51, %v2156_v35  ;;  %v1888_v15 = vadd.f32 %v7413_v53, %v1751_v47  ;;  %v8125_v37 = vld [vmem:[#allocation13_spill] sm:$0xff]  ;;  %v8130_v7 = vld [vmem:[#allocation16_spill] sm:$0xff] }
 0x42f   : > { %5974 = vmatmul.mubr.msk.f32.gmra.mxu0 %vm2605_vm6, %v7468_v48  ;;  %v2584_v33 = vpop.f32.mrf.mxu0  ;;  %5942 = vmatprep.mubr.msk.f32.mxu1 %vm6416_vm4, %v8124_v25  ;;  %v2296_v46 = vadd.f32 %v8125_v37, %v2159_v2  ;;  %v2858_v53 = vld [vmem:[%s8109_s7 + $0x520] sm:$0xff]  ;;  %v2160_v63 = vadd.f32 %v7459_v14, %v2023_v17  ;;  %v2026_v19 = vadd.f32 %v8126_v16, %v1889_v13  ;;  %v2978_v14 = vld [vmem:[%s8109_s7 + $0x548] sm:$0xff]  ;;  %v8131_v13 = vld [vmem:[#allocation17_spill] sm:$0xff] }
 0x430   : > { %v2602_v61 = vmax.f32 %v2584_v33, 0.0  ;;  %6021 = vmatpush3.msra.mxu0 %v2982_v52  ;;  %5976 = vmatprep.mubr.msk.f32.mxu0 %vm6416_vm4, %v8124_v25  ;;  %v2295_v12 = vadd.f32 %v8127_v31, %v2158_v32  ;;  %v8128_v33 = vld [vmem:[#allocation12_spill] sm:$0xff]  ;;  %v2977_v36 = vld [vmem:[%s8109_s7 + $0x540] sm:$0xff]  ;;  %v3230_v32 = vld [vmem:[%s8109_s7 + $0x5f8] sm:$0xff] }
 0x431   : > { %v5916_v43 = vpop.f32.mrf.mxu0  ;;  %v7503_v4 = vld [vmem:[#allocation3 + $0x9] sm:$0xff]  ;;  %6022 = vmatprep.subr.mxu0 %v8124_v25  ;;  %5986 = vmatpush3.msra.mxu1 %v2861_v18  ;;  %v2025_v57 = vadd.f32 %v8128_v33, %v1888_v15  ;;  %v2163_v3 = vadd.f32 %v7487_v41, %v2026_v19  ;;  %v2856_v41 = vld [vmem:[%s8109_s7 + $0x510] sm:$0xff] }
 0x432   : > { %v7505_v55 = vld [vmem:[#allocation3 + $0x10] sm:$0xff]  ;;  %2610 = vst.msk [vmem:[#allocation3 + $0x20] sm:$0xff] %vm2605_vm6, %v2602_v61  ;;  %5943 = vmatmul.mubr.msk.f32.gmra.mxu1 %vm2605_vm6, %v7503_v4  ;;  %6023 = vmatpush3.msra.mxu0 %v2981_v20  ;;  %v2298_v61 = vadd.f32 %v8129_v60, %v2161_v22  ;;  %v2857_v20 = vld [vmem:[%s8109_s7 + $0x518] sm:$0xff]  ;;  %v2854_v17 = vld [vmem:[%s8109_s7 + $0x500] sm:$0xff] }
 0x433   : > { %5977 = vmatmul.mubr.msk.f32.gmra.mxu0 %vm2605_vm6, %v7505_v55  ;;  %v2589_v58 = vpop.f32.mrf.mxu0  ;;  %5987 = vmatprep.subr.mxu1 %v8124_v25  ;;  %v2162_v45 = vadd.f32 %v7520_v1, %v2025_v57  ;;  %v2300_v23 = vadd.f32 %v8131_v13, %v2163_v3  ;;  %v8132_v15 = vld [vmem:[#allocation18_spill] sm:$0xff]  ;;  %v3229_v37 = vld [vmem:[%s8109_s7 + $0x5f0] sm:$0xff]  ;;  %v3228_v16 = vld [vmem:[%s8109_s7 + $0x5e8] sm:$0xff] }
 0x434   : > { %v2603_v30 = vmax.f32 %v2589_v58, 0.0  ;;  %6024 = vmatprep.subr.mxu0 %v8124_v25  ;;  %5945 = vmatprep.mubr.msk.f32.mxu1 %vm6416_vm4, %v8124_v25  ;;  %v3105_v31 = vld [vmem:[%s8109_s7 + $0x5a8] sm:$0xff]  ;;  %v3104_v33 = vld [vmem:[%s8109_s7 + $0x5a0] sm:$0xff] }
 0x435   : > { %v5888_v11 = vpop.f32.mrf.mxu1  ;;  %5979 = vmatprep.mubr.msk.f32.mxu0 %vm6416_vm4, %v8124_v25  ;;  %5988 = vmatpush3.msra.mxu1 %v2860_v28  ;;  %v7539_v40 = vld [vmem:[#allocation3 + $0x11] sm:$0xff]  ;;  %v5919_v54 = vpop.f32.mrf.mxu0  ;;  %v2297_v28 = vadd.f32 %v8130_v7, %v2160_v63  ;;  %v2299_v22 = vadd.f32 %v8132_v15, %v2162_v45  ;;  %v3223_v3 = vld [vmem:[%s8109_s7 + $0x5c0] sm:$0xff] }
 0x436   : > { %v7541_v49 = vld [vmem:[#allocation3 + $0x18] sm:$0xff]  ;;  %v2431_v10 = vadd.f32 %v5888_v11, %v2294_v8  ;;  %2611 = vst.msk [vmem:[#allocation3 + $0x28] sm:$0xff] %vm2605_vm6, %v2603_v30  ;;  %6025 = vmatpush3.msra.mxu0 %v2980_v38  ;;  %5946 = vmatmul.mubr.msk.f32.gmra.mxu1 %vm2605_vm6, %v7539_v40  ;;  %v2855_v11 = vld [vmem:[%s8109_s7 + $0x508] sm:$0xff]  ;;  %v3735_v13 = vld [vmem:[%s412_s14] sm:$0x7f] }
 0x437   : > { %v2391_v0 = vpop.f32.mrf.mxu1  ;;  %5980 = vmatmul.mubr.msk.f32.gmra.mxu0 %vm2605_vm6, %v7541_v49  ;;  %5989 = vmatprep.subr.mxu1 %v8124_v25  ;;  %v2594_v51 = vpop.f32.mrf.mxu0  ;;  %v7642_v63 = vld [vmem:[#allocation3 + $0xf] sm:$0xff]  ;;  %v3475_v7 = vld [vmem:[%s8109_s7 + $0x670] sm:$0xff] }
 0x438   : > { %v2444_v5 = vadd.f32 %v7529_v9, %v2431_v10  ;;  %v2430_v27 = vadd.f32 %v2391_v0, %v2293_v42  ;;  %5990 = vmatpush3.msra.mxu1 %v2859_v62  ;;  %6026 = vmatprep.subr.mxu0 %v8124_v25  ;;  %v2604_v44 = vmax.f32 %v2594_v51, 0.0  ;;  %v2972_v62 = vld [vmem:[#allocation3 + $0x7] sm:$0xff]  ;;  %v3224_v57 = vld [vmem:[%s8109_s7 + $0x5c8] sm:$0xff]  ;;  %v3471_v45 = vld [vmem:[%s8109_s7 + $0x650] sm:$0xff] }
 0x439   : > { %v5891_v29 = vpop.f32.mrf.mxu1  ;;  %5991 = vmatprep.subr.mxu1 %v8124_v25  ;;  %6027 = vmatpush3.msra.mxu0 %v2979_v50  ;;  %v7569_v52 = vld [vmem:[#allocation3 + $0x19] sm:$0xff]  ;;  %v5922_v24 = vpop.f32.mrf.mxu0  ;;  %v2630_v47 = vld [vmem:[#allocation3 + $0x21] sm:$0x7] }
 0x43a   : > { %v2617_v39 = vld [vmem:[#allocation3 + $0x20] sm:$0x7]  ;;  %v2452_v56 = vmax.f32 %v2444_v5, 0.0  ;;  %v2443_v18 = vadd.f32 %v7529_v9, %v2430_v27  ;;  %v2433_v21 = vadd.f32 %v5891_v29, %v2296_v46  ;;  %5948 = vmatprep.mubr.msk.f32.mxu1 %vm6416_vm4, %v8124_v25  ;;  %5982 = vmatprep.mubr.msk.f32.mxu0 %vm6416_vm4, %v8124_v25  ;;  %2612 = vst.msk [vmem:[#allocation3 + $0x30] sm:$0xff] %vm2605_vm6, %v2604_v44  ;;  %v2850_v29 = vld [vmem:[#allocation3 + $0xa] sm:$0xff] }
 0x43b   : > { %v2401_v59 = vpop.f32.mrf.mxu1  ;;  %5992 = vmatpush3.msra.mxu1 %v2858_v53  ;;  %6028 = vmatprep.subr.mxu0 %v8124_v25  ;;  %v2849_v44 = vld [vmem:[#allocation3 + $0x2] sm:$0xff] }
 0x43c   : > { %2460 = vst [vmem:[%s6527_s29 + $0x108] sm:$0xff] %v2452_v56  ;;  %v2451_v26 = vmax.f32 %v2443_v18, 0.0  ;;  %v2446_v34 = vadd.f32 %v7529_v9, %v2433_v21  ;;  %v2432_v43 = vadd.f32 %v2401_v59, %v2295_v12  ;;  %5949 = vmatmul.mubr.msk.f32.gmra.mxu1 %vm2605_vm6, %v7569_v52  ;;  %5983 = vmatmul.mubr.msk.f32.gmra.mxu0 %vm2605_vm6, %v2617_v39  ;;  %v7660_v39 = vld [vmem:[#allocation3 + $0x17] sm:$0xff]  ;;  %v3227_v24 = vld [vmem:[%s8109_s7 + $0x5e0] sm:$0xff]  ;;  %v3226_v18 = vld [vmem:[%s8109_s7 + $0x5d8] sm:$0xff] }
 0x43d   : > { %5993 = vmatprep.subr.mxu1 %v8124_v25  ;;  %6029 = vmatpush3.msra.mxu0 %v2978_v14  ;;  %v5894_v35 = vpop.f32.mrf.mxu1  ;;  %v3106_v56 = vld [vmem:[%s8109_s7 + $0x5b0] sm:$0xff]  ;;  %v2976_v60 = vld [vmem:[#allocation3 + $0x27] sm:$0x7] }
 0x43e   : > { %2459 = vst [vmem:[%s6527_s29 + $0x100] sm:$0xff] %v2451_v26  ;;  %v2454_v58 = vmax.f32 %v2446_v34, 0.0  ;;  %v2445_v38 = vadd.f32 %v7529_v9, %v2432_v43  ;;  %v2435_v2 = vadd.f32 %v5894_v35, %v2298_v61  ;;  %5994 = vmatpush3.msra.mxu1 %v2857_v20  ;;  %6030 = vmatprep.subr.mxu0 %v8124_v25  ;;  %v2851_v21 = vld [vmem:[#allocation3 + $0x12] sm:$0xff]  ;;  %v7686_v12 = vld [vmem:[#allocation3 + $0x1f] sm:$0xff]  ;;  %v3100_v35 = vld [vmem:[%s8109_s7 + $0x580] sm:$0xff] }
 0x43f   : > { %5995 = vmatprep.subr.mxu1 %v8124_v25  ;;  %v2411_v6 = vpop.f32.mrf.mxu1  ;;  %5951 = vmatprep.mubr.msk.f32.mxu1 %vm6416_vm4, %v8124_v25  ;;  %v3225_v14 = vld [vmem:[%s8109_s7 + $0x5d0] sm:$0xff]  ;;  %v3103_v61 = vld [vmem:[%s8109_s7 + $0x598] sm:$0xff]  ;;  %v3101_v34 = vld [vmem:[%s8109_s7 + $0x588] sm:$0xff] }
 0x440   : > { %2462 = vst [vmem:[%s6527_s29 + $0x118] sm:$0xff] %v2454_v58  ;;  %v2453_v8 = vmax.f32 %v2445_v38, 0.0  ;;  %v2448_v30 = vadd.f32 %v7529_v9, %v2435_v2  ;;  %v2434_v1 = vadd.f32 %v2411_v6, %v2297_v28  ;;  %5996 = vmatpush3.msra.mxu1 %v2856_v41  ;;  %6031 = vmatpush3.msra.mxu0 %v2977_v36  ;;  %v2852_v59 = vld [vmem:[#allocation3 + $0x1a] sm:$0xff]  ;;  %v2853_v26 = vld [vmem:[#allocation3 + $0x22] sm:$0x7]  ;;  %v3350_v58 = vld [vmem:[%s8109_s7 + $0x620] sm:$0xff] }
 0x441   : > { %6032 = vmatprep.mubr.msk.f32.mxu0 %vm6416_vm4, %v8124_v25  ;;  %5952 = vmatmul.mubr.msk.f32.gmra.mxu1 %vm2605_vm6, %v2630_v47  ;;  %v5897_v54 = vpop.f32.mrf.mxu1  ;;  %v3102_v20 = vld [vmem:[%s8109_s7 + $0x590] sm:$0xff]  ;;  %v3476_v43 = vld [vmem:[%s8109_s7 + $0x678] sm:$0xff]  ;;  %v3470_v38 = vld [vmem:[%s8109_s7 + $0x648] sm:$0xff] }
 0x442   : > { %2461 = vst [vmem:[%s6527_s29 + $0x110] sm:$0xff] %v2453_v8  ;;  %v2456_v10 = vmax.f32 %v2448_v30, 0.0  ;;  %v2447_v42 = vadd.f32 %v7529_v9, %v2434_v1  ;;  %5997 = vmatprep.subr.mxu1 %v8124_v25  ;;  %6033 = vmatmul.mubr.msk.f32.vlgmr.msra.gmra.mxu0 %vm2605_vm6, %v2972_v62  ;;  %v2437_v50 = vadd.f32 %v5897_v54, %v2300_v23  ;;  %v3352_v28 = vld [vmem:[%s8109_s7 + $0x630] sm:$0xff]  ;;  %v3472_v41 = vld [vmem:[%s8109_s7 + $0x658] sm:$0xff]  ;;  %v3222_v6 = vld [vmem:[#allocation3 + $0x29] sm:$0x7] }
 0x443   : > { %6078 = vmatprep.subr.mxu0 %v8124_v25  ;;  %5998 = vmatpush3.msra.mxu1 %v2855_v11  ;;  %v2421_v0 = vpop.f32.mrf.mxu1  ;;  %v3221_v36 = vld [vmem:[#allocation3 + $0x21] sm:$0xff]  ;;  %v3348_v30 = vld [vmem:[%s8109_s7 + $0x610] sm:$0xff]  ;;  %v3347_v23 = vld [vmem:[%s8109_s7 + $0x608] sm:$0xff] }
 0x444   : > { %2464 = vst [vmem:[%s6527_s29 + $0x128] sm:$0xff] %v2456_v10  ;;  %v2455_v51 = vmax.f32 %v2447_v42, 0.0  ;;  %v2450_v5 = vadd.f32 %v7529_v9, %v2437_v50  ;;  %6079 = vmatpush3.msra.mxu0 %v3230_v32  ;;  %5999 = vmatprep.subr.mxu1 %v8124_v25  ;;  %v2436_v27 = vadd.f32 %v2421_v0, %v2299_v22  ;;  %v7808_v2 = vld [vmem:[#allocation3 + $0x20] sm:$0xff]  ;;  %v3469_v1 = vld [vmem:[%s8109_s7 + $0x640] sm:$0xff]  ;;  %v3342_v32 = vld [vmem:[#allocation3 + $0x16] sm:$0xff] }
 0x445   : > { %6000 = vmatpush3.msra.mxu1 %v2854_v17  ;;  %6001 = vmatprep.mubr.msk.f32.mxu1 %vm6416_vm4, %v8124_v25  ;;  %v3349_v8 = vld [vmem:[%s8109_s7 + $0x618] sm:$0xff]  ;;  %v3099_v47 = vld [vmem:[#allocation3 + $0x28] sm:$0x7]  ;;  %v3341_v62 = vld [vmem:[#allocation3 + $0xe] sm:$0xff] }
 0x446   : > { %2463 = vst [vmem:[%s6527_s29 + $0x120] sm:$0xff] %v2455_v51  ;;  %v2458_v46 = vmax.f32 %v2450_v5, 0.0  ;;  %v2449_v53 = vadd.f32 %v7529_v9, %v2436_v27  ;;  %6035 = vmatprep.mubr.msk.f32.mxu0 %vm6416_vm4, %v8124_v25  ;;  %6080 = vmatprep.subr.mxu0 %v8124_v25  ;;  %v3107_v9 = vld [vmem:[%s8109_s7 + $0x5b8] sm:$0xff]  ;;  %v3346_v11 = vld [vmem:[%s8109_s7 + $0x600] sm:$0xff]  ;;  %v3598_v10 = vld [vmem:[%s8109_s7 + $0x6b0] sm:$0xff] }
 0x447   : > { %6002 = vmatmul.mubr.msk.f32.vlgmr.msra.gmra.mxu1 %vm2605_vm6, %v2849_v44  ;;  %6036 = vmatmul.mubr.msk.f32.gmra.mxu0 %vm2605_vm6, %v7642_v63  ;;  %v3599_v54 = vld [vmem:[%s8109_s7 + $0x6b8] sm:$0xff]  ;;  %v3597_v42 = vld [vmem:[%s8109_s7 + $0x6a8] sm:$0xff]  ;;  %v3596_v22 = vld [vmem:[%s8109_s7 + $0x6a0] sm:$0xff] }
 0x448   : > { %2466 = vst [vmem:[%s6527_s29 + $0x138] sm:$0x7f] %v2458_v46  ;;  %v2457_v19 = vmax.f32 %v2449_v53, 0.0  ;;  %6081 = vmatpush3.msra.mxu0 %v3229_v37  ;;  %6004 = vmatprep.mubr.msk.f32.mxu1 %vm6416_vm4, %v8124_v25  ;;  %v3343_v50 = vld [vmem:[#allocation3 + $0x1e] sm:$0xff]  ;;  %v3467_v15 = vld [vmem:[#allocation3 + $0x27] sm:$0xff]  ;;  %v3732_v37 = vld [vmem:[#allocation5 + $0x98] sm:$0xff] }
 0x449   : > { %6082 = vmatprep.subr.mxu0 %v8124_v25  ;;  %6038 = vmatprep.mubr.msk.f32.mxu0 %vm6416_vm4, %v8124_v25  ;;  %v3595_v17 = vld [vmem:[%s8109_s7 + $0x698] sm:$0xff]  ;;  %v3468_v51 = vld [vmem:[#allocation3 + $0x2f] sm:$0x7]  ;;  %v3594_v5 = vld [vmem:[%s8109_s7 + $0x690] sm:$0xff] }
 0x44a   : > { %2465 = vst [vmem:[%s6527_s29 + $0x130] sm:$0xff] %v2457_v19  ;;  %6083 = vmatpush3.msra.mxu0 %v3228_v16  ;;  %6047 = vmatprep.subr.mxu1 %v8124_v25  ;;  %v3344_v0 = vld [vmem:[#allocation3 + $0x26] sm:$0xff]  ;;  %v3593_v46 = vld [vmem:[%s8109_s7 + $0x688] sm:$0xff] }
 0x44b   : > { %6005 = vmatmul.mubr.msk.f32.gmra.mxu1 %vm2605_vm6, %v2850_v29  ;;  %6039 = vmatmul.mubr.msk.f32.gmra.mxu0 %vm2605_vm6, %v7660_v39  ;;  %v3731_v27 = vld [vmem:[#allocation5 + $0x90] sm:$0xff]  ;;  %v3734_v16 = vld [vmem:[#allocation5 + $0xa8] sm:$0xff] }
 0x44c   : > { %6084 = vmatprep.subr.mxu0 %v8124_v25  ;;  %6048 = vmatpush3.msra.mxu1 %v3107_v9  ;;  %v3345_v53 = vld [vmem:[#allocation3 + $0x2e] sm:$0x7]  ;;  %v3857_v9 = vld [vmem:[%s8109_s7 + $0x6f0] sm:$0xff]  ;;  %v3852_v29 = vld [vmem:[%s8109_s7 + $0x6d8] sm:$0xff] }
 0x44d   : > { %6085 = vmatpush3.msra.mxu0 %v3227_v24  ;;  %6049 = vmatprep.subr.mxu1 %v8124_v25  ;;  %v3592_v44 = vld [vmem:[%s8109_s7 + $0x680] sm:$0xff]  ;;  %v3850_v24 = vld [vmem:[%s8109_s7 + $0x6c8] sm:$0xff] }
 0x44e   : > { %6086 = vmatprep.subr.mxu0 %v8124_v25  ;;  %6007 = vmatprep.mubr.msk.f32.mxu1 %vm6416_vm4, %v8124_v25  ;;  %v3590_v19 = vld [vmem:[#allocation3 + $0x28] sm:$0xff] }
 0x44f   : > { %6041 = vmatprep.mubr.msk.f32.mxu0 %vm6416_vm4, %v8124_v25  ;;  %6050 = vmatpush3.msra.mxu1 %v3106_v56  ;;  %v3855_v56 = vld [vmem:[%s8109_s7 + $0x6e0] sm:$0xff] }
 0x450   : > { %6087 = vmatpush3.msra.mxu0 %v3226_v18  ;;  %6008 = vmatmul.mubr.msk.f32.gmra.mxu1 %vm2605_vm6, %v2851_v21  ;;  %v3849_v18 = vld [vmem:[%s8109_s7 + $0x6c0] sm:$0xff]  ;;  %v7953_v21 = vld [vmem:[%s8109_s7 + $0x718] sm:$0xff] }
 0x451   : > { %6042 = vmatmul.mubr.msk.f32.gmra.mxu0 %vm2605_vm6, %v7686_v12  ;;  %6051 = vmatprep.subr.mxu1 %v8124_v25 }
 0x452   : > { %6052 = vmatpush3.msra.mxu1 %v3105_v31  ;;  %6088 = vmatprep.subr.mxu0 %v8124_v25  ;;  %v7958_v31 = vld [vmem:[%s8109_s7 + $0x738] sm:$0xff] }
 0x453   : > { %6053 = vmatprep.subr.mxu1 %v8124_v25  ;;  %6089 = vmatpush3.msra.mxu0 %v3225_v14 }
 0x454   : > { %6010 = vmatprep.mubr.msk.f32.mxu1 %vm6416_vm4, %v8124_v25  ;;  %6044 = vmatprep.mubr.msk.f32.mxu0 %vm6416_vm4, %v8124_v25 }
 0x455   : > { %6054 = vmatpush3.msra.mxu1 %v3104_v33  ;;  %6090 = vmatprep.subr.mxu0 %v8124_v25 }
 0x456   : > { %6011 = vmatmul.mubr.msk.f32.gmra.mxu1 %vm2605_vm6, %v2852_v59  ;;  %6045 = vmatmul.mubr.msk.f32.gmra.mxu0 %vm2605_vm6, %v2976_v60 }
 0x457   : > { %6055 = vmatprep.subr.mxu1 %v8124_v25  ;;  %6091 = vmatpush3.msra.mxu0 %v3224_v57 }
 0x458   : > { %6056 = vmatpush3.msra.mxu1 %v3103_v61  ;;  %6092 = vmatprep.subr.mxu0 %v8124_v25 }
 0x459   : > { %6057 = vmatprep.subr.mxu1 %v8124_v25  ;;  %6013 = vmatprep.mubr.msk.f32.mxu1 %vm6416_vm4, %v8124_v25 }
 0x45a   : > { %6058 = vmatpush3.msra.mxu1 %v3102_v20  ;;  %6093 = vmatpush3.msra.mxu0 %v3223_v3 }
 0x45b   : > { %6094 = vmatprep.mubr.msk.f32.mxu0 %vm6416_vm4, %v8124_v25  ;;  %6014 = vmatmul.mubr.msk.f32.gmra.mxu1 %vm2605_vm6, %v2853_v26 }
 0x45c   : > { %6059 = vmatprep.subr.mxu1 %v8124_v25  ;;  %6095 = vmatmul.mubr.msk.f32.vlgmr.msra.gmra.mxu0 %vm2605_vm6, %v7503_v4  ;;  %v3474_v4 = vld [vmem:[%s8109_s7 + $0x668] sm:$0xff] }
 0x45d   : > { %6140 = vmatprep.subr.mxu0 %v8124_v25  ;;  %6060 = vmatpush3.msra.mxu1 %v3101_v34 }
 0x45e   : > { %6141 = vmatpush3.msra.mxu0 %v3476_v43  ;;  %6061 = vmatprep.subr.mxu1 %v8124_v25 }
 0x45f   : > { %6062 = vmatpush3.msra.mxu1 %v3100_v35  ;;  %6063 = vmatprep.mubr.msk.f32.mxu1 %vm6416_vm4, %v8124_v25 }
 0x460   : > { %6097 = vmatprep.mubr.msk.f32.mxu0 %vm6416_vm4, %v8124_v25  ;;  %6142 = vmatprep.subr.mxu0 %v8124_v25 }
 0x461   : > { %6064 = vmatmul.mubr.msk.f32.vlgmr.msra.gmra.mxu1 %vm2605_vm6, %v7468_v48  ;;  %6098 = vmatmul.mubr.msk.f32.gmra.mxu0 %vm2605_vm6, %v7539_v40  ;;  %v3353_v48 = vld [vmem:[%s8109_s7 + $0x638] sm:$0xff]  ;;  %v3473_v40 = vld [vmem:[%s8109_s7 + $0x660] sm:$0xff] }
 0x462   : > { %6143 = vmatpush3.msra.mxu0 %v3475_v7  ;;  %6066 = vmatprep.mubr.msk.f32.mxu1 %vm6416_vm4, %v8124_v25 }
 0x463   : > { %6144 = vmatprep.subr.mxu0 %v8124_v25  ;;  %6100 = vmatprep.mubr.msk.f32.mxu0 %vm6416_vm4, %v8124_v25 }
 0x464   : > { %6145 = vmatpush3.msra.mxu0 %v3474_v4  ;;  %6109 = vmatprep.subr.mxu1 %v8124_v25 }
 0x465   : > { %6067 = vmatmul.mubr.msk.f32.gmra.mxu1 %vm2605_vm6, %v7505_v55  ;;  %6101 = vmatmul.mubr.msk.f32.gmra.mxu0 %vm2605_vm6, %v7569_v52  ;;  %v3351_v52 = vld [vmem:[%s8109_s7 + $0x628] sm:$0xff] }
 0x466   : > { %6146 = vmatprep.subr.mxu0 %v8124_v25  ;;  %6110 = vmatpush3.msra.mxu1 %v3353_v48 }
 0x467   : > { %6147 = vmatpush3.msra.mxu0 %v3473_v40  ;;  %6111 = vmatprep.subr.mxu1 %v8124_v25 }
 0x468   : > { %6148 = vmatprep.subr.mxu0 %v8124_v25  ;;  %6069 = vmatprep.mubr.msk.f32.mxu1 %vm6416_vm4, %v8124_v25 }
 0x469   : > { %6103 = vmatprep.mubr.msk.f32.mxu0 %vm6416_vm4, %v8124_v25  ;;  %6112 = vmatpush3.msra.mxu1 %v3352_v28 }
 0x46a   : > { %6149 = vmatpush3.msra.mxu0 %v3472_v41  ;;  %6070 = vmatmul.mubr.msk.f32.gmra.mxu1 %vm2605_vm6, %v7541_v49 }
 0x46b   : > { %6104 = vmatmul.mubr.msk.f32.gmra.mxu0 %vm2605_vm6, %v3221_v36  ;;  %6113 = vmatprep.subr.mxu1 %v8124_v25 }
 0x46c   : > { %6114 = vmatpush3.msra.mxu1 %v3351_v52  ;;  %6150 = vmatprep.subr.mxu0 %v8124_v25 }
 0x46d   : > { %6115 = vmatprep.subr.mxu1 %v8124_v25  ;;  %6151 = vmatpush3.msra.mxu0 %v3471_v45 }
 0x46e   : > { %6072 = vmatprep.mubr.msk.f32.mxu1 %vm6416_vm4, %v8124_v25  ;;  %6106 = vmatprep.mubr.msk.f32.mxu0 %vm6416_vm4, %v8124_v25 }
 0x46f   : > { %6116 = vmatpush3.msra.mxu1 %v3350_v58  ;;  %6152 = vmatprep.subr.mxu0 %v8124_v25 }
 0x470   : > { %6073 = vmatmul.mubr.msk.f32.gmra.mxu1 %vm2605_vm6, %v7808_v2  ;;  %6107 = vmatmul.mubr.msk.f32.gmra.mxu0 %vm2605_vm6, %v3222_v6 }
 0x471   : > { %6117 = vmatprep.subr.mxu1 %v8124_v25  ;;  %6153 = vmatpush3.msra.mxu0 %v3470_v38 }
 0x472   : > { %6118 = vmatpush3.msra.mxu1 %v3349_v8  ;;  %6154 = vmatprep.subr.mxu0 %v8124_v25 }
 0x473   : > { %6119 = vmatprep.subr.mxu1 %v8124_v25  ;;  %6075 = vmatprep.mubr.msk.f32.mxu1 %vm6416_vm4, %v8124_v25 }
 0x474   : > { %6120 = vmatpush3.msra.mxu1 %v3348_v30  ;;  %6155 = vmatpush3.msra.mxu0 %v3469_v1 }
 0x475   : > { %6156 = vmatprep.mubr.msk.f32.mxu0 %vm6416_vm4, %v8124_v25  ;;  %6076 = vmatmul.mubr.msk.f32.gmra.mxu1 %vm2605_vm6, %v3099_v47 }
 0x476   : > { %6121 = vmatprep.subr.mxu1 %v8124_v25  ;;  %6157 = vmatmul.mubr.msk.f32.vlgmr.msra.gmra.mxu0 %vm2605_vm6, %v7642_v63  ;;  %v3733_v63 = vld [vmem:[#allocation5 + $0xa0] sm:$0xff] }
 0x477   : > { %6202 = vmatprep.subr.msk.mxu0 %vm3749_vm7, %v3735_v13  ;;  %6122 = vmatpush3.msra.mxu1 %v3347_v23 }
 0x478   : > { %6203 = vmatpush3.msk.msra.mxu0 %vm3749_vm7, %v3735_v13  ;;  %6123 = vmatprep.subr.mxu1 %v8124_v25 }
 0x479   : > { %6124 = vmatpush3.msra.mxu1 %v3346_v11  ;;  %6125 = vmatprep.mubr.msk.f32.mxu1 %vm6416_vm4, %v8124_v25 }
 0x47a   : > { %6159 = vmatprep.mubr.msk.f32.mxu0 %vm6416_vm4, %v8124_v25  ;;  %6126 = vmatmul.mubr.msk.f32.vlgmr.msra.gmra.mxu1 %vm2605_vm6, %v3341_v62 }
 0x47b   : > { %6160 = vmatmul.mubr.msk.f32.gmra.mxu0 %vm2605_vm6, %v7660_v39  ;;  %6128 = vmatprep.mubr.msk.f32.mxu1 %vm6416_vm4, %v8124_v25  ;;  %v3856_v39 = vld [vmem:[%s8109_s7 + $0x6e8] sm:$0xff] }
 0x47c   : > { %6162 = vmatprep.mubr.msk.f32.mxu0 %vm6416_vm4, %v8124_v25  ;;  %6171 = vmatprep.subr.mxu1 %v8124_v25 }
 0x47d   : > { %6172 = vmatpush3.msra.mxu1 %v3599_v54  ;;  %6221 = vmatprep.subr.mxu0 %v3852_v29 }
 0x47e   : > { %6129 = vmatmul.mubr.msk.f32.gmra.mxu1 %vm2605_vm6, %v3342_v32  ;;  %6173 = vmatprep.subr.mxu1 %v8124_v25 }
 0x47f   : > { %6163 = vmatmul.mubr.msk.f32.gmra.mxu0 %vm2605_vm6, %v7686_v12  ;;  %6131 = vmatprep.mubr.msk.f32.mxu1 %vm6416_vm4, %v8124_v25 }
 0x480   : > { %6165 = vmatprep.mubr.msk.f32.mxu0 %vm6416_vm4, %v8124_v25  ;;  %6174 = vmatpush3.msra.mxu1 %v3598_v10 }
 0x481   : > { %6175 = vmatprep.subr.mxu1 %v8124_v25 }
 0x482   : > { %6132 = vmatmul.mubr.msk.f32.gmra.mxu1 %vm2605_vm6, %v3343_v50 }
 0x483   : > { %6166 = vmatmul.mubr.msk.f32.gmra.mxu0 %vm2605_vm6, %v3467_v15  ;;  %6176 = vmatpush3.msra.mxu1 %v3597_v42 }
 0x484   : > { %6177 = vmatprep.subr.mxu1 %v8124_v25  ;;  %6134 = vmatprep.mubr.msk.f32.mxu1 %vm6416_vm4, %v8124_v25 }
 0x485   : > { %6168 = vmatprep.mubr.msk.f32.mxu0 %vm6416_vm4, %v8124_v25  ;;  %6178 = vmatpush3.msra.mxu1 %v3596_v22 }
 0x486   : > { %6135 = vmatmul.mubr.msk.f32.gmra.mxu1 %vm2605_vm6, %v3344_v0  ;;  %6179 = vmatprep.subr.mxu1 %v8124_v25 }
 0x487   : > { %6169 = vmatmul.mubr.msk.f32.gmra.mxu0 %vm2605_vm6, %v3468_v51  ;;  %6180 = vmatpush3.msra.mxu1 %v3595_v17 }
 0x488   : > { %6181 = vmatprep.subr.mxu1 %v8124_v25  ;;  %6137 = vmatprep.mubr.msk.f32.mxu1 %vm6416_vm4, %v8124_v25 }
 0x489   : > { %6182 = vmatpush3.msra.mxu1 %v3594_v5  ;;  %6204 = vmatprep.mubr.msk.f32.mxu0 %vm3736_vm8, %v3731_v27 }
 0x48a   : > { %6138 = vmatmul.mubr.msk.f32.gmra.mxu1 %vm2605_vm6, %v3345_v53  ;;  %6183 = vmatprep.subr.mxu1 %v8124_v25 }
 0x48b   : > { %6205 = vmatmul.mubr.msk.f32.vlgmr.msra.gmra.mxu0 %vm3736_vm8, %v3732_v37  ;;  %6184 = vmatpush3.msra.mxu1 %v3593_v46 }
 0x48c   : > { %6185 = vmatprep.subr.mxu1 %v8124_v25  ;;  %6187 = vmatprep.mubr.msk.f32.mxu1 %vm6416_vm4, %v8124_v25 }
 0x48d   : > { %6186 = vmatpush3.msra.mxu1 %v3592_v44  ;;  %6207 = vmatprep.mubr.msk.f32.mxu0 %vm3736_vm8, %v3733_v63 }
 0x48e   : > { %6188 = vmatmul.mubr.msk.f32.vlgmr.msra.gmra.mxu1 %vm2605_vm6, %v7505_v55  ;;  %v3591_v55 = vld [vmem:[#allocation3 + $0x30] sm:$0x7]  ;;  %6222 = vmatpush3.msra.mxu0 %v3852_v29 }
 0x48f   : > { %6208 = vmatmul.mubr.msk.f32.gmra.mxu0 %vm3736_vm8, %v3734_v16  ;;  %6190 = vmatprep.mubr.msk.f32.mxu1 %vm6416_vm4, %v8124_v25 }
 0x492   : > { %6191 = vmatmul.mubr.msk.f32.gmra.mxu1 %vm2605_vm6, %v7541_v49  ;;  %v3858_v49 = vld [vmem:[%s8109_s7 + $0x6f8] sm:$0xff] }
 0x493   : > { %6193 = vmatprep.mubr.msk.f32.mxu1 %vm6416_vm4, %v8124_v25  ;;  %6210 = vmatprep.subr.mxu1 %v3858_v49 }
 0x494   : > { %6211 = vmatpush3.msra.mxu1 %v3858_v49 }
 0x495   : > { %6212 = vmatprep.subr.mxu1 %v3857_v9 }
 0x496   : > { %6194 = vmatmul.mubr.msk.f32.gmra.mxu1 %vm2605_vm6, %v7808_v2 }
 0x497   : > { %6196 = vmatprep.mubr.msk.f32.mxu1 %vm6416_vm4, %v8124_v25  ;;  %6213 = vmatpush3.msra.mxu1 %v3857_v9 }
 0x498   : > { %6214 = vmatprep.subr.mxu1 %v3856_v39 }
 0x499   : > { %6215 = vmatpush3.msra.mxu1 %v3856_v39 }
 0x49a   : > { %6197 = vmatmul.mubr.msk.f32.gmra.mxu1 %vm2605_vm6, %v3590_v19  ;;  %6216 = vmatprep.subr.mxu1 %v3855_v56 }
 0x49b   : > { %6199 = vmatprep.mubr.msk.f32.mxu1 %vm6416_vm4, %v8124_v25  ;;  %v3851_v25 = vld [vmem:[%s8109_s7 + $0x6d0] sm:$0xff]  ;;  %6217 = vmatpush3.msra.mxu1 %v3855_v56 }
 0x49c   : > { %6223 = vmatprep.subr.mxu0 %v3851_v25  ;;  %6232 = vmatprep.subr.mxu1 %v7953_v21 }
 0x49d   : > { %6224 = vmatpush3.msra.mxu0 %v3851_v25 }
 0x49e   : > { %6200 = vmatmul.mubr.msk.f32.gmra.mxu1 %vm2605_vm6, %v3591_v55  ;;  %6225 = vmatprep.subr.mxu0 %v3850_v24 }
 0x49f   : > { %6226 = vmatpush3.msra.mxu0 %v3850_v24 }
 0x4a0   : > { %6227 = vmatprep.subr.mxu0 %v3849_v18 }
 0x4a1   : > { %6228 = vmatpush3.msra.mxu0 %v3849_v18 }
 0x4a2   : > { %6243 = vmatprep.subr.mxu0 %v7958_v31 }
 0x4ea   : > { %v2825_v12 = vpop.f32.mrf.mxu0 }
 0x4ec   : > { %v5972_v14 = vpop.f32.mrf.mxu0 }
 0x4ee   : > { %v2720_v33 = vpop.f32.mrf.mxu1 }
 0x4ef   : > { %v2830_v57 = vpop.f32.mrf.mxu0  ;;  %v2826_v59 = vadd.f32 %v2825_v12, %v2720_v33 }
 0x4f0   : > { %v5941_v60 = vpop.f32.mrf.mxu1 }
 0x4f1   : > { %v5975_v61 = vpop.f32.mrf.mxu0 }
 0x4f2   : > { %v2725_v20 = vpop.f32.mrf.mxu1 }
 0x4f3   : > { %v2835_v3 = vpop.f32.mrf.mxu0  ;;  %v2831_v26 = vadd.f32 %v2830_v57, %v2725_v20 }
 0x4f4   : > { %v5944_v34 = vpop.f32.mrf.mxu1 }
 0x4f5   : > { %v5978_v43 = vpop.f32.mrf.mxu0 }
 0x4f6   : > { %v2730_v35 = vpop.f32.mrf.mxu1 }
 0x4f7   : > { %v2836_v7 = vadd.f32 %v2835_v3, %v2730_v35  ;;  %v2840_v4 = vpop.f32.mrf.mxu0 }
 0x4f8   : > { %v5947_v48 = vpop.f32.mrf.mxu1 }
 0x4f9   : > { %v5981_v40 = vpop.f32.mrf.mxu0 }
 0x4fc   : > { %v2735_v28 = vpop.f32.mrf.mxu1  ;;  %v2845_v41 = vpop.f32.mrf.mxu0 }
 0x4fd   : > { %v7962_v52 = vadd.f32 %v2840_v4, %v2735_v28 }
 0x4fe   : > { %v5950_v36 = vpop.f32.mrf.mxu1  ;;  %v5984_v45 = vpop.f32.mrf.mxu0 }
 0x501   : > { %v2740_v58 = vpop.f32.mrf.mxu1 }
 0x502   : > { %v7964_v38 = vadd.f32 %v2845_v41, %v2740_v58  ;;  %v3066_v2 = vpop.f32.mrf.mxu0 }
 0x503   : > { %v5953_v6 = vpop.f32.mrf.mxu1 }
 0x504   : > { %v6034_v8 = vpop.f32.mrf.mxu0 }
 0x507   : > { %v2943_v30 = vpop.f32.mrf.mxu1  ;;  %v3071_v1 = vpop.f32.mrf.mxu0 }
 0x508   : > { %v2967_v47 = vadd.f32 %v2943_v30, %v2826_v59 }
 0x509   : > { %v6003_v13 = vpop.f32.mrf.mxu1  ;;  %v6037_v23 = vpop.f32.mrf.mxu0 }
 0x50a   : > { %v3090_v11 = vadd.f32 %v3066_v2, %v2967_v47 }
 0x50b   : > { %v2948_v62 = vpop.f32.mrf.mxu1  ;;  %v3076_v54 = vpop.f32.mrf.mxu0 }
 0x50c   : > { %v2968_v32 = vadd.f32 %v2948_v62, %v2831_v26 }
 0x50d   : > { %v6006_v10 = vpop.f32.mrf.mxu1  ;;  %v6040_v42 = vpop.f32.mrf.mxu0 }
 0x50e   : > { %v3091_v50 = vadd.f32 %v3071_v1, %v2968_v32 }
 0x510   : > { %v2953_v15 = vpop.f32.mrf.mxu1 }
 0x511   : > { %v2969_v22 = vadd.f32 %v2953_v15, %v2836_v7  ;;  %v3081_v17 = vpop.f32.mrf.mxu0 }
 0x512   : > { %v6009_v0 = vpop.f32.mrf.mxu1 }
 0x513   : > { %v6043_v51 = vpop.f32.mrf.mxu0  ;;  %v3092_v5 = vadd.f32 %v3076_v54, %v2969_v22 }
 0x516   : > { %v2958_v27 = vpop.f32.mrf.mxu1  ;;  %v7966_v37 = vpop.f32.mrf.mxu0 }
 0x517   : > { %v2970_v23 = vadd.f32 %v2958_v27, %v7962_v52  ;;  %v7979_v52 = vld [vmem:[#allocation7 + $0x1] ss:$0 sm:$0xff] }
 0x518   : > { %v6012_v46 = vpop.f32.mrf.mxu1  ;;  %v6046_v53 = vpop.f32.mrf.mxu0 }
 0x519   : > { %v3093_v51 = vadd.f32 %v3081_v17, %v2970_v23 }
 0x51b   : > { %v2963_v44 = vpop.f32.mrf.mxu1 }
 0x51c   : > { %v3312_v63 = vpop.f32.mrf.mxu0  ;;  %v2971_v0 = vadd.f32 %v2963_v44, %v7964_v38 }
 0x51d   : > { %v6015_v16 = vpop.f32.mrf.mxu1 }
 0x51e   : > { %v6096_v19 = vpop.f32.mrf.mxu0  ;;  %v3094_v38 = vadd.f32 %v7966_v37, %v2971_v0 }
 0x521   : > { %v3189_v55 = vpop.f32.mrf.mxu1  ;;  %v3317_v49 = vpop.f32.mrf.mxu0 }
 0x522   : > { %v3213_v45 = vadd.f32 %v3189_v55, %v3090_v11 }
 0x523   : > { %v6065_v9 = vpop.f32.mrf.mxu1  ;;  %v6099_v29 = vpop.f32.mrf.mxu0 }
 0x524   : > { %v3336_v1 = vadd.f32 %v3312_v63, %v3213_v45 }
 0x525   : > { %v3194_v25 = vpop.f32.mrf.mxu1  ;;  %v3322_v39 = vpop.f32.mrf.mxu0 }
 0x526   : > { %v3214_v30 = vadd.f32 %v3194_v25, %v3091_v50 }
 0x527   : > { %v6068_v24 = vpop.f32.mrf.mxu1  ;;  %v6102_v56 = vpop.f32.mrf.mxu0 }
 0x528   : > { %v3337_v42 = vadd.f32 %v3317_v49, %v3214_v30  ;;  %v4024_v30 = vld [vmem:[%s8109_s7 + $0x708] sm:$0xff] }
 0x52a   : > { %v3199_v18 = vpop.f32.mrf.mxu1 }
 0x52b   : > { %v7968_v12 = vpop.f32.mrf.mxu0  ;;  %v3215_v10 = vadd.f32 %v3199_v18, %v3092_v5 }
 0x52c   : > { %v6071_v14 = vpop.f32.mrf.mxu1 }
 0x52d   : > { %v6105_v33 = vpop.f32.mrf.mxu0  ;;  %v3338_v19 = vadd.f32 %v3322_v39, %v3215_v10  ;;  %v4204_v10 = vld [vmem:[%s8109_s7 + $0x758] sm:$0xff] }
 0x530   : > { %v3204_v57 = vpop.f32.mrf.mxu1  ;;  %v7970_v59 = vpop.f32.mrf.mxu0 }
 0x531   : > { %v3216_v27 = vadd.f32 %v3204_v57, %v3093_v51 }
 0x532   : > { %v6074_v60 = vpop.f32.mrf.mxu1  ;;  %v6108_v61 = vpop.f32.mrf.mxu0 }
 0x533   : > { %v3339_v39 = vadd.f32 %v7968_v12, %v3216_v27  ;;  %v4290_v27 = vld [vmem:[%s8109_s7 + $0x760] sm:$0xff] }
 0x535   : > { %v3209_v20 = vpop.f32.mrf.mxu1 }
 0x536   : > { %v3558_v3 = vpop.f32.mrf.mxu0  ;;  %v3217_v18 = vadd.f32 %v3209_v20, %v3094_v38  ;;  %v4381_v38 = vld [vmem:[%s8109_s7 + $0x790] sm:$0xff] }
 0x537   : > { %v6077_v26 = vpop.f32.mrf.mxu1 }
 0x538   : > { %v6158_v34 = vpop.f32.mrf.mxu0  ;;  %v3340_v26 = vadd.f32 %v7970_v59, %v3217_v18  ;;  %v4114_v59 = vld [vmem:[%s8109_s7 + $0x730] sm:$0xff]  ;;  %v4560_v18 = vld [vmem:[%s8109_s7 + $0x7d8] sm:$0xff] }
 0x53a   : > { %v3435_v43 = vpop.f32.mrf.mxu1 }
 0x53b   : > { %v3563_v35 = vpop.f32.mrf.mxu0  ;;  %v3459_v62 = vadd.f32 %v3435_v43, %v3336_v1  ;;  %v4023_v1 = vld [vmem:[%s8109_s7 + $0x700] sm:$0xff] }
 0x53c   : > { %v6127_v7 = vpop.f32.mrf.mxu1 }
 0x53d   : > { %v6161_v4 = vpop.f32.mrf.mxu0  ;;  %v3582_v53 = vadd.f32 %v3558_v3, %v3459_v62 }
 0x53e   : > { %v3440_v48 = vpop.f32.mrf.mxu1 }
 0x53f   : > { %v3568_v40 = vpop.f32.mrf.mxu0  ;;  %v3460_v46 = vadd.f32 %v3440_v48, %v3337_v42  ;;  %v4025_v48 = vld [vmem:[%s8109_s7 + $0x710] sm:$0xff]  ;;  %v4293_v42 = vld [vmem:[%s8109_s7 + $0x778] sm:$0xff] }
 0x540   : > { %v6130_v28 = vpop.f32.mrf.mxu1 }
 0x541   : > { %v6164_v41 = vpop.f32.mrf.mxu0  ;;  %v3583_v25 = vadd.f32 %v3563_v35, %v3460_v46  ;;  %v4203_v46 = vld [vmem:[%s8109_s7 + $0x750] sm:$0xff] }
 0x542   : > { %v3445_v36 = vpop.f32.mrf.mxu1 }
 0x543   : > { %v7972_v58 = vpop.f32.mrf.mxu0  ;;  %v3461_v17 = vadd.f32 %v3445_v36, %v3338_v19  ;;  %v4382_v19 = vld [vmem:[%s8109_s7 + $0x798] sm:$0xff] }
 0x544   : > { %v6133_v2 = vpop.f32.mrf.mxu1 }
 0x545   : > { %v6167_v6 = vpop.f32.mrf.mxu0  ;;  %v3584_v61 = vadd.f32 %v3568_v40, %v3461_v17  ;;  %v4470_v17 = vld [vmem:[%s8109_s7 + $0x7b0] sm:$0xff] }
 0x546   : > { %v3450_v8 = vpop.f32.mrf.mxu1 }
 0x547   : > { %v7974_v47 = vpop.f32.mrf.mxu0  ;;  %v3462_v60 = vadd.f32 %v3450_v8, %v3339_v39 }
 0x548   : > { %v6136_v13 = vpop.f32.mrf.mxu1 }
 0x549   : > { %v6170_v54 = vpop.f32.mrf.mxu0  ;;  %v3585_v41 = vadd.f32 %v7972_v58, %v3462_v60  ;;  %v4113_v58 = vld [vmem:[%s8109_s7 + $0x728] sm:$0xff]  ;;  %v4112_v13 = vld [vmem:[%s8109_s7 + $0x720] sm:$0xff] }
 0x54a   : > { %v3455_v32 = vpop.f32.mrf.mxu1  ;;  %v4558_v60 = vld [vmem:[%s8109_s7 + $0x7c8] sm:$0xff] }
 0x54b   : > { %v6206_v15 = vpop.f32.mrf.mxu0  ;;  %v3463_v28 = vadd.f32 %v3455_v32, %v3340_v26 }
 0x54c   : > { %v3839_v11 = vmax.f32 %v6206_v15, 0.0  ;;  %v6139_v22 = vpop.f32.mrf.mxu1 }
 0x54d   : > { %v3819_v50 = vpop.f32.mrf.mxu0  ;;  %v3586_v23 = vadd.f32 %v7974_v47, %v3463_v28 }
 0x54e   : > { %3844 = vst.msk [vmem:[#allocation4 + $0x8] sm:$0xff] %vm3842_vm9, %v3839_v11  ;;  %v3838_v63 = vmax.f32 %v3819_v50, 0.0  ;;  %v3681_v16 = vpop.f32.mrf.mxu1  ;;  %v4292_v50 = vld [vmem:[%s8109_s7 + $0x770] sm:$0xff] }
 0x54f   : > { %v3705_v5 = vadd.f32 %v3681_v16, %v3582_v53  ;;  %v6209_v55 = vpop.f32.mrf.mxu0  ;;  %v4291_v16 = vld [vmem:[%s8109_s7 + $0x768] sm:$0xff] }
 0x550   : > { %3843 = vst.msk [vmem:[#allocation4] sm:$0xff] %vm3842_vm9, %v3838_v63  ;;  %v3841_v49 = vmax.f32 %v6209_v55, 0.0  ;;  %v6189_v9 = vpop.f32.mrf.mxu1  ;;  %v4202_v63 = vld [vmem:[%s8109_s7 + $0x748] sm:$0xff] }
 0x551   : > { %v3715_v44 = vadd.f32 %v7979_v52, %v3705_v5  ;;  %v3829_v29 = vpop.f32.mrf.mxu0  ;;  %v4471_v5 = vld [vmem:[%s8109_s7 + $0x7b8] sm:$0xff] }
 0x552   : > { %3846 = vst.msk [vmem:[#allocation4 + $0x18] sm:$0xff] %vm3842_vm9, %v3841_v49  ;;  %v3840_v24 = vmax.f32 %v3829_v29, 0.0  ;;  %v3686_v56 = vpop.f32.mrf.mxu1  ;;  %v4380_v29 = vld [vmem:[%s8109_s7 + $0x788] sm:$0xff] }
 0x553   : > { %v3720_v14 = vmax.f32 %v3715_v44, 0.0  ;;  %v3706_v33 = vadd.f32 %v3686_v56, %v3583_v25  ;;  %v4469_v25 = vld [vmem:[%s8109_s7 + $0x7a8] sm:$0xff]  ;;  %v4468_v56 = vld [vmem:[%s8109_s7 + $0x7a0] sm:$0xff] }
 0x554   : > { %3845 = vst.msk [vmem:[#allocation4 + $0x10] sm:$0xff] %vm3842_vm9, %v3840_v24  ;;  %v6192_v57 = vpop.f32.mrf.mxu1  ;;  %v4379_v24 = vld [vmem:[%s8109_s7 + $0x780] sm:$0xff] }
 0x555   : > { %3725 = vst [vmem:[%s6527_s29 + $0x140] sm:$0xff] %v3720_v14  ;;  %v3716_v37 = vadd.f32 %v7979_v52, %v3706_v33  ;;  %v3854_v7 = vld [vmem:[#allocation4 + $0x9] sm:$0x7f]  ;;  %v4559_v57 = vld [vmem:[%s8109_s7 + $0x7d0] sm:$0xff] }
 0x556   : > { %v3691_v3 = vpop.f32.mrf.mxu1  ;;  %v3848_v4 = vld [vmem:[#allocation4 + $0x8] sm:$0x7f] }
 0x557   : > { %v3721_v34 = vmax.f32 %v3716_v37, 0.0  ;;  %v3707_v43 = vadd.f32 %v3691_v3, %v3584_v61  ;;  %v3853_v35 = vld [vmem:[#allocation4 + $0x1] sm:$0xff]  ;;  %v4557_v37 = vld [vmem:[%s8109_s7 + $0x7c0] sm:$0xff] }
 0x558   : > { %v3847_v20 = vld [vmem:[#allocation4] sm:$0xff]  ;;  %6218 = vmatprep.mubr.msk.f32.mxu1 %vm3842_vm9, %v3853_v35  ;;  %v6195_v12 = vpop.f32.mrf.mxu1 }
 0x559   : > { %6229 = vmatprep.mubr.msk.f32.mxu0 %vm3842_vm9, %v3847_v20  ;;  %3726 = vst [vmem:[%s6527_s29 + $0x148] sm:$0xff] %v3721_v34  ;;  %v3717_v40 = vadd.f32 %v7979_v52, %v3707_v43  ;;  %6219 = vmatmul.mubr.msk.f32.vlgmr.msra.gmra.mxu1 %vm3842_vm9, %v3854_v7  ;;  %v4021_v36 = vld [vmem:[#allocation4 + $0x2] sm:$0xff] }
 0x55a   : > { %6230 = vmatmul.mubr.msk.f32.vlgmr.msra.gmra.mxu0 %vm3842_vm9, %v3848_v4  ;;  %6233 = vmatpush3.msra.mxu1 %v7953_v21  ;;  %v3696_v45 = vpop.f32.mrf.mxu1  ;;  %v4110_v6 = vld [vmem:[#allocation4 + $0x5] sm:$0xff] }
 0x55b   : > { %6244 = vmatpush3.msra.mxu0 %v7958_v31  ;;  %v3722_v2 = vmax.f32 %v3717_v40, 0.0  ;;  %6234 = vmatprep.subr.mxu1 %v4025_v48  ;;  %v3708_v8 = vadd.f32 %v3696_v45, %v3585_v41  ;;  %v4022_v11 = vld [vmem:[#allocation4 + $0xa] sm:$0x7f]  ;;  %v4378_v39 = vld [vmem:[#allocation4 + $0x12] sm:$0x7f] }
 0x55c   : > { %6240 = vmatprep.mubr.msk.f32.mxu1 %vm3842_vm9, %v4021_v36  ;;  %6245 = vmatprep.subr.mxu0 %v4114_v59  ;;  %v6198_v21 = vpop.f32.mrf.mxu1  ;;  %v4111_v22 = vld [vmem:[#allocation4 + $0xd] sm:$0x7f]  ;;  %v4556_v61 = vld [vmem:[#allocation4 + $0x14] sm:$0x7f] }
 0x55d   : > { %6251 = vmatprep.mubr.msk.f32.mxu0 %vm3842_vm9, %v4110_v6  ;;  %3727 = vst [vmem:[%s6527_s29 + $0x150] sm:$0xff] %v3722_v2  ;;  %v3718_v31 = vadd.f32 %v7979_v52, %v3708_v8  ;;  %6235 = vmatpush3.msra.mxu1 %v4025_v48  ;;  %v4199_v51 = vld [vmem:[#allocation4 + $0x6] sm:$0xff]  ;;  %v4200_v55 = vld [vmem:[#allocation4 + $0xe] sm:$0x7f] }
 0x55e   : > { %6246 = vmatpush3.msra.mxu0 %v4114_v59  ;;  %6236 = vmatprep.subr.mxu1 %v4024_v30  ;;  %v3701_v62 = vpop.f32.mrf.mxu1  ;;  %v4288_v53 = vld [vmem:[#allocation4 + $0x7] sm:$0xff]  ;;  %v4289_v49 = vld [vmem:[#allocation4 + $0xf] sm:$0x7f] }
 0x55f   : > { %6247 = vmatprep.subr.mxu0 %v4113_v58  ;;  %v3723_v54 = vmax.f32 %v3718_v31, 0.0  ;;  %6237 = vmatpush3.msra.mxu1 %v4024_v30  ;;  %v3709_v32 = vadd.f32 %v3701_v62, %v3586_v23  ;;  %v4377_v9 = vld [vmem:[#allocation4 + $0xa] sm:$0xff]  ;;  %v4467_v14 = vld [vmem:[#allocation4 + $0x13] sm:$0x7f] }
 0x560   : > { %6248 = vmatpush3.msra.mxu0 %v4113_v58  ;;  %6238 = vmatprep.subr.mxu1 %v4023_v1  ;;  %v6201_v15 = vpop.f32.mrf.mxu1  ;;  %v4466_v44 = vld [vmem:[#allocation4 + $0xb] sm:$0xff] }
 0x561   : > { %6249 = vmatprep.subr.mxu0 %v4112_v13  ;;  %3728 = vst [vmem:[%s6527_s29 + $0x158] sm:$0xff] %v3723_v54  ;;  %v3719_v47 = vadd.f32 %v7979_v52, %v3709_v32  ;;  %6239 = vmatpush3.msra.mxu1 %v4023_v1  ;;  %v4201_v52 = vld [vmem:[%s8109_s7 + $0x740] sm:$0xff] }
 0x562   : > { %6250 = vmatpush3.msra.mxu0 %v4112_v13  ;;  %6241 = vmatmul.mubr.msk.f32.vlgmr.msra.gmra.mxu1 %vm3842_vm9, %v4022_v11  ;;  %v4555_v33 = vld [vmem:[#allocation4 + $0xc] sm:$0xff] }
 0x563   : > { %6252 = vmatmul.mubr.msk.f32.vlgmr.msra.gmra.mxu0 %vm3842_vm9, %v4111_v22  ;;  %v3724_v0 = vmax.f32 %v3719_v47, 0.0  ;;  %6254 = vmatprep.subr.mxu1 %v4204_v10 }
 0x564   : > { %6265 = vmatprep.subr.mxu0 %v4293_v42  ;;  %6255 = vmatpush3.msra.mxu1 %v4204_v10 }
 0x565   : > { %6262 = vmatprep.mubr.msk.f32.mxu1 %vm3842_vm9, %v4199_v51  ;;  %3729 = vst [vmem:[%s6527_s29 + $0x160] sm:$0x7] %v3724_v0  ;;  %6266 = vmatpush3.msra.mxu0 %v4293_v42  ;;  %v4913_v42 = vld [vmem:[#allocation7 + $0x2] ss:$0 sm:$0xff] }
 0x566   : > { %6273 = vmatprep.mubr.msk.f32.mxu0 %vm3842_vm9, %v4288_v53  ;;  %6256 = vmatprep.subr.mxu1 %v4203_v46 }
 0x567   : > { %6267 = vmatprep.subr.mxu0 %v4292_v50  ;;  %6257 = vmatpush3.msra.mxu1 %v4203_v46 }
 0x568   : > { %6268 = vmatpush3.msra.mxu0 %v4292_v50  ;;  %6258 = vmatprep.subr.mxu1 %v4202_v63 }
 0x569   : > { %6269 = vmatprep.subr.mxu0 %v4291_v16  ;;  %6259 = vmatpush3.msra.mxu1 %v4202_v63 }
 0x56a   : > { %6270 = vmatpush3.msra.mxu0 %v4291_v16  ;;  %6260 = vmatprep.subr.mxu1 %v4201_v52 }
 0x56b   : > { %6271 = vmatprep.subr.mxu0 %v4290_v27  ;;  %6261 = vmatpush3.msra.mxu1 %v4201_v52 }
 0x56c   : > { %6272 = vmatpush3.msra.mxu0 %v4290_v27  ;;  %6263 = vmatmul.mubr.msk.f32.vlgmr.msra.gmra.mxu1 %vm3842_vm9, %v4200_v55 }
 0x56d   : > { %6274 = vmatmul.mubr.msk.f32.vlgmr.msra.gmra.mxu0 %vm3842_vm9, %v4289_v49  ;;  %6276 = vmatprep.subr.mxu1 %v4382_v19 }
 0x56e   : > { %6287 = vmatprep.subr.mxu0 %v4471_v5  ;;  %6277 = vmatpush3.msra.mxu1 %v4382_v19 }
 0x56f   : > { %6284 = vmatprep.mubr.msk.f32.mxu1 %vm3842_vm9, %v4377_v9  ;;  %6288 = vmatpush3.msra.mxu0 %v4471_v5 }
 0x570   : > { %6295 = vmatprep.mubr.msk.f32.mxu0 %vm3842_vm9, %v4466_v44  ;;  %6278 = vmatprep.subr.mxu1 %v4381_v38 }
 0x571   : > { %6289 = vmatprep.subr.mxu0 %v4470_v17  ;;  %6279 = vmatpush3.msra.mxu1 %v4381_v38 }
 0x572   : > { %6290 = vmatpush3.msra.mxu0 %v4470_v17  ;;  %6280 = vmatprep.subr.mxu1 %v4380_v29 }
 0x573   : > { %6291 = vmatprep.subr.mxu0 %v4469_v25  ;;  %6281 = vmatpush3.msra.mxu1 %v4380_v29 }
 0x574   : > { %6292 = vmatpush3.msra.mxu0 %v4469_v25  ;;  %6282 = vmatprep.subr.mxu1 %v4379_v24 }
 0x575   : > { %6293 = vmatprep.subr.mxu0 %v4468_v56  ;;  %6283 = vmatpush3.msra.mxu1 %v4379_v24 }
 0x576   : > { %6294 = vmatpush3.msra.mxu0 %v4468_v56  ;;  %6285 = vmatmul.mubr.msk.f32.vlgmr.msra.gmra.mxu1 %vm3842_vm9, %v4378_v39 }
 0x577   : > { %6296 = vmatmul.mubr.msk.f32.vlgmr.msra.gmra.mxu0 %vm3842_vm9, %v4467_v14  ;;  %6298 = vmatprep.subr.mxu1 %v4560_v18 }
 0x578   : > { %6306 = vmatprep.mubr.msk.f32.mxu1 %vm3842_vm9, %v4555_v33  ;;  %6299 = vmatpush3.msra.mxu1 %v4560_v18 }
 0x579   : > { %6300 = vmatprep.subr.mxu1 %v4559_v57 }
 0x57a   : > { %6301 = vmatpush3.msra.mxu1 %v4559_v57 }
 0x57b   : > { %6302 = vmatprep.subr.mxu1 %v4558_v60 }
 0x57c   : > { %6303 = vmatpush3.msra.mxu1 %v4558_v60 }
 0x57d   : > { %6304 = vmatprep.subr.mxu1 %v4557_v37 }
 0x57e   : > { %6305 = vmatpush3.msra.mxu1 %v4557_v37 }
 0x57f   : > { %6307 = vmatmul.mubr.msk.f32.vlgmr.msra.gmra.mxu1 %vm3842_vm9, %v4556_v61 }
 0x619   : > { %v6220_v3 = vpop.f32.mrf.mxu1 }
 0x61a   : > { %v6231_v26 = vpop.f32.mrf.mxu0 }
 0x61b   : > { %v3931_v34 = vpop.f32.mrf.mxu1  ;;  %v4018_v20 = vadd.f32 %v6231_v26, %v6220_v3 }
 0x61c   : > { %v4012_v35 = vpop.f32.mrf.mxu0 }
 0x61d   : > { %v4013_v7 = vadd.f32 %v4012_v35, %v3931_v34 }
 0x622   : > { %v6242_v43 = vpop.f32.mrf.mxu1 }
 0x623   : > { %v4109_v4 = vadd.f32 %v6242_v43, %v4018_v20  ;;  %v6253_v48 = vpop.f32.mrf.mxu0 }
 0x624   : > { %v4099_v12 = vpop.f32.mrf.mxu1 }
 0x625   : > { %v4108_v40 = vadd.f32 %v4099_v12, %v4013_v7  ;;  %v4198_v59 = vadd.f32 %v6253_v48, %v4109_v4  ;;  %v4188_v41 = vpop.f32.mrf.mxu0 }
 0x627   : > { %v4197_v45 = vadd.f32 %v4188_v41, %v4108_v40 }
 0x62c   : > { %v6264_v28 = vpop.f32.mrf.mxu1 }
 0x62d   : > { %v4287_v2 = vadd.f32 %v6264_v28, %v4198_v59  ;;  %v6275_v6 = vpop.f32.mrf.mxu0 }
 0x62e   : > { %v4277_v36 = vpop.f32.mrf.mxu1 }
 0x62f   : > { %v4286_v8 = vadd.f32 %v4277_v36, %v4197_v45  ;;  %v4376_v58 = vadd.f32 %v6275_v6, %v4287_v2  ;;  %v4366_v21 = vpop.f32.mrf.mxu0 }
 0x631   : > { %v4375_v1 = vadd.f32 %v4366_v21, %v4286_v8 }
 0x636   : > { %v6286_v30 = vpop.f32.mrf.mxu1 }
 0x637   : > { %v4465_v13 = vadd.f32 %v6286_v30, %v4376_v58  ;;  %v6297_v23 = vpop.f32.mrf.mxu0 }
 0x638   : > { %v4455_v31 = vpop.f32.mrf.mxu1 }
 0x639   : > { %v4464_v62 = vadd.f32 %v4455_v31, %v4375_v1  ;;  %v4554_v54 = vadd.f32 %v6297_v23, %v4465_v13  ;;  %v4544_v32 = vpop.f32.mrf.mxu0 }
 0x63b   : > { %v4553_v15 = vadd.f32 %v4544_v32, %v4464_v62 }
 0x63f   : > { %v6308_v10 = vpop.f32.mrf.mxu1 }
 0x640   : > { %v4643_v47 = vadd.f32 %v6308_v10, %v4554_v54 }
 0x641   : > { %v4633_v11 = vpop.f32.mrf.mxu1 }
 0x642   : > { %v4650_v22 = vadd.f32 %v4913_v42, %v4643_v47  ;;  %v4642_v0 = vadd.f32 %v4633_v11, %v4553_v15 }
 0x644   : > { %v4652_v51 = vmax.f32 %v4650_v22, 0.0  ;;  %v4649_v46 = vadd.f32 %v4913_v42, %v4642_v0 }
 0x646   : > { %4654 = vst [vmem:[%s6527_s29 + $0x170] sm:$0x7f] %v4652_v51  ;;  %v4651_v50 = vmax.f32 %v4649_v46, 0.0 }
 0x648   : > { %4653 = vst [vmem:[%s6527_s29 + $0x168] sm:$0xff] %v4651_v50 }
 0x649 PF: > { %s21_s30 = sadd.s32 1, %s6409_s30  }
 0x64a   : > { %p18_p2 = scmp.ge.s32.totalorder %s21_s30, 4  }
 0x64c   :  { %20 = sbr.rel (!%p18_p2) target bundleno = 2 (0x2), region = 104 }
 0x651   :  { %4677 = vsyncpa [#allocation6], 1 }
 0x652   :  { %4679 = vsyncpa [#allocation6 + $0x1], 1 }
 0x653   :  { %4680 = vsyncpa [#allocation8], 1 }

</bundles_post_ra>
